<compile_context>
chip_gen: v5e
topology: v5e:2x2
jax: 0.10.0
libtpu: 0.0.40
codegen_flags: <defaults>
</compile_context>

<pallas_src>
import functools
import math

import jax
import jax.numpy as jnp
from jax.experimental import pallas as pl
from jax.experimental.pallas import tpu as pltpu

_LN_EPS = 1e-5


def _layer_norm(x, gamma, beta, eps=_LN_EPS):
    mu = jnp.mean(x, axis=-1, keepdims=True)
    xc = x - mu
    var = jnp.mean(xc * xc, axis=-1, keepdims=True)
    return xc * jax.lax.rsqrt(var + eps) * gamma + beta


def _galerkin_sa_kernel(n_tokens, num_seqs, embed,
                        x_ref, wqkv_ref, mavg_ref, ln_ref, mask_ref, wo_ref, bo_ref,
                        o_ref):
    """Single grid step over the whole [num_seqs * n_tokens, E] token slab.

    Token-wise work (QKV projection, packed per-head LayerNorm of K/V) runs on the full
    slab so the MXU sees wide, >=128-row operands. Only the per-sequence Galerkin
    contraction K^T V (which must not mix tokens across sequences) is looped; its chain
    (kv -> q@kv -> Wo -> store) writes straight into the output rows for that sequence,
    so consecutive sequences pipeline and no concatenate copy is needed.
    """
    E = embed
    x = x_ref[...]                                                       # [R, E]

    # 1) fused Q|K|V projection: one wide MXU push instead of three narrow ones.
    p = jnp.dot(x, wqkv_ref[...], preferred_element_type=jnp.float32)    # [R, 3E]

    # 2) packed per-head LayerNorm of the K and V blocks (Q block passes through
    #    unchanged). First/second moments come from block-averaging matmuls at full
    #    3E lane width; E[x^2] - mean^2 keeps the two MXU pushes independent.
    mavg = mavg_ref[...]                                                 # [3E, 3E]
    c2 = ln_ref[0:1, :]                                                  # [1, 3E]
    gamma = ln_ref[1:2, :]
    beta = ln_ref[2:3, :]

    mean = jnp.dot(p, mavg, preferred_element_type=jnp.float32)          # 0 for Q cols
    ex2 = jnp.dot(p * p, mavg, preferred_element_type=jnp.float32)       # 0 for Q cols
    var = ex2 - mean * mean + c2                                         # 1-eps for Q cols
    pn = (p - mean) * jax.lax.rsqrt(var + _LN_EPS) * gamma + beta        # [R, 3E]

    q = pn[:, :E]
    k = pn[:, E:2 * E]
    v = pn[:, 2 * E:]
    mask = mask_ref[...]                 # [E, E] per-head block-diagonal, 1/N folded in
    wo = wo_ref[...]                     # [E, cout_pad]
    bo = bo_ref[...]                     # [1, cout_pad]

    # 3) Galerkin attention per sequence: out = (Q @ (blockdiag(K^T V) / N)) @ Wo + bo.
    #    dot_general contracts the token axis directly -> no explicit transpose.
    #    Each sequence writes its own (sublane-aligned, full-lane) output rows.
    for s in range(num_seqs):
        lo = s * n_tokens
        hi = lo + n_tokens
        kv = jax.lax.dot_general(k[lo:hi], v[lo:hi],
                                 (((0,), (0,)), ((), ())),
                                 preferred_element_type=jnp.float32)     # [E, E]
        ga = jnp.dot(q[lo:hi], kv * mask,
                     preferred_element_type=jnp.float32)                 # [N, E]
        o_ref[lo:hi, :] = (jnp.dot(ga, wo, preferred_element_type=jnp.float32)
                           + bo)


def _pack_params(params, num_heads, n_tokens, cout_pad):
    """Host-side repacking of module params into kernel-friendly operands."""
    E = params["wq_t"].shape[0]
    D = E // num_heads
    cout = params["wo_t"].shape[1]

    # fused [Wq | Wk | Wv]^T : [E, 3E]
    wqkv = jnp.concatenate([params["wq_t"], params["wk_t"], params["wv_t"]], axis=1)

    head_of = jnp.arange(E) // D
    head_block = (head_of[:, None] == head_of[None, :]).astype(jnp.float32)   # [E, E]
    avg_block = head_block / D

    # per-head averaging matrix over the packed [Q|K|V] lane axis; Q columns are zero
    mavg = jnp.zeros((3 * E, 3 * E), jnp.float32)
    mavg = mavg.at[E:2 * E, E:2 * E].set(avg_block)
    mavg = mavg.at[2 * E:, 2 * E:].set(avg_block)

    # row 0: second-moment bias making inv_std == 1 for the (un-normalized) Q block
    # row 1: packed LN gamma (ones for Q), row 2: packed LN beta (zeros for Q)
    c2 = jnp.zeros((1, 3 * E), jnp.float32).at[:, :E].set(1.0 - _LN_EPS)
    gamma = jnp.concatenate([jnp.ones((1, E), jnp.float32),
                             jnp.tile(params["ln_k_g"], (1, num_heads)),
                             jnp.tile(params["ln_v_g"], (1, num_heads))], axis=1)
    beta = jnp.concatenate([jnp.zeros((1, E), jnp.float32),
                            jnp.tile(params["ln_k_b"], (1, num_heads)),
                            jnp.tile(params["ln_v_b"], (1, num_heads))], axis=1)
    ln_packed = jnp.concatenate([c2, gamma, beta], axis=0)                    # [3, 3E]

    bd_mask = head_block / float(n_tokens)                                    # [E, E]

    wo_pad = jnp.zeros((E, cout_pad), jnp.float32).at[:, :cout].set(params["wo_t"])
    bo_pad = jnp.zeros((1, cout_pad), jnp.float32).at[:, :cout].set(params["bo"])
    return wqkv, mavg, ln_packed, bd_mask, wo_pad, bo_pad


def galerkin_self_attention(tokens, params, num_heads):
    """tokens: [B, N, E] float32 -> [B, N, out_dim] float32 via one Pallas kernel."""
    B, N, E = tokens.shape
    cout = params["wo_t"].shape[1]
    cout_pad = pl.cdiv(cout, 128) * 128          # lane-dense output width
    rows = B * N

    wqkv, mavg, ln_packed, bd_mask, wo_pad, bo_pad = _pack_params(
        params, num_heads, N, cout_pad)
    x2d = tokens.reshape(rows, E)

    kernel = functools.partial(_galerkin_sa_kernel, N, B, E)

    def full(shape):
        return pl.BlockSpec(shape, lambda i: (0,) * len(shape))

    out2d = pl.pallas_call(
        kernel,
        out_shape=jax.ShapeDtypeStruct((rows, cout_pad), jnp.float32),
        grid=(1,),                                   # single step: whole slab, one TC
        in_specs=[
            full((rows, E)),                         # token slab
            full((E, 3 * E)),                        # fused [Wq|Wk|Wv]^T
            full((3 * E, 3 * E)),                    # per-head averaging matrix
            full((3, 3 * E)),                        # packed [c2; gamma; beta]
            full((E, E)),                            # block-diag mask (1/N folded in)
            full((E, cout_pad)),                     # Wo^T, zero-padded to 128 lanes
            full((1, cout_pad)),                     # bo, zero-padded
        ],
        out_specs=full((rows, cout_pad)),
        compiler_params=pltpu.CompilerParams(dimension_semantics=("arbitrary",)),
    )(x2d, wqkv, mavg, ln_packed, bd_mask, wo_pad, bo_pad)

    return out2d.reshape(B, N, cout_pad)[:, :, :cout]


def _tokens_from_seq(seq):
    """'b s c h w' + cell-centered grid channels -> '(b s) (h w) (c+2)' tokens."""
    b, s, c, hh, ww = seq.shape
    ys = (jnp.arange(hh, dtype=jnp.float32) + 0.5) / hh
    xs = (jnp.arange(ww, dtype=jnp.float32) + 0.5) / ww
    gy, gx = jnp.meshgrid(ys, xs, indexing="ij")
    g = jnp.stack([gy, gx], axis=0) * 2.0 - 1.0                   # [2, H, W]
    g = jnp.broadcast_to(g[None, None], (b, s, 2, hh, ww))
    full = jnp.concatenate([g, seq], axis=2)                      # [b, s, c+2, h, w]
    return jnp.transpose(full, (0, 1, 3, 4, 2)).reshape(b * s, hh * ww, c + 2)


def galerkin_subdomain_sa(seq, params, num_heads):
    """seq: [batch, slots, C, H, W] -> [batch, slots, out_dim, H, W]."""
    b, s, _, hh, ww = seq.shape
    tokens = _tokens_from_seq(seq)
    out = galerkin_self_attention(tokens, params, num_heads)      # [(b s), (h w), out_dim]
    cout = out.shape[-1]
    return out.reshape(b, s, hh, ww, cout).transpose(0, 1, 4, 2, 3)


def init_params(key, embed_dim, out_dim, num_heads):
    """Deterministic synthetic init mirroring the module's __init__ shapes."""
    E = embed_dim + 2
    assert E % num_heads == 0
    D = E // num_heads
    keys = jax.random.split(key, 5)
    spread = math.sqrt(3.0 / E)

    def qkv_init(k):
        # diagonal-domination init: U(-spread, spread) * gain, then + delta on diagonal
        w = jax.random.uniform(k, (E, E), jnp.float32, -spread, spread) * 0.01
        w = w + jnp.eye(E, dtype=jnp.float32) * 0.01
        return w.T  # stored transposed so the kernel does x @ W^T as x @ w_t

    bound = 1.0 / math.sqrt(E)
    wo = jax.random.uniform(keys[3], (out_dim, E), jnp.float32, -bound, bound)
    bo = jax.random.uniform(keys[4], (1, out_dim), jnp.float32, -bound, bound)
    return dict(
        wq_t=qkv_init(keys[0]), wk_t=qkv_init(keys[1]), wv_t=qkv_init(keys[2]),
        wo_t=wo.T, bo=bo,
        ln_k_g=jnp.ones((1, D), jnp.float32), ln_k_b=jnp.zeros((1, D), jnp.float32),
        ln_v_g=jnp.ones((1, D), jnp.float32), ln_v_b=jnp.zeros((1, D), jnp.float32),
    )


def _reference(tokens, params, num_heads):
    """Pure-JAX reference of GalerkinSelfAttention.forward for correctness check."""
    B, N, E = tokens.shape
    D = E // num_heads
    q = tokens @ params["wq_t"]
    k = tokens @ params["wk_t"]
    v = tokens @ params["wv_t"]

    def split(a):
        return a.reshape(B, N, num_heads, D).transpose(0, 2, 1, 3)

    q, k, v = split(q), split(k), split(v)
    k = _layer_norm(k, params["ln_k_g"][0], params["ln_k_b"][0])
    v = _layer_norm(v, params["ln_v_g"][0], params["ln_v_b"][0])
    kv = jnp.einsum("bhnd,bhne->bhde", k, v)
    ga = jnp.einsum("bhnd,bhde->bhne", q, kv) / N
    ga = ga.transpose(0, 2, 1, 3).reshape(B, N, E)
    return ga @ params["wo_t"] + params["bo"]


if __name__ == "__main__":
    # Small shapes consistent with the module: embed_dim channels + 2 grid channels
    # must be divisible by num_heads.
    batch, slots, embed_dim, H, W = 2, 3, 30, 8, 8
    out_dim, num_heads = 16, 4            # E = 32, head_dim = 8, N = 64, B = 6

    key = jax.random.PRNGKey(0)
    k_param, k_data = jax.random.split(key)
    params = init_params(k_param, embed_dim, out_dim, num_heads)
    seq = jax.random.normal(k_data, (batch, slots, embed_dim, H, W), jnp.float32)

    fwd = jax.jit(lambda x, p: galerkin_subdomain_sa(x, p, num_heads))
    out = jax.block_until_ready(fwd(seq, params))
    assert out.shape == (batch, slots, out_dim, H, W), out.shape

    # sanity check against a pure-JAX reference of the same math
    tokens = _tokens_from_seq(seq)
    ref = _reference(tokens, params, num_heads)
    ref = ref.reshape(batch, slots, H, W, out_dim).transpose(0, 1, 4, 2, 3)
    err = float(jnp.max(jnp.abs(out - ref)))
    assert err < 1e-4, err

    print("KERNEL_OK")
</pallas_src>

<mosaic_0001>
module attributes {stable_mosaic.version = 11 : i64} {
  func.func @_galerkin_sa_kernel(%arg0: i32, %arg1: memref<384x32xf32, #tpu.memory_space<vmem>>, %arg2: memref<32x96xf32, #tpu.memory_space<vmem>>, %arg3: memref<96x96xf32, #tpu.memory_space<vmem>>, %arg4: memref<3x96xf32, #tpu.memory_space<vmem>>, %arg5: memref<32x32xf32, #tpu.memory_space<vmem>>, %arg6: memref<32x128xf32, #tpu.memory_space<vmem>>, %arg7: memref<1x128xf32, #tpu.memory_space<vmem>>, %arg8: memref<384x128xf32, #tpu.memory_space<vmem>>) attributes {dimension_semantics = [#tpu.dimension_semantics<arbitrary>], iteration_bounds = array<i64: 1>, scalar_prefetch = 0 : i64, scratch_operands = 0 : i64, tpu.core_type = #tpu.core_type<tc>, window_params = [{pipeline_mode = #tpu.pipeline_mode<synchronous>, transform_indices = @transform_0, window_bounds = array<i64: 384, 32>}, {pipeline_mode = #tpu.pipeline_mode<synchronous>, transform_indices = @transform_1, window_bounds = array<i64: 32, 96>}, {pipeline_mode = #tpu.pipeline_mode<synchronous>, transform_indices = @transform_2, window_bounds = array<i64: 96, 96>}, {pipeline_mode = #tpu.pipeline_mode<synchronous>, transform_indices = @transform_3, window_bounds = array<i64: 3, 96>}, {pipeline_mode = #tpu.pipeline_mode<synchronous>, transform_indices = @transform_4, window_bounds = array<i64: 32, 32>}, {pipeline_mode = #tpu.pipeline_mode<synchronous>, transform_indices = @transform_5, window_bounds = array<i64: 32, 128>}, {pipeline_mode = #tpu.pipeline_mode<synchronous>, transform_indices = @transform_6, window_bounds = array<i64: 1, 128>}, {pipeline_mode = #tpu.pipeline_mode<synchronous>, transform_indices = @transform_7, window_bounds = array<i64: 384, 128>}]} {
    %c0 = arith.constant 0 : index
    %c0_0 = arith.constant 0 : index
    %0 = vector.load %arg1[%c0, %c0_0] : memref<384x32xf32, #tpu.memory_space<vmem>>, vector<384x32xf32>
    %c0_1 = arith.constant 0 : index
    %c0_2 = arith.constant 0 : index
    %1 = vector.load %arg2[%c0_1, %c0_2] : memref<32x96xf32, #tpu.memory_space<vmem>>, vector<32x96xf32>
    %cst = arith.constant dense<0.000000e+00> : vector<384x96xf32>
    %2 = tpu.matmul %0, %1, %cst {dimension_numbers = #tpu.dot_dimension_numbers<[1], [0], [0], [1], [0, 0, 1, 1], [], []>} : vector<384x32xf32>, vector<32x96xf32>, vector<384x96xf32> -> vector<384x96xf32>
    %c0_3 = arith.constant 0 : index
    %c0_4 = arith.constant 0 : index
    %3 = vector.load %arg3[%c0_3, %c0_4] : memref<96x96xf32, #tpu.memory_space<vmem>>, vector<96x96xf32>
    %c0_5 = arith.constant 0 : index
    %c0_6 = arith.constant 0 : index
    %4 = vector.load %arg4[%c0_5, %c0_6] : memref<3x96xf32, #tpu.memory_space<vmem>>, vector<1x96xf32>
    %c1 = arith.constant 1 : index
    %c0_7 = arith.constant 0 : index
    %5 = vector.load %arg4[%c1, %c0_7] : memref<3x96xf32, #tpu.memory_space<vmem>>, vector<1x96xf32>
    %c2 = arith.constant 2 : index
    %c0_8 = arith.constant 0 : index
    %6 = vector.load %arg4[%c2, %c0_8] : memref<3x96xf32, #tpu.memory_space<vmem>>, vector<1x96xf32>
    %cst_9 = arith.constant dense<0.000000e+00> : vector<384x96xf32>
    %7 = tpu.matmul %2, %3, %cst_9 {dimension_numbers = #tpu.dot_dimension_numbers<[1], [0], [0], [1], [0, 0, 1, 1], [], []>} : vector<384x96xf32>, vector<96x96xf32>, vector<384x96xf32> -> vector<384x96xf32>
    %8 = arith.mulf %2, %2 : vector<384x96xf32>
    %cst_10 = arith.constant dense<0.000000e+00> : vector<384x96xf32>
    %9 = tpu.matmul %8, %3, %cst_10 {dimension_numbers = #tpu.dot_dimension_numbers<[1], [0], [0], [1], [0, 0, 1, 1], [], []>} : vector<384x96xf32>, vector<96x96xf32>, vector<384x96xf32> -> vector<384x96xf32>
    %10 = arith.mulf %7, %7 : vector<384x96xf32>
    %11 = arith.subf %9, %10 : vector<384x96xf32>
    %12 = vector.broadcast %4 : vector<1x96xf32> to vector<384x96xf32>
    %13 = arith.addf %11, %12 : vector<384x96xf32>
    %14 = arith.subf %2, %7 : vector<384x96xf32>
    %cst_11 = arith.constant 9.99999974E-6 : f32
    %15 = vector.broadcast %cst_11 : f32 to vector<384x96xf32>
    %16 = arith.addf %13, %15 : vector<384x96xf32>
    %17 = math.rsqrt %16 : vector<384x96xf32>
    %18 = arith.mulf %14, %17 : vector<384x96xf32>
    %19 = vector.broadcast %5 : vector<1x96xf32> to vector<384x96xf32>
    %20 = arith.mulf %18, %19 : vector<384x96xf32>
    %21 = vector.broadcast %6 : vector<1x96xf32> to vector<384x96xf32>
    %22 = arith.addf %20, %21 : vector<384x96xf32>
    %23 = vector.extract_strided_slice %22 {offsets = [0, 0], sizes = [384, 32], strides = [1, 1]} : vector<384x96xf32> to vector<384x32xf32>
    %24 = vector.extract_strided_slice %22 {offsets = [0, 32], sizes = [384, 32], strides = [1, 1]} : vector<384x96xf32> to vector<384x32xf32>
    %25 = vector.extract_strided_slice %22 {offsets = [0, 64], sizes = [384, 32], strides = [1, 1]} : vector<384x96xf32> to vector<384x32xf32>
    %c0_12 = arith.constant 0 : index
    %c0_13 = arith.constant 0 : index
    %26 = vector.load %arg5[%c0_12, %c0_13] : memref<32x32xf32, #tpu.memory_space<vmem>>, vector<32x32xf32>
    %c0_14 = arith.constant 0 : index
    %c0_15 = arith.constant 0 : index
    %27 = vector.load %arg6[%c0_14, %c0_15] : memref<32x128xf32, #tpu.memory_space<vmem>>, vector<32x128xf32>
    %c0_16 = arith.constant 0 : index
    %c0_17 = arith.constant 0 : index
    %28 = vector.load %arg7[%c0_16, %c0_17] : memref<1x128xf32, #tpu.memory_space<vmem>>, vector<1x128xf32>
    %29 = vector.extract_strided_slice %24 {offsets = [0, 0], sizes = [64, 32], strides = [1, 1]} : vector<384x32xf32> to vector<64x32xf32>
    %30 = vector.extract_strided_slice %25 {offsets = [0, 0], sizes = [64, 32], strides = [1, 1]} : vector<384x32xf32> to vector<64x32xf32>
    %cst_18 = arith.constant dense<0.000000e+00> : vector<32x32xf32>
    %31 = tpu.matmul %29, %30, %cst_18 {dimension_numbers = #tpu.dot_dimension_numbers<[0], [0], [1], [1], [0, 1, 1, 1], [], []>} : vector<64x32xf32>, vector<64x32xf32>, vector<32x32xf32> -> vector<32x32xf32>
    %32 = vector.extract_strided_slice %23 {offsets = [0, 0], sizes = [64, 32], strides = [1, 1]} : vector<384x32xf32> to vector<64x32xf32>
    %33 = arith.mulf %31, %26 : vector<32x32xf32>
    %cst_19 = arith.constant dense<0.000000e+00> : vector<64x32xf32>
    %34 = tpu.matmul %32, %33, %cst_19 {dimension_numbers = #tpu.dot_dimension_numbers<[1], [0], [0], [1], [0, 0, 1, 1], [], []>} : vector<64x32xf32>, vector<32x32xf32>, vector<64x32xf32> -> vector<64x32xf32>
    %cst_20 = arith.constant dense<0.000000e+00> : vector<64x128xf32>
    %35 = tpu.matmul %34, %27, %cst_20 {dimension_numbers = #tpu.dot_dimension_numbers<[1], [0], [0], [1], [0, 0, 1, 1], [], []>} : vector<64x32xf32>, vector<32x128xf32>, vector<64x128xf32> -> vector<64x128xf32>
    %36 = vector.broadcast %28 : vector<1x128xf32> to vector<64x128xf32>
    %37 = arith.addf %35, %36 : vector<64x128xf32>
    %c0_21 = arith.constant 0 : index
    %c0_22 = arith.constant 0 : index
    %38 = vector.load %arg8[%c0_21, %c0_22] : memref<384x128xf32, #tpu.memory_space<vmem>>, vector<64x128xf32>
    tpu.vector_store %arg8[%c0_21, %c0_22], %37 {strides = array<i32>} : memref<384x128xf32, #tpu.memory_space<vmem>>, vector<64x128xf32>,
    %39 = vector.extract_strided_slice %24 {offsets = [64, 0], sizes = [64, 32], strides = [1, 1]} : vector<384x32xf32> to vector<64x32xf32>
    %40 = vector.extract_strided_slice %25 {offsets = [64, 0], sizes = [64, 32], strides = [1, 1]} : vector<384x32xf32> to vector<64x32xf32>
    %cst_23 = arith.constant dense<0.000000e+00> : vector<32x32xf32>
    %41 = tpu.matmul %39, %40, %cst_23 {dimension_numbers = #tpu.dot_dimension_numbers<[0], [0], [1], [1], [0, 1, 1, 1], [], []>} : vector<64x32xf32>, vector<64x32xf32>, vector<32x32xf32> -> vector<32x32xf32>
    %42 = vector.extract_strided_slice %23 {offsets = [64, 0], sizes = [64, 32], strides = [1, 1]} : vector<384x32xf32> to vector<64x32xf32>
    %43 = arith.mulf %41, %26 : vector<32x32xf32>
    %cst_24 = arith.constant dense<0.000000e+00> : vector<64x32xf32>
    %44 = tpu.matmul %42, %43, %cst_24 {dimension_numbers = #tpu.dot_dimension_numbers<[1], [0], [0], [1], [0, 0, 1, 1], [], []>} : vector<64x32xf32>, vector<32x32xf32>, vector<64x32xf32> -> vector<64x32xf32>
    %cst_25 = arith.constant dense<0.000000e+00> : vector<64x128xf32>
    %45 = tpu.matmul %44, %27, %cst_25 {dimension_numbers = #tpu.dot_dimension_numbers<[1], [0], [0], [1], [0, 0, 1, 1], [], []>} : vector<64x32xf32>, vector<32x128xf32>, vector<64x128xf32> -> vector<64x128xf32>
    %46 = vector.broadcast %28 : vector<1x128xf32> to vector<64x128xf32>
    %47 = arith.addf %45, %46 : vector<64x128xf32>
    %c64 = arith.constant 64 : index
    %c0_26 = arith.constant 0 : index
    %48 = vector.load %arg8[%c64, %c0_26] : memref<384x128xf32, #tpu.memory_space<vmem>>, vector<64x128xf32>
    tpu.vector_store %arg8[%c64, %c0_26], %47 {strides = array<i32>} : memref<384x128xf32, #tpu.memory_space<vmem>>, vector<64x128xf32>,
    %49 = vector.extract_strided_slice %24 {offsets = [128, 0], sizes = [64, 32], strides = [1, 1]} : vector<384x32xf32> to vector<64x32xf32>
    %50 = vector.extract_strided_slice %25 {offsets = [128, 0], sizes = [64, 32], strides = [1, 1]} : vector<384x32xf32> to vector<64x32xf32>
    %cst_27 = arith.constant dense<0.000000e+00> : vector<32x32xf32>
    %51 = tpu.matmul %49, %50, %cst_27 {dimension_numbers = #tpu.dot_dimension_numbers<[0], [0], [1], [1], [0, 1, 1, 1], [], []>} : vector<64x32xf32>, vector<64x32xf32>, vector<32x32xf32> -> vector<32x32xf32>
    %52 = vector.extract_strided_slice %23 {offsets = [128, 0], sizes = [64, 32], strides = [1, 1]} : vector<384x32xf32> to vector<64x32xf32>
    %53 = arith.mulf %51, %26 : vector<32x32xf32>
    %cst_28 = arith.constant dense<0.000000e+00> : vector<64x32xf32>
    %54 = tpu.matmul %52, %53, %cst_28 {dimension_numbers = #tpu.dot_dimension_numbers<[1], [0], [0], [1], [0, 0, 1, 1], [], []>} : vector<64x32xf32>, vector<32x32xf32>, vector<64x32xf32> -> vector<64x32xf32>
    %cst_29 = arith.constant dense<0.000000e+00> : vector<64x128xf32>
    %55 = tpu.matmul %54, %27, %cst_29 {dimension_numbers = #tpu.dot_dimension_numbers<[1], [0], [0], [1], [0, 0, 1, 1], [], []>} : vector<64x32xf32>, vector<32x128xf32>, vector<64x128xf32> -> vector<64x128xf32>
    %56 = vector.broadcast %28 : vector<1x128xf32> to vector<64x128xf32>
    %57 = arith.addf %55, %56 : vector<64x128xf32>
    %c128 = arith.constant 128 : index
    %c0_30 = arith.constant 0 : index
    %58 = vector.load %arg8[%c128, %c0_30] : memref<384x128xf32, #tpu.memory_space<vmem>>, vector<64x128xf32>
    tpu.vector_store %arg8[%c128, %c0_30], %57 {strides = array<i32>} : memref<384x128xf32, #tpu.memory_space<vmem>>, vector<64x128xf32>,
    %59 = vector.extract_strided_slice %24 {offsets = [192, 0], sizes = [64, 32], strides = [1, 1]} : vector<384x32xf32> to vector<64x32xf32>
    %60 = vector.extract_strided_slice %25 {offsets = [192, 0], sizes = [64, 32], strides = [1, 1]} : vector<384x32xf32> to vector<64x32xf32>
    %cst_31 = arith.constant dense<0.000000e+00> : vector<32x32xf32>
    %61 = tpu.matmul %59, %60, %cst_31 {dimension_numbers = #tpu.dot_dimension_numbers<[0], [0], [1], [1], [0, 1, 1, 1], [], []>} : vector<64x32xf32>, vector<64x32xf32>, vector<32x32xf32> -> vector<32x32xf32>
    %62 = vector.extract_strided_slice %23 {offsets = [192, 0], sizes = [64, 32], strides = [1, 1]} : vector<384x32xf32> to vector<64x32xf32>
    %63 = arith.mulf %61, %26 : vector<32x32xf32>
    %cst_32 = arith.constant dense<0.000000e+00> : vector<64x32xf32>
    %64 = tpu.matmul %62, %63, %cst_32 {dimension_numbers = #tpu.dot_dimension_numbers<[1], [0], [0], [1], [0, 0, 1, 1], [], []>} : vector<64x32xf32>, vector<32x32xf32>, vector<64x32xf32> -> vector<64x32xf32>
    %cst_33 = arith.constant dense<0.000000e+00> : vector<64x128xf32>
    %65 = tpu.matmul %64, %27, %cst_33 {dimension_numbers = #tpu.dot_dimension_numbers<[1], [0], [0], [1], [0, 0, 1, 1], [], []>} : vector<64x32xf32>, vector<32x128xf32>, vector<64x128xf32> -> vector<64x128xf32>
    %66 = vector.broadcast %28 : vector<1x128xf32> to vector<64x128xf32>
    %67 = arith.addf %65, %66 : vector<64x128xf32>
    %c192 = arith.constant 192 : index
    %c0_34 = arith.constant 0 : index
    %68 = vector.load %arg8[%c192, %c0_34] : memref<384x128xf32, #tpu.memory_space<vmem>>, vector<64x128xf32>
    tpu.vector_store %arg8[%c192, %c0_34], %67 {strides = array<i32>} : memref<384x128xf32, #tpu.memory_space<vmem>>, vector<64x128xf32>,
    %69 = vector.extract_strided_slice %24 {offsets = [256, 0], sizes = [64, 32], strides = [1, 1]} : vector<384x32xf32> to vector<64x32xf32>
    %70 = vector.extract_strided_slice %25 {offsets = [256, 0], sizes = [64, 32], strides = [1, 1]} : vector<384x32xf32> to vector<64x32xf32>
    %cst_35 = arith.constant dense<0.000000e+00> : vector<32x32xf32>
    %71 = tpu.matmul %69, %70, %cst_35 {dimension_numbers = #tpu.dot_dimension_numbers<[0], [0], [1], [1], [0, 1, 1, 1], [], []>} : vector<64x32xf32>, vector<64x32xf32>, vector<32x32xf32> -> vector<32x32xf32>
    %72 = vector.extract_strided_slice %23 {offsets = [256, 0], sizes = [64, 32], strides = [1, 1]} : vector<384x32xf32> to vector<64x32xf32>
    %73 = arith.mulf %71, %26 : vector<32x32xf32>
    %cst_36 = arith.constant dense<0.000000e+00> : vector<64x32xf32>
    %74 = tpu.matmul %72, %73, %cst_36 {dimension_numbers = #tpu.dot_dimension_numbers<[1], [0], [0], [1], [0, 0, 1, 1], [], []>} : vector<64x32xf32>, vector<32x32xf32>, vector<64x32xf32> -> vector<64x32xf32>
    %cst_37 = arith.constant dense<0.000000e+00> : vector<64x128xf32>
    %75 = tpu.matmul %74, %27, %cst_37 {dimension_numbers = #tpu.dot_dimension_numbers<[1], [0], [0], [1], [0, 0, 1, 1], [], []>} : vector<64x32xf32>, vector<32x128xf32>, vector<64x128xf32> -> vector<64x128xf32>
    %76 = vector.broadcast %28 : vector<1x128xf32> to vector<64x128xf32>
    %77 = arith.addf %75, %76 : vector<64x128xf32>
    %c256 = arith.constant 256 : index
    %c0_38 = arith.constant 0 : index
    %78 = vector.load %arg8[%c256, %c0_38] : memref<384x128xf32, #tpu.memory_space<vmem>>, vector<64x128xf32>
    tpu.vector_store %arg8[%c256, %c0_38], %77 {strides = array<i32>} : memref<384x128xf32, #tpu.memory_space<vmem>>, vector<64x128xf32>,
    %79 = vector.extract_strided_slice %24 {offsets = [320, 0], sizes = [64, 32], strides = [1, 1]} : vector<384x32xf32> to vector<64x32xf32>
    %80 = vector.extract_strided_slice %25 {offsets = [320, 0], sizes = [64, 32], strides = [1, 1]} : vector<384x32xf32> to vector<64x32xf32>
    %cst_39 = arith.constant dense<0.000000e+00> : vector<32x32xf32>
    %81 = tpu.matmul %79, %80, %cst_39 {dimension_numbers = #tpu.dot_dimension_numbers<[0], [0], [1], [1], [0, 1, 1, 1], [], []>} : vector<64x32xf32>, vector<64x32xf32>, vector<32x32xf32> -> vector<32x32xf32>
    %82 = vector.extract_strided_slice %23 {offsets = [320, 0], sizes = [64, 32], strides = [1, 1]} : vector<384x32xf32> to vector<64x32xf32>
    %83 = arith.mulf %81, %26 : vector<32x32xf32>
    %cst_40 = arith.constant dense<0.000000e+00> : vector<64x32xf32>
    %84 = tpu.matmul %82, %83, %cst_40 {dimension_numbers = #tpu.dot_dimension_numbers<[1], [0], [0], [1], [0, 0, 1, 1], [], []>} : vector<64x32xf32>, vector<32x32xf32>, vector<64x32xf32> -> vector<64x32xf32>
    %cst_41 = arith.constant dense<0.000000e+00> : vector<64x128xf32>
    %85 = tpu.matmul %84, %27, %cst_41 {dimension_numbers = #tpu.dot_dimension_numbers<[1], [0], [0], [1], [0, 0, 1, 1], [], []>} : vector<64x32xf32>, vector<32x128xf32>, vector<64x128xf32> -> vector<64x128xf32>
    %86 = vector.broadcast %28 : vector<1x128xf32> to vector<64x128xf32>
    %87 = arith.addf %85, %86 : vector<64x128xf32>
    %c320 = arith.constant 320 : index
    %c0_42 = arith.constant 0 : index
    %88 = vector.load %arg8[%c320, %c0_42] : memref<384x128xf32, #tpu.memory_space<vmem>>, vector<64x128xf32>
    tpu.vector_store %arg8[%c320, %c0_42], %87 {strides = array<i32>} : memref<384x128xf32, #tpu.memory_space<vmem>>, vector<64x128xf32>,
    return
  }
  func.func @transform_0(%arg0: i32) -> (i32, i32) {
    %c0_i32 = arith.constant 0 : i32
    %c0_i32_0 = arith.constant 0 : i32
    %c0_i32_1 = arith.constant 0 : i32
    return %c0_i32, %c0_i32_0 : i32, i32
  }
  func.func @transform_1(%arg0: i32) -> (i32, i32) {
    %c0_i32 = arith.constant 0 : i32
    %c0_i32_0 = arith.constant 0 : i32
    %c0_i32_1 = arith.constant 0 : i32
    return %c0_i32, %c0_i32_0 : i32, i32
  }
  func.func @transform_2(%arg0: i32) -> (i32, i32) {
    %c0_i32 = arith.constant 0 : i32
    %c0_i32_0 = arith.constant 0 : i32
    %c0_i32_1 = arith.constant 0 : i32
    return %c0_i32, %c0_i32_0 : i32, i32
  }
  func.func @transform_3(%arg0: i32) -> (i32, i32) {
    %c0_i32 = arith.constant 0 : i32
    %c0_i32_0 = arith.constant 0 : i32
    %c0_i32_1 = arith.constant 0 : i32
    return %c0_i32, %c0_i32_0 : i32, i32
  }
  func.func @transform_4(%arg0: i32) -> (i32, i32) {
    %c0_i32 = arith.constant 0 : i32
    %c0_i32_0 = arith.constant 0 : i32
    %c0_i32_1 = arith.constant 0 : i32
    return %c0_i32, %c0_i32_0 : i32, i32
  }
  func.func @transform_5(%arg0: i32) -> (i32, i32) {
    %c0_i32 = arith.constant 0 : i32
    %c0_i32_0 = arith.constant 0 : i32
    %c0_i32_1 = arith.constant 0 : i32
    return %c0_i32, %c0_i32_0 : i32, i32
  }
  func.func @transform_6(%arg0: i32) -> (i32, i32) {
    %c0_i32 = arith.constant 0 : i32
    %c0_i32_0 = arith.constant 0 : i32
    %c0_i32_1 = arith.constant 0 : i32
    return %c0_i32, %c0_i32_0 : i32, i32
  }
  func.func @transform_7(%arg0: i32) -> (i32, i32) {
    %c0_i32 = arith.constant 0 : i32
    %c0_i32_0 = arith.constant 0 : i32
    %c0_i32_1 = arith.constant 0 : i32
    return %c0_i32, %c0_i32_0 : i32, i32
  }
}

</mosaic_0001>

<bundles_post_ra>
// kernel: _lambda_.1
= control target key start
LH: loop header
LB: loop body
LE: loop exit
PB: predicated region body
PF: predicated region fallthrough
CT: control target
= control target key end

     0   :  { %s6293_s0 = inlined_call_operand.vmem [shape: f32[384,32], index: 0, kind: input, shape index: {}]   ;;  %s6294_s1 = inlined_call_operand.vmem [shape: f32[32,96], index: 1, kind: input, shape index: {}]   ;;  %s6295_s2 = inlined_call_operand.vmem [shape: f32[96,96], index: 2, kind: input, shape index: {}]   ;;  %s6296_s3 = inlined_call_operand.vmem [shape: f32[3,96], index: 3, kind: input, shape index: {}]   ;;  %s6297_s4 = inlined_call_operand.vmem [shape: f32[32,32], index: 4, kind: input, shape index: {}]   ;;  %s6298_s5 = inlined_call_operand.vmem [shape: f32[32,128], index: 5, kind: input, shape index: {}]   ;;  %s6299_s6 = inlined_call_operand.vmem [shape: f32[1,128], index: 6, kind: input, shape index: {}]   ;;  %s6300_s7 = inlined_call_operand.hbm [shape: f32[384,128], index: 7, kind: output, shape index: {}]  }
   0x1   :  { %v78_v0 = vld [vmem:[%s6294_s1 + $0x18] sm:$0xff]  ;;  %v77_v1 = vld [vmem:[%s6294_s1 + $0x10] sm:$0xff]  ;;  %v76_v2 = vld [vmem:[%s6294_s1 + $0x8] sm:$0xff] }
   0x2   :  { %236 = vmatpush.msra.mxu0 %v78_v0  ;;  %v75_v3 = vld [vmem:[%s6294_s1] sm:$0xff] }
   0x4   :  { %237 = vmatpush.msra.mxu0 %v77_v1 }
   0x5   :  { %12 = vsyncpa [#allocation3], 0  ;;  %v27_v4 = vld [vmem:[%s6293_s0] sm:$0xff]  ;;  %vm79_vm0 = vcmask 261120   ;;  %v28_v5 = vld [vmem:[%s6293_s0 + $0x8] sm:$0xff]  ;;  %vm400_vm1 = vcmask 785408  }
   0x6   :  { %238 = vmatpush.msra.mxu0 %v76_v2  ;;  %v29_v6 = vld [vmem:[%s6293_s0 + $0x10] sm:$0xff]  ;;  %v30_v7 = vld [vmem:[%s6293_s0 + $0x18] sm:$0xff]  ;;  %v31_v8 = vld [vmem:[%s6293_s0 + $0x20] sm:$0xff]  ;;  %s4078_s14 = smov 96   ;;  %s4079_s25 = smov 64  }
   0x7   :  { %v32_v9 = vld [vmem:[%s6293_s0 + $0x28] sm:$0xff]  ;;  %v33_v10 = vld [vmem:[%s6293_s0 + $0x30] sm:$0xff]  ;;  %v34_v11 = vld [vmem:[%s6293_s0 + $0x38] sm:$0xff]  ;;  %s3523_s13 = sshll.u32 %s6300_s7, 4  ;;  %s4082_s1 = smov 8   ;;  %s3524_s13 = int_to_ptr.hbm [resolvable:$true] %s3523_s13 }
   0x8   :  { %239 = vmatpush.msra.mxu0 %v75_v3  ;;  %v35_v12 = vld [vmem:[%s6293_s0 + $0x40] sm:$0xff]  ;;  %v396_v13 = vld [vmem:[%s6295_s2 + $0x58] sm:$0xff]  ;;  %v36_v14 = vld [vmem:[%s6293_s0 + $0x48] sm:$0xff] }
   0x9   :  { %3535 = vmatmul.msk.f32.vlgmr.msra.gmra.mxu0 %vm79_vm0, %v27_v4  ;;  %549 = vmatpush.msra.mxu1 %v396_v13  ;;  %v395_v15 = vld [vmem:[%s6295_s2 + $0x50] sm:$0xff]  ;;  %v394_v16 = vld [vmem:[%s6295_s2 + $0x48] sm:$0xff]  ;;  %v393_v17 = vld [vmem:[%s6295_s2 + $0x40] sm:$0xff] }
   0xa   :  { %902 = vmatpush.msra.mxu2 %v396_v13  ;;  %v392_v18 = vld [vmem:[%s6295_s2 + $0x38] sm:$0xff]  ;;  %v37_v19 = vld [vmem:[%s6293_s0 + $0x50] sm:$0xff]  ;;  %v390_v21 = vld [vmem:[%s6295_s2 + $0x28] sm:$0xff] }
   0xb   :  { %550 = vmatpush.msra.mxu1 %v395_v15  ;;  %v391_v20 = vld [vmem:[%s6295_s2 + $0x30] sm:$0xff]  ;;  %v389_v22 = vld [vmem:[%s6295_s2 + $0x20] sm:$0xff]  ;;  %v388_v23 = vld [vmem:[%s6295_s2 + $0x18] sm:$0xff] }
   0xc   :  { %903 = vmatpush.msra.mxu2 %v395_v15  ;;  %v38_v24 = vld [vmem:[%s6293_s0 + $0x58] sm:$0xff]  ;;  %v387_v25 = vld [vmem:[%s6295_s2 + $0x10] sm:$0xff]  ;;  %v386_v26 = vld [vmem:[%s6295_s2 + $0x8] sm:$0xff] }
   0xd   :  { %551 = vmatpush.msra.mxu1 %v394_v16  ;;  %v385_v27 = vld [vmem:[%s6295_s2] sm:$0xff]  ;;  %v40_v29 = vld [vmem:[%s6293_s0 + $0x68] sm:$0xff]  ;;  %v41_v30 = vld [vmem:[%s6293_s0 + $0x70] sm:$0xff]  ;;  %s4081_s2 = smov 128  }
   0xe   :  { %904 = vmatpush.msra.mxu2 %v394_v16  ;;  %v39_v28 = vld [vmem:[%s6293_s0 + $0x60] sm:$0xff]  ;;  %v42_v31 = vld [vmem:[%s6293_s0 + $0x78] sm:$0xff]  ;;  %v44_v36 = vld [vmem:[%s6293_s0 + $0x88] sm:$0xff] }
   0xf   :  { %552 = vmatpush.msra.mxu1 %v393_v17  ;;  %v43_v33 = vld [vmem:[%s6293_s0 + $0x80] sm:$0xff]  ;;  %v45_v39 = vld [vmem:[%s6293_s0 + $0x90] sm:$0xff]  ;;  %v46_v42 = vld [vmem:[%s6293_s0 + $0x98] sm:$0xff] }
  0x10   :  { %905 = vmatpush.msra.mxu2 %v393_v17  ;;  %v47_v45 = vld [vmem:[%s6293_s0 + $0xa0] sm:$0xff]  ;;  %v48_v48 = vld [vmem:[%s6293_s0 + $0xa8] sm:$0xff]  ;;  %v49_v51 = vld [vmem:[%s6293_s0 + $0xb0] sm:$0xff] }
  0x11   :  { %3536 = vmatmul.msk.f32.gmra.mxu0 %vm79_vm0, %v28_v5  ;;  %553 = vmatpush.msra.mxu1 %v392_v18  ;;  %v50_v54 = vld [vmem:[%s6293_s0 + $0xb8] sm:$0xff] }
  0x12   :  { %906 = vmatpush.msra.mxu2 %v392_v18 }
  0x13   :  { %554 = vmatpush.msra.mxu1 %v391_v20 }
  0x14   :  { %907 = vmatpush.msra.mxu2 %v391_v20 }
  0x15   :  { %555 = vmatpush.msra.mxu1 %v390_v21 }
  0x16   :  { %908 = vmatpush.msra.mxu2 %v390_v21 }
  0x17   :  { %556 = vmatpush.msra.mxu1 %v389_v22 }
  0x18   :  { %909 = vmatpush.msra.mxu2 %v389_v22 }
  0x19   :  { %3537 = vmatmul.msk.f32.gmra.mxu0 %vm79_vm0, %v29_v6  ;;  %557 = vmatpush.msra.mxu1 %v388_v23 }
  0x1a   :  { %910 = vmatpush.msra.mxu2 %v388_v23 }
  0x1b   :  { %558 = vmatpush.msra.mxu1 %v387_v25 }
  0x1c   :  { %911 = vmatpush.msra.mxu2 %v387_v25 }
  0x1d   :  { %559 = vmatpush.msra.mxu1 %v386_v26 }
  0x1e   :  { %912 = vmatpush.msra.mxu2 %v386_v26 }
  0x1f   :  { %560 = vmatpush.msra.mxu1 %v385_v27 }
  0x20   :  { %913 = vmatpush.msra.mxu2 %v385_v27 }
  0x21   :  { %3538 = vmatmul.msk.f32.gmra.mxu0 %vm79_vm0, %v30_v7 }
  0x29   :  { %3539 = vmatmul.msk.f32.gmra.mxu0 %vm79_vm0, %v31_v8 }
  0x31   :  { %3540 = vmatmul.msk.f32.gmra.mxu0 %vm79_vm0, %v32_v9 }
  0x39   :  { %3541 = vmatmul.msk.f32.gmra.mxu0 %vm79_vm0, %v33_v10 }
  0x41   :  { %3542 = vmatmul.msk.f32.gmra.mxu0 %vm79_vm0, %v34_v11 }
  0x49   :  { %3543 = vmatmul.msk.f32.gmra.mxu0 %vm79_vm0, %v35_v12  ;;  %v4389_v12 = vld [vmem:[%s6296_s3] ss:$0 sm:$0xff] }
  0x51   :  { %3544 = vmatmul.msk.f32.gmra.mxu0 %vm79_vm0, %v36_v14 }
  0x59   :  { %3545 = vmatmul.msk.f32.gmra.mxu0 %vm79_vm0, %v37_v19 }
  0x61   :  { %3546 = vmatmul.msk.f32.gmra.mxu0 %vm79_vm0, %v38_v24 }
  0x69   :  { %3547 = vmatmul.msk.f32.gmra.mxu0 %vm79_vm0, %v39_v28 }
  0x71   :  { %3548 = vmatmul.msk.f32.gmra.mxu0 %vm79_vm0, %v40_v29 }
  0x79   :  { %3549 = vmatmul.msk.f32.gmra.mxu0 %vm79_vm0, %v41_v30 }
  0x81   :  { %3550 = vmatmul.msk.f32.gmra.mxu0 %vm79_vm0, %v42_v31 }
  0x86   :  { %v4235_v32 = vpop.f32.mrf.mxu0 }
  0x87   :  { %3583 = vmatmul.msk.f32.vlgmr.msra.gmra.mxu1 %vm400_vm1, %v4235_v32  ;;  %v706_v34 = vmul.f32 %v4235_v32, %v4235_v32 }
  0x89   :  { %3631 = vmatmul.msk.f32.vlgmr.msra.gmra.mxu2 %vm400_vm1, %v706_v34  ;;  %3551 = vmatmul.msk.f32.gmra.mxu0 %vm79_vm0, %v43_v33 }
  0x8e   :  { %v4246_v35 = vpop.f32.mrf.mxu0 }
  0x8f   :  { %3584 = vmatmul.msk.f32.gmra.mxu1 %vm400_vm1, %v4246_v35  ;;  %v707_v37 = vmul.f32 %v4246_v35, %v4246_v35 }
  0x91   :  { %3632 = vmatmul.msk.f32.gmra.mxu2 %vm400_vm1, %v707_v37  ;;  %3552 = vmatmul.msk.f32.gmra.mxu0 %vm79_vm0, %v44_v36 }
  0x96   :  { %v4257_v38 = vpop.f32.mrf.mxu0 }
  0x97   :  { %3585 = vmatmul.msk.f32.gmra.mxu1 %vm400_vm1, %v4257_v38  ;;  %v708_v40 = vmul.f32 %v4257_v38, %v4257_v38 }
  0x99   :  { %3633 = vmatmul.msk.f32.gmra.mxu2 %vm400_vm1, %v708_v40  ;;  %3553 = vmatmul.msk.f32.gmra.mxu0 %vm79_vm0, %v45_v39 }
  0x9e   :  { %v4268_v41 = vpop.f32.mrf.mxu0 }
  0x9f   :  { %3586 = vmatmul.msk.f32.gmra.mxu1 %vm400_vm1, %v4268_v41  ;;  %v709_v43 = vmul.f32 %v4268_v41, %v4268_v41 }
  0xa1   :  { %3634 = vmatmul.msk.f32.gmra.mxu2 %vm400_vm1, %v709_v43  ;;  %3554 = vmatmul.msk.f32.gmra.mxu0 %vm79_vm0, %v46_v42 }
  0xa6   :  { %v4279_v44 = vpop.f32.mrf.mxu0 }
  0xa7   :  { %3587 = vmatmul.msk.f32.gmra.mxu1 %vm400_vm1, %v4279_v44  ;;  %v710_v46 = vmul.f32 %v4279_v44, %v4279_v44 }
  0xa9   :  { %3635 = vmatmul.msk.f32.gmra.mxu2 %vm400_vm1, %v710_v46  ;;  %3555 = vmatmul.msk.f32.gmra.mxu0 %vm79_vm0, %v47_v45 }
  0xae   :  { %v4290_v47 = vpop.f32.mrf.mxu0 }
  0xaf   :  { %3588 = vmatmul.msk.f32.gmra.mxu1 %vm400_vm1, %v4290_v47  ;;  %v711_v49 = vmul.f32 %v4290_v47, %v4290_v47 }
  0xb1   :  { %3636 = vmatmul.msk.f32.gmra.mxu2 %vm400_vm1, %v711_v49  ;;  %3556 = vmatmul.msk.f32.gmra.mxu0 %vm79_vm0, %v48_v48 }
  0xb6   :  { %v4301_v50 = vpop.f32.mrf.mxu0 }
  0xb7   :  { %3589 = vmatmul.msk.f32.gmra.mxu1 %vm400_vm1, %v4301_v50  ;;  %v712_v52 = vmul.f32 %v4301_v50, %v4301_v50 }
  0xb9   :  { %3637 = vmatmul.msk.f32.gmra.mxu2 %vm400_vm1, %v712_v52  ;;  %3557 = vmatmul.msk.f32.gmra.mxu0 %vm79_vm0, %v49_v51 }
  0xbe   :  { %v4312_v53 = vpop.f32.mrf.mxu0 }
  0xbf   :  { %3590 = vmatmul.msk.f32.gmra.mxu1 %vm400_vm1, %v4312_v53  ;;  %v713_v55 = vmul.f32 %v4312_v53, %v4312_v53 }
  0xc1   :  { %3638 = vmatmul.msk.f32.gmra.mxu2 %vm400_vm1, %v713_v55  ;;  %3558 = vmatmul.msk.f32.gmra.mxu0 %vm79_vm0, %v50_v54  ;;  %v4431_v54 = vld [vmem:[%s6296_s3 + $0x1] ss:$0 sm:$0xff] }
  0xc6   :  { %v4323_v56 = vpop.f32.mrf.mxu0 }
  0xc7   :  { %v714_v57 = vmul.f32 %v4323_v56, %v4323_v56  ;;  %3591 = vmatmul.msk.f32.gmra.mxu1 %vm400_vm1, %v4323_v56 }
  0xc9   :  { %3639 = vmatmul.msk.f32.gmra.mxu2 %vm400_vm1, %v714_v57 }
  0xce   :  { %v4330_v58 = vpop.f32.mrf.mxu0 }
  0xcf   :  { %v715_v59 = vmul.f32 %v4330_v58, %v4330_v58  ;;  %3592 = vmatmul.msk.f32.gmra.mxu1 %vm400_vm1, %v4330_v58 }
  0xd1   :  { %3640 = vmatmul.msk.f32.gmra.mxu2 %vm400_vm1, %v715_v59 }
  0xd6   :  { %v4337_v60 = vpop.f32.mrf.mxu0 }
  0xd7   :  { %v716_v61 = vmul.f32 %v4337_v60, %v4337_v60  ;;  %3593 = vmatmul.msk.f32.gmra.mxu1 %vm400_vm1, %v4337_v60 }
  0xd9   :  { %3641 = vmatmul.msk.f32.gmra.mxu2 %vm400_vm1, %v716_v61 }
  0xde   :  { %v4344_v62 = vpop.f32.mrf.mxu0 }
  0xdf   :  { %v717_v63 = vmul.f32 %v4344_v62, %v4344_v62  ;;  %3594 = vmatmul.msk.f32.gmra.mxu1 %vm400_vm1, %v4344_v62 }
  0xe1   :  { %3642 = vmatmul.msk.f32.gmra.mxu2 %vm400_vm1, %v717_v63 }
  0xe6   :  { %v4351_v0 = vpop.f32.mrf.mxu0 }
  0xe7   :  { %v718_v1 = vmul.f32 %v4351_v0, %v4351_v0  ;;  %3595 = vmatmul.msk.f32.gmra.mxu1 %vm400_vm1, %v4351_v0 }
  0xe9   :  { %3643 = vmatmul.msk.f32.gmra.mxu2 %vm400_vm1, %v718_v1 }
  0xee   :  { %v4358_v2 = vpop.f32.mrf.mxu0 }
  0xef   :  { %v719_v3 = vmul.f32 %v4358_v2, %v4358_v2  ;;  %3596 = vmatmul.msk.f32.gmra.mxu1 %vm400_vm1, %v4358_v2 }
  0xf1   :  { %3644 = vmatmul.msk.f32.gmra.mxu2 %vm400_vm1, %v719_v3 }
  0xf6   :  { %v4365_v4 = vpop.f32.mrf.mxu0 }
  0xf7   :  { %v720_v5 = vmul.f32 %v4365_v4, %v4365_v4  ;;  %3597 = vmatmul.msk.f32.gmra.mxu1 %vm400_vm1, %v4365_v4 }
  0xf9   :  { %3645 = vmatmul.msk.f32.gmra.mxu2 %vm400_vm1, %v720_v5 }
  0xfe   :  { %v4372_v6 = vpop.f32.mrf.mxu0 }
  0xff   :  { %v721_v7 = vmul.f32 %v4372_v6, %v4372_v6  ;;  %3598 = vmatmul.msk.f32.gmra.mxu1 %vm400_vm1, %v4372_v6 }
 0x101   :  { %3646 = vmatmul.msk.f32.gmra.mxu2 %vm400_vm1, %v721_v7 }
 0x104   :  { %v562_v8 = vpop.f32.mrf.mxu1 }
 0x105   :  { %v1059_v11 = vmul.f32 %v562_v8, %v562_v8  ;;  %v1204_v51 = vsub.f32 %v4235_v32, %v562_v8  ;;  %v4438_v32 = vld [vmem:[%s6296_s3 + $0x2] ss:$0 sm:$0xff] }
 0x106   :  { %v4379_v9 = vpop.f32.mrf.mxu0 }
 0x107   :  { %v722_v10 = vmul.f32 %v4379_v9, %v4379_v9  ;;  %3599 = vmatmul.msk.f32.gmra.mxu1 %vm400_vm1, %v4379_v9 }
 0x109   :  { %3647 = vmatmul.msk.f32.gmra.mxu2 %vm400_vm1, %v722_v10 }
 0x10c   :  { %v4391_v13 = vpop.f32.mrf.mxu1  ;;  %v915_v14 = vpop.f32.mrf.mxu2 }
 0x10d   :  { %v1107_v15 = vsub.f32 %v915_v14, %v1059_v11  ;;  %v1060_v20 = vmul.f32 %v4391_v13, %v4391_v13 }
 0x10e   :  { %v4393_v16 = vpop.f32.mrf.mxu0 }
 0x10f   :  { %v1156_v17 = vadd.f32 %v4389_v12, %v1107_v15  ;;  %v723_v18 = vmul.f32 %v4393_v16, %v4393_v16  ;;  %3600 = vmatmul.msk.f32.gmra.mxu1 %vm400_vm1, %v4393_v16 }
 0x111   :  { %v1252_v19 = vadd.f32 1e-05, %v1156_v17  ;;  %3648 = vmatmul.msk.f32.gmra.mxu2 %vm400_vm1, %v723_v18 }
 0x113   :  { %3941 = vrsqrt.f32 %v1252_v19  ;;  %vm1306_vm3 = vweird.f32 %v1252_v19 }
 0x114   :  { %v4403_v21 = vpop.f32.mrf.mxu1  ;;  %v918_v22 = vpop.f32.mrf.mxu2 }
 0x115   :  { %v1108_v23 = vsub.f32 %v918_v22, %v1060_v20  ;;  %v1061_v30 = vmul.f32 %v4403_v21, %v4403_v21  ;;  %v1205_v20 = vsub.f32 %v4246_v35, %v4391_v13 }
 0x116   :  { %v4405_v24 = vpop.f32.mrf.mxu0 }
 0x117   :  { %v1157_v25 = vadd.f32 %v4389_v12, %v1108_v23  ;;  %v724_v26 = vmul.f32 %v4405_v24, %v4405_v24  ;;  %3601 = vmatmul.msk.f32.gmra.mxu1 %vm400_vm1, %v4405_v24 }
 0x119   :  { %v3942_v27 = vpop.eup %3941  ;;  %v1253_v28 = vadd.f32 1e-05, %v1157_v25  ;;  %3649 = vmatmul.msk.f32.gmra.mxu2 %vm400_vm1, %v724_v26 }
 0x11a   :  { %v1301_v29 = vmul.f32 %v3942_v27, %v1252_v19  ;;  %vm1307_vm2 = vweird.f32 %v3942_v27 }
 0x11b   :  { %3943 = vrsqrt.f32 %v1253_v28  ;;  %vm1308_vm4 = vmor %vm1306_vm3, %vm1307_vm2  ;;  %vm1316_vm6 = vweird.f32 %v1253_v28 }
 0x11c   :  { %v1302_v31 = vmul.f32 %v3942_v27, %v1301_v29  ;;  %v4415_v33 = vpop.f32.mrf.mxu1  ;;  %v921_v34 = vpop.f32.mrf.mxu2 }
 0x11d   :  { %v1109_v36 = vsub.f32 %v921_v34, %v1061_v30  ;;  %v1062_v52 = vmul.f32 %v4415_v33, %v4415_v33 }
 0x11e   :  { %v1303_v37 = vmul.f32 0.5, %v1302_v31  ;;  %v4417_v39 = vpop.f32.mrf.mxu0 }
 0x11f   :  { %v1158_v40 = vadd.f32 %v4389_v12, %v1109_v36  ;;  %v725_v42 = vmul.f32 %v4417_v39, %v4417_v39  ;;  %3602 = vmatmul.msk.f32.gmra.mxu1 %vm400_vm1, %v4417_v39 }
 0x120   :  { %v1304_v43 = vsub.f32 1.5, %v1303_v37  ;;  %v51_v37 = vld [vmem:[%s6293_s0 + $0xc0] sm:$0xff] }
 0x121   :  { %v3944_v45 = vpop.eup %3943  ;;  %v1254_v46 = vadd.f32 1e-05, %v1158_v40  ;;  %3650 = vmatmul.msk.f32.gmra.mxu2 %vm400_vm1, %v725_v42  ;;  %3559 = vmatmul.msk.f32.gmra.mxu0 %vm79_vm0, %v51_v37  ;;  %v53_v37 = vld [vmem:[%s6293_s0 + $0xd0] sm:$0xff] }
 0x122   :  { %v1311_v48 = vmul.f32 %v3944_v45, %v1253_v28  ;;  %v1305_v49 = vmul.f32 %v3942_v27, %v1304_v43  ;;  %vm1317_vm5 = vweird.f32 %v3944_v45 }
 0x123   :  { %3945 = vrsqrt.f32 %v1254_v46  ;;  %vm1318_vm7 = vmor %vm1316_vm6, %vm1317_vm5  ;;  %vm1326_vm9 = vweird.f32 %v1254_v46 }
 0x124   :  { %v1312_v55 = vmul.f32 %v3944_v45, %v1311_v48  ;;  %v4433_v57 = vpop.f32.mrf.mxu1  ;;  %v924_v59 = vpop.f32.mrf.mxu2  ;;  %v1309_v61 = vsel %vm1308_vm4, %v3942_v27, %v1305_v49  ;;  %v1206_v49 = vsub.f32 %v4257_v38, %v4403_v21 }
 0x125   :  { %v1110_v63 = vsub.f32 %v924_v59, %v1062_v52  ;;  %v1780_v1 = vmul.f32 %v1309_v61, %v1204_v51  ;;  %v1063_v22 = vmul.f32 %v4433_v57, %v4433_v57 }
 0x126   :  { %v1313_v3 = vmul.f32 0.5, %v1312_v55  ;;  %v4440_v5 = vpop.f32.mrf.mxu0 }
 0x127   :  { %v1159_v7 = vadd.f32 %v4389_v12, %v1110_v63  ;;  %v1829_v8 = vmul.f32 %v4431_v54, %v1780_v1  ;;  %v726_v10 = vmul.f32 %v4440_v5, %v4440_v5  ;;  %3603 = vmatmul.msk.f32.gmra.mxu1 %vm400_vm1, %v4440_v5 }
 0x128   :  { %v1314_v11 = vsub.f32 1.5, %v1313_v3 }
 0x129   :  { %v3946_v14 = vpop.eup %3945  ;;  %v4448_v15 = vadd.f32 1e-05, %v1159_v7  ;;  %v4451_v17 = vadd.f32 %v4438_v32, %v1829_v8  ;;  %3651 = vmatmul.msk.f32.gmra.mxu2 %vm400_vm1, %v726_v10  ;;  %v52_v10 = vld [vmem:[%s6293_s0 + $0xc8] sm:$0xff] }
 0x12a   :  { %v1321_v18 = vmul.f32 %v3946_v14, %v1254_v46  ;;  %v1315_v19 = vmul.f32 %v3944_v45, %v1314_v11  ;;  %vm1327_vm8 = vweird.f32 %v3946_v14  ;;  %3560 = vmatmul.msk.f32.gmra.mxu0 %vm79_vm0, %v52_v10 }
 0x12b   :  { %3947 = vrsqrt.f32 %v4448_v15  ;;  %1943 = vrot.lane.b32.xlu0 %v4451_v17, %s4078_s14  ;;  %vm1328_vm10 = vmor %vm1326_vm9, %vm1327_vm8  ;;  %vm1336_vm12 = vweird.f32 %v4448_v15 }
 0x12c   :  { %v1322_v23 = vmul.f32 %v3946_v14, %v1321_v18  ;;  %v4461_v25 = vpop.f32.mrf.mxu1  ;;  %v927_v26 = vpop.f32.mrf.mxu2  ;;  %v1319_v27 = vsel %vm1318_vm7, %v3944_v45, %v1315_v19 }
 0x12d   :  { %v1111_v28 = vsub.f32 %v927_v26, %v1063_v22  ;;  %v1781_v29 = vmul.f32 %v1319_v27, %v1205_v20  ;;  %v1064_v51 = vmul.f32 %v4461_v25, %v4461_v25  ;;  %v1207_v22 = vsub.f32 %v4268_v41, %v4415_v33 }
 0x12e   :  { %v1323_v30 = vmul.f32 0.5, %v1322_v23  ;;  %v4463_v31 = vpop.f32.mrf.mxu0 }
 0x12f   :  { %v1160_v35 = vadd.f32 %v4389_v12, %v1111_v28  ;;  %v1830_v13 = vmul.f32 %v4431_v54, %v1781_v29  ;;  %v727_v34 = vmul.f32 %v4463_v31, %v4463_v31  ;;  %3604 = vmatmul.msk.f32.gmra.mxu1 %vm400_vm1, %v4463_v31 }
 0x130   :  { %v1324_v36 = vsub.f32 1.5, %v1323_v30 }
 0x131   :  { %v3948_v40 = vpop.eup %3947  ;;  %v4474_v42 = vadd.f32 1e-05, %v1160_v35  ;;  %v4477_v43 = vadd.f32 %v4438_v32, %v1830_v13  ;;  %3652 = vmatmul.msk.f32.gmra.mxu2 %vm400_vm1, %v727_v34 }
 0x132   :  { %v1331_v45 = vmul.f32 %v3948_v40, %v4448_v15  ;;  %v1325_v48 = vmul.f32 %v3946_v14, %v1324_v36  ;;  %vm1337_vm11 = vweird.f32 %v3948_v40  ;;  %3561 = vmatmul.msk.f32.gmra.mxu0 %vm79_vm0, %v53_v37 }
 0x133   :  { %3949 = vrsqrt.f32 %v4474_v42  ;;  %1945 = vrot.lane.b32.xlu0 %v4477_v43, %s4078_s14  ;;  %vm1338_vm13 = vmor %vm1336_vm12, %vm1337_vm11  ;;  %vm1346_vm15 = vweird.f32 %v4474_v42 }
 0x134   :  { %v1332_v52 = vmul.f32 %v3948_v40, %v1331_v45  ;;  %v4489_v55 = vpop.f32.mrf.mxu1  ;;  %v930_v59 = vpop.f32.mrf.mxu2  ;;  %v1329_v46 = vsel %vm1328_vm10, %v3946_v14, %v1325_v48 }
 0x135   :  { %v1112_v61 = vsub.f32 %v930_v59, %v1064_v51  ;;  %v1782_v63 = vmul.f32 %v1329_v46, %v1206_v49  ;;  %v1065_v23 = vmul.f32 %v4489_v55, %v4489_v55 }
 0x136   :  { %v1333_v1 = vmul.f32 0.5, %v1332_v52  ;;  %v4491_v3 = vpop.f32.mrf.mxu0  ;;  %v1208_v52 = vsub.f32 %v4279_v44, %v4433_v57 }
 0x137   :  { %v1161_v38 = vadd.f32 %v4389_v12, %v1112_v61  ;;  %v1831_v21 = vmul.f32 %v4431_v54, %v1782_v63  ;;  %v728_v7 = vmul.f32 %v4491_v3, %v4491_v3  ;;  %3605 = vmatmul.msk.f32.gmra.mxu1 %vm400_vm1, %v4491_v3 }
 0x138   :  { %v1334_v8 = vsub.f32 1.5, %v1333_v1 }
 0x139   :  { %v3950_v11 = vpop.eup %3949  ;;  %v1257_v14 = vadd.f32 1e-05, %v1161_v38  ;;  %v4503_v18 = vadd.f32 %v4438_v32, %v1831_v21  ;;  %3653 = vmatmul.msk.f32.gmra.mxu2 %vm400_vm1, %v728_v7 }
 0x13a   :  { %v1341_v19 = vmul.f32 %v3950_v11, %v4474_v42  ;;  %v1335_v20 = vmul.f32 %v3948_v40, %v1334_v8  ;;  %vm1347_vm14 = vweird.f32 %v3950_v11  ;;  %v54_v8 = vld [vmem:[%s6293_s0 + $0xd8] sm:$0xff] }
 0x13b   :  { %3951 = vrsqrt.f32 %v1257_v14  ;;  %1947 = vrot.lane.b32.xlu1 %v4503_v18, %s4078_s14  ;;  %vm1348_vm2 = vmor %vm1346_vm15, %vm1347_vm14  ;;  %3562 = vmatmul.msk.f32.gmra.mxu0 %vm79_vm0, %v54_v8  ;;  %vm1356_vm4 = vweird.f32 %v1257_v14 }
 0x13c   :  { %v1342_v26 = vmul.f32 %v3950_v11, %v1341_v19  ;;  %v4515_v27 = vpop.f32.mrf.mxu1  ;;  %v933_v28 = vpop.f32.mrf.mxu2  ;;  %v1339_v29 = vsel %vm1338_vm13, %v3948_v40, %v1335_v20 }
 0x13d   :  { %v1113_v15 = vsub.f32 %v933_v28, %v1065_v23  ;;  %v1783_v30 = vmul.f32 %v1339_v29, %v1207_v22  ;;  %v1066_v59 = vmul.f32 %v4515_v27, %v4515_v27  ;;  %v1209_v23 = vsub.f32 %v4290_v47, %v4461_v25  ;;  %v55_v47 = vld [vmem:[%s6293_s0 + $0xe0] sm:$0xff] }
 0x13e   :  { %v1343_v35 = vmul.f32 0.5, %v1342_v26  ;;  %v4517_v13 = vpop.f32.mrf.mxu0 }
 0x13f   :  { %v1162_v41 = vadd.f32 %v4389_v12, %v1113_v15  ;;  %v1832_v33 = vmul.f32 %v4431_v54, %v1783_v30  ;;  %v729_v34 = vmul.f32 %v4517_v13, %v4517_v13  ;;  %3606 = vmatmul.msk.f32.gmra.mxu1 %vm400_vm1, %v4517_v13 }
 0x140   :  { %v1344_v36 = vsub.f32 1.5, %v1343_v35 }
 0x141   :  { %v3952_v40 = vpop.eup %3951  ;;  %v1258_v45 = vadd.f32 1e-05, %v1162_v41  ;;  %v4529_v48 = vadd.f32 %v4438_v32, %v1832_v33  ;;  %3654 = vmatmul.msk.f32.gmra.mxu2 %vm400_vm1, %v729_v34 }
 0x142   :  { %v1351_v49 = vmul.f32 %v3952_v40, %v1257_v14  ;;  %v1345_v51 = vmul.f32 %v3950_v11, %v1344_v36  ;;  %vm1357_vm3 = vweird.f32 %v3952_v40 }
 0x143   :  { %3953 = vrsqrt.f32 %v1258_v45  ;;  %1949 = vrot.lane.b32.xlu1 %v4529_v48, %s4078_s14  ;;  %vm1358_vm5 = vmor %vm1356_vm4, %vm1357_vm3  ;;  %3563 = vmatmul.msk.f32.gmra.mxu0 %vm79_vm0, %v55_v47  ;;  %vm1366_vm7 = vweird.f32 %v1258_v45 }
 0x144   :  { %v1352_v46 = vmul.f32 %v3952_v40, %v1351_v49  ;;  %v936_v61 = vpop.f32.mrf.mxu2  ;;  %v4540_v63 = vpop.f32.mrf.mxu1  ;;  %v1349_v1 = vsel %vm1348_vm2, %v3950_v11, %v1345_v51  ;;  %v1210_v51 = vsub.f32 %v4301_v50, %v4489_v55  ;;  %v56_v50 = vld [vmem:[%s6293_s0 + $0xe8] sm:$0xff] }
 0x145   :  { %v1114_v38 = vsub.f32 %v936_v61, %v1066_v59  ;;  %v1784_v42 = vmul.f32 %v1349_v1, %v1208_v52  ;;  %v1067_v14 = vmul.f32 %v4540_v63, %v4540_v63 }
 0x146   :  { %v1353_v21 = vmul.f32 0.5, %v1352_v46 }
 0x147   :  { %v1163_v7 = vadd.f32 %v4389_v12, %v1114_v38  ;;  %v1833_v44 = vmul.f32 %v4431_v54, %v1784_v42 }
 0x148   :  { %v1354_v57 = vsub.f32 1.5, %v1353_v21 }
 0x149   :  { %v3954_v10 = vpop.eup %3953  ;;  %v1259_v19 = vadd.f32 1e-05, %v1163_v7  ;;  %v4548_v20 = vadd.f32 %v4438_v32, %v1833_v44 }
 0x14a   :  { %v1361_v11 = vmul.f32 %v3954_v10, %v1258_v45  ;;  %v1355_v22 = vmul.f32 %v3952_v40, %v1354_v57  ;;  %vm1367_vm6 = vweird.f32 %v3954_v10 }
 0x14b   :  { %3955 = vrsqrt.f32 %v1259_v19  ;;  %1951 = vrot.lane.b32.xlu2 %v4548_v20, %s4078_s14  ;;  %vm1368_vm8 = vmor %vm1366_vm7, %vm1367_vm6  ;;  %3564 = vmatmul.msk.f32.gmra.mxu0 %vm79_vm0, %v56_v50  ;;  %vm1376_vm10 = vweird.f32 %v1259_v19 }
 0x14c   :  { %v1362_v26 = vmul.f32 %v3954_v10, %v1361_v11  ;;  %v939_v28 = vpop.f32.mrf.mxu2  ;;  %v4555_v29 = vpop.f32.mrf.mxu1  ;;  %v1359_v15 = vsel %vm1358_vm5, %v3952_v40, %v1355_v22  ;;  %v1211_v11 = vsub.f32 %v4312_v53, %v4515_v27 }
 0x14d   :  { %v1785_v30 = vmul.f32 %v1359_v15, %v1209_v23  ;;  %v1068_v34 = vmul.f32 %v4555_v29, %v4555_v29  ;;  %v1115_v40 = vsub.f32 %v939_v28, %v1067_v14 }
 0x14e   :  { %v1363_v35 = vmul.f32 0.5, %v1362_v26 }
 0x14f   :  { %v1834_v41 = vmul.f32 %v4431_v54, %v1785_v30  ;;  %v1164_v45 = vadd.f32 %v4389_v12, %v1115_v40 }
 0x150   :  { %v1364_v33 = vsub.f32 1.5, %v1363_v35 }
 0x151   :  { %v3956_v25 = vpop.eup %3955  ;;  %v4566_v36 = vadd.f32 %v4438_v32, %v1834_v41  ;;  %v4587_v8 = vadd.f32 1e-05, %v1164_v45  ;;  %v3832_v45 = vpack.i.bf16 %v4451_v17, %v4477_v43 }
 0x152   :  { %v1371_v37 = vmul.f32 %v3956_v25, %v1259_v19  ;;  %v1365_v49 = vmul.f32 %v3954_v10, %v1364_v33  ;;  %vm1377_vm9 = vweird.f32 %v3956_v25 }
 0x153   :  { %1953 = vrot.lane.b32.xlu2 %v4566_v36, %s4078_s14  ;;  %vm1378_vm11 = vmor %vm1376_vm10, %vm1377_vm9  ;;  %3957 = vrsqrt.f32 %v4587_v8  ;;  %v3822_v35 = vpack.i.bf16 %v4548_v20, %v4566_v36  ;;  %vm1386_vm12 = vweird.f32 %v4587_v8 }
 0x154   :  { %v1372_v52 = vmul.f32 %v3956_v25, %v1371_v37  ;;  %v942_v59 = vpop.f32.mrf.mxu2  ;;  %v4573_v46 = vpop.f32.mrf.mxu1  ;;  %v1369_v61 = vsel %vm1368_vm8, %v3954_v10, %v1365_v49  ;;  %v57_v37 = vld [vmem:[%s6293_s0 + $0xf0] sm:$0xff] }
 0x155   :  { %v1116_v1 = vsub.f32 %v942_v59, %v1068_v34  ;;  %v1786_v38 = vmul.f32 %v1369_v61, %v1210_v51  ;;  %v1069_v55 = vmul.f32 %v4573_v46, %v4573_v46  ;;  %3565 = vmatmul.msk.f32.gmra.mxu0 %vm79_vm0, %v57_v37 }
 0x156   :  { %v1373_v42 = vmul.f32 0.5, %v1372_v52 }
 0x157   :  { %v1165_v21 = vadd.f32 %v4389_v12, %v1116_v1  ;;  %v1835_v7 = vmul.f32 %v4431_v54, %v1786_v38  ;;  %v3827_v38 = vpack.i.bf16 %v4503_v18, %v4529_v48 }
 0x158   :  { %v1374_v44 = vsub.f32 1.5, %v1373_v42  ;;  %v58_v42 = vld [vmem:[%s6293_s0 + $0xf8] sm:$0xff] }
 0x159   :  { %v4584_v57 = vadd.f32 %v4438_v32, %v1835_v7  ;;  %v4591_v22 = vadd.f32 1e-05, %v1165_v21  ;;  %v4615_v47 = vpop.eup %3957 }
 0x15a   :  { %v1375_v10 = vmul.f32 %v3956_v25, %v1374_v44  ;;  %v1381_v52 = vmul.f32 %v4615_v47, %v4587_v8  ;;  %vm1387_vm13 = vweird.f32 %v4615_v47 }
 0x15b   :  { %1955 = vrot.lane.b32.xlu0 %v4584_v57, %s4078_s14  ;;  %3959 = vrsqrt.f32 %v4591_v22  ;;  %vm1396_vm14 = vweird.f32 %v4591_v22  ;;  %vm4673_vm2 = vmor %vm1386_vm12, %vm1387_vm13 }
 0x15c   :  { %v945_v23 = vpop.f32.mrf.mxu2  ;;  %v4595_v26 = vpop.f32.mrf.mxu1  ;;  %v1379_v28 = vsel %vm1378_vm11, %v3956_v25, %v1375_v10  ;;  %v1382_v7 = vmul.f32 %v4615_v47, %v1381_v52 }
 0x15d   :  { %v1117_v15 = vsub.f32 %v945_v23, %v1069_v55  ;;  %v1787_v30 = vmul.f32 %v1379_v28, %v1211_v11  ;;  %v1070_v27 = vmul.f32 %v4595_v26, %v4595_v26  ;;  %3566 = vmatmul.msk.f32.gmra.mxu0 %vm79_vm0, %v58_v42 }
 0x15e   :  { %v1383_v28 = vmul.f32 0.5, %v1382_v7 }
 0x15f   :  { %v1166_v19 = vadd.f32 %v4389_v12, %v1117_v15  ;;  %v1836_v53 = vmul.f32 %v4431_v54, %v1787_v30 }
 0x161   :  { %v4606_v14 = vadd.f32 %v4438_v32, %v1836_v53  ;;  %v4608_v41 = vadd.f32 1e-05, %v1166_v19  ;;  %v4622_v40 = vpop.eup %3959 }
 0x162   :  { %v1391_v59 = vmul.f32 %v4622_v40, %v4591_v22  ;;  %vm1397_vm15 = vweird.f32 %v4622_v40  ;;  %v60_v22 = vld [vmem:[%s6293_s0 + $0x108] sm:$0xff] }
 0x163   :  { %3823 = vrot.lane.b32.xlu0 %v3822_v35, %s4079_s25  ;;  %1957 = vrot.lane.b32.xlu1 %v4606_v14, %s4078_s14  ;;  %v3817_v33 = vpack.i.bf16 %v4584_v57, %v4606_v14  ;;  %3961 = vrsqrt.f32 %v4608_v41  ;;  %v59_v35 = vld [vmem:[%s6293_s0 + $0x100] sm:$0xff]  ;;  %vm4681_vm3 = vmor %vm1396_vm14, %vm1397_vm15  ;;  %vm1406_vm7 = vweird.f32 %v4608_v41 }
 0x164   :  { %v948_v25 = vpop.f32.mrf.mxu2  ;;  %v4617_v34 = vpop.f32.mrf.mxu1  ;;  %v1392_v44 = vmul.f32 %v4622_v40, %v1391_v59 }
 0x165   :  { %v1118_v49 = vsub.f32 %v948_v25, %v1070_v27  ;;  %3818 = vrot.lane.b32.xlu2 %v3817_v33, %s4079_s25  ;;  %v1071_v1 = vmul.f32 %v4617_v34, %v4617_v34  ;;  %v1384_v25 = vsub.f32 1.5, %v1383_v28  ;;  %3567 = vmatmul.msk.f32.gmra.mxu0 %vm79_vm0, %v59_v35  ;;  %v1215_v28 = vsub.f32 %v4344_v62, %v4595_v26 }
 0x166   :  { %v1393_v15 = vmul.f32 0.5, %v1392_v44 }
 0x167   :  { %v1167_v51 = vadd.f32 %v4389_v12, %v1118_v49 }
 0x168   :  { %v1394_v37 = vsub.f32 1.5, %v1393_v15 }
 0x169   :  { %v1263_v61 = vadd.f32 1e-05, %v1167_v51  ;;  %v4642_v21 = vpop.eup %3961 }
 0x16a   :  { %v1401_v11 = vmul.f32 %v4642_v21, %v4608_v41  ;;  %v1395_v8 = vmul.f32 %v4622_v40, %v1394_v37  ;;  %vm1407_vm8 = vweird.f32 %v4642_v21  ;;  %v1214_v41 = vsub.f32 %v4337_v60, %v4573_v46 }
 0x16b   :  { %3963 = vrsqrt.f32 %v1263_v61  ;;  %3828 = vrot.lane.b32.xlu1 %v3827_v38, %s4079_s25  ;;  %vm1416_vm4 = vweird.f32 %v1263_v61  ;;  %vm4721_vm9 = vmor %vm1406_vm7, %vm1407_vm8 }
 0x16c   :  { %v951_v50 = vpop.f32.mrf.mxu2  ;;  %v4646_v55 = vpop.f32.mrf.mxu1  ;;  %v1402_v33 = vmul.f32 %v4642_v21, %v1401_v11 }
 0x16d   :  { %v1119_v10 = vsub.f32 %v951_v50, %v1071_v1  ;;  %3833 = vrot.lane.b32.xlu2 %v3832_v45, %s4079_s25  ;;  %v1072_v53 = vmul.f32 %v4646_v55, %v4646_v55  ;;  %v1212_v1 = vsub.f32 %v4323_v56, %v4540_v63  ;;  %v1213_v45 = vsub.f32 %v4330_v58, %v4555_v29 }
 0x16e   :  { %v1403_v44 = vmul.f32 0.5, %v1402_v33  ;;  %v1385_v50 = vmul.f32 %v4615_v47, %v1384_v25  ;;  %3568 = vmatmul.msk.f32.gmra.mxu0 %vm79_vm0, %v60_v22 }
 0x16f   :  { %v1168_v23 = vadd.f32 %v4389_v12, %v1119_v10 }
 0x170   :  { %v1404_v35 = vsub.f32 1.5, %v1403_v44 }
 0x171   :  { %v3964_v30 = vpop.eup %3963  ;;  %v4653_v19 = vadd.f32 1e-05, %v1168_v23  ;;  %v1389_v23 = vsel %vm4673_vm2, %v4615_v47, %v1385_v50 }
 0x172   :  { %v1411_v27 = vmul.f32 %v3964_v30, %v1263_v61  ;;  %vm1417_vm5 = vweird.f32 %v3964_v30  ;;  %v1399_v61 = vsel %vm4681_vm3, %v4622_v40, %v1395_v8 }
 0x173   :  { %3965 = vrsqrt.f32 %v4653_v19  ;;  %vm4705_vm6 = vmor %vm1416_vm4, %vm1417_vm5  ;;  %vm1426_vm10 = vweird.f32 %v4653_v19 }
 0x174   :  { %v1412_v49 = vmul.f32 %v3964_v30, %v1411_v27  ;;  %v954_v51 = vpop.f32.mrf.mxu2  ;;  %v4666_v52 = vpop.f32.mrf.mxu1  ;;  %v1788_v27 = vmul.f32 %v1389_v23, %v1212_v1 }
 0x175   :  { %v1120_v59 = vsub.f32 %v954_v51, %v1072_v53  ;;  %v1073_v58 = vmul.f32 %v4666_v52, %v4666_v52  ;;  %v1789_v53 = vmul.f32 %v1399_v61, %v1213_v45  ;;  %v1405_v45 = vmul.f32 %v4642_v21, %v1404_v35 }
 0x176   :  { %v1413_v42 = vmul.f32 0.5, %v1412_v49  ;;  %v1837_v26 = vmul.f32 %v4431_v54, %v1788_v27 }
 0x177   :  { %v1169_v56 = vadd.f32 %v4389_v12, %v1120_v59  ;;  %v1838_v62 = vmul.f32 %v4431_v54, %v1789_v53 }
 0x178   :  { %v1414_v63 = vsub.f32 1.5, %v1413_v42  ;;  %v4730_v42 = vadd.f32 %v4438_v32, %v1837_v26  ;;  %v1216_v26 = vsub.f32 %v4351_v0, %v4617_v34 }
 0x179   :  { %v4688_v10 = vpop.eup %3965  ;;  %v1265_v11 = vadd.f32 1e-05, %v1169_v56  ;;  %v4727_v1 = vadd.f32 %v4438_v32, %v1838_v62  ;;  %v61_v56 = vld [vmem:[%s6293_s0 + $0x110] sm:$0xff] }
 0x17a   :  { %v1421_v29 = vmul.f32 %v4688_v10, %v4653_v19  ;;  %v1415_v25 = vmul.f32 %v3964_v30, %v1414_v63  ;;  %2210 = vrot.lane.b32.xlu1 %v4730_v42, %s4078_s14  ;;  %v1409_v63 = vsel %vm4721_vm9, %v4642_v21, %v1405_v45  ;;  %3569 = vmatmul.msk.f32.gmra.mxu0 %vm79_vm0, %v61_v56  ;;  %vm1427_vm13 = vweird.f32 %v4688_v10 }
 0x17b   :  { %3967 = vrsqrt.f32 %v1265_v11  ;;  %2212 = vrot.lane.b32.xlu2 %v4727_v1, %s4078_s14  ;;  %v1790_v50 = vmul.f32 %v1409_v63, %v1214_v41  ;;  %vm1436_vm11 = vweird.f32 %v1265_v11  ;;  %vm4775_vm15 = vmor %vm1426_vm10, %vm1427_vm13  ;;  %v63_v63 = vld [vmem:[%s6293_s0 + $0x120] sm:$0xff] }
 0x17c   :  { %v957_v40 = vpop.f32.mrf.mxu2  ;;  %v4711_v33 = vpop.f32.mrf.mxu1  ;;  %v1422_v47 = vmul.f32 %v4688_v10, %v1421_v29  ;;  %v1419_v49 = vsel %vm4705_vm6, %v3964_v30, %v1415_v25  ;;  %v1217_v25 = vsub.f32 %v4358_v2, %v4646_v55  ;;  %v62_v2 = vld [vmem:[%s6293_s0 + $0x118] sm:$0xff] }
 0x17d   :  { %v1121_v37 = vsub.f32 %v957_v40, %v1073_v58  ;;  %v1791_v38 = vmul.f32 %v1419_v49, %v1215_v28  ;;  %v1074_v60 = vmul.f32 %v4711_v33, %v4711_v33  ;;  %v1839_v15 = vmul.f32 %v4431_v54, %v1790_v50 }
 0x17e   :  { %v1423_v30 = vmul.f32 0.5, %v1422_v47 }
 0x17f   :  { %v1170_v59 = vadd.f32 %v4389_v12, %v1121_v37  ;;  %v1840_v46 = vmul.f32 %v4431_v54, %v1791_v38  ;;  %v4760_v27 = vadd.f32 %v4438_v32, %v1839_v15 }
 0x180   :  { %v1424_v61 = vsub.f32 1.5, %v1423_v30 }
 0x181   :  { %v3968_v7 = vpop.eup %3967  ;;  %v4746_v8 = vadd.f32 1e-05, %v1170_v59  ;;  %v4752_v28 = vadd.f32 %v4438_v32, %v1840_v46 }
 0x182   :  { %v1431_v44 = vmul.f32 %v3968_v7, %v1265_v11  ;;  %vm1437_vm12 = vweird.f32 %v3968_v7  ;;  %v1425_v40 = vmul.f32 %v4688_v10, %v1424_v61  ;;  %2214 = vrot.lane.b32.xlu1 %v4760_v27, %s4078_s14  ;;  %3570 = vmatmul.msk.f32.gmra.mxu0 %vm79_vm0, %v62_v2 }
 0x183   :  { %3969 = vrsqrt.f32 %v4746_v8  ;;  %vm4765_vm14 = vmor %vm1436_vm11, %vm1437_vm12  ;;  %2216 = vrot.lane.b32.xlu2 %v4752_v28, %s4078_s14  ;;  %vm1446_vm5 = vweird.f32 %v4746_v8 }
 0x184   :  { %v1432_v58 = vmul.f32 %v3968_v7, %v1431_v44  ;;  %v960_v29 = vpop.f32.mrf.mxu2  ;;  %v4748_v22 = vpop.f32.mrf.mxu1  ;;  %v1429_v59 = vsel %vm4775_vm15, %v4688_v10, %v1425_v40 }
 0x185   :  { %v1122_v23 = vsub.f32 %v960_v29, %v1074_v60  ;;  %v1075_v37 = vmul.f32 %v4748_v22, %v4748_v22  ;;  %v1792_v60 = vmul.f32 %v1429_v59, %v1216_v26  ;;  %v64_v26 = vld [vmem:[%s6293_s0 + $0x128] sm:$0xff] }
 0x186   :  { %v1433_v53 = vmul.f32 0.5, %v1432_v58 }
 0x187   :  { %v1171_v21 = vadd.f32 %v4389_v12, %v1122_v23  ;;  %v1841_v50 = vmul.f32 %v4431_v54, %v1792_v60 }
 0x188   :  { %v1434_v35 = vsub.f32 1.5, %v1433_v53 }
 0x189   :  { %v1267_v11 = vadd.f32 1e-05, %v1171_v21  ;;  %v4790_v51 = vpop.eup %3969  ;;  %v4818_v15 = vadd.f32 %v4438_v32, %v1841_v50 }
 0x18a   :  { %v1435_v55 = vmul.f32 %v3968_v7, %v1434_v35  ;;  %v1441_v34 = vmul.f32 %v4790_v51, %v4746_v8  ;;  %3571 = vmatmul.msk.f32.gmra.mxu0 %vm79_vm0, %v63_v63  ;;  %vm1447_vm6 = vweird.f32 %v4790_v51  ;;  %v1218_v8 = vsub.f32 %v4365_v4, %v4666_v52  ;;  %v65_v52 = vld [vmem:[%s6293_s0 + $0x130] sm:$0xff] }
 0x18b   :  { %3971 = vrsqrt.f32 %v1267_v11  ;;  %vm1456_vm2 = vweird.f32 %v1267_v11  ;;  %2218 = vrot.lane.b32.xlu1 %v4818_v15, %s4078_s14  ;;  %vm1448_vm7 = vmor %vm1446_vm5, %vm1447_vm6 }
 0x18c   :  { %v963_v49 = vpop.f32.mrf.mxu2  ;;  %v4786_v41 = vpop.f32.mrf.mxu1  ;;  %v1439_v19 = vsel %vm4765_vm14, %v3968_v7, %v1435_v55  ;;  %v1442_v58 = vmul.f32 %v4790_v51, %v1441_v34 }
 0x18d   :  { %v1123_v38 = vsub.f32 %v963_v49, %v1075_v37  ;;  %v1793_v45 = vmul.f32 %v1439_v19, %v1217_v25  ;;  %v1076_v44 = vmul.f32 %v4786_v41, %v4786_v41  ;;  %v1219_v37 = vsub.f32 %v4372_v6, %v4711_v33 }
 0x18e   :  { %v1443_v40 = vmul.f32 0.5, %v1442_v58 }
 0x18f   :  { %v1172_v30 = vadd.f32 %v4389_v12, %v1123_v38  ;;  %v1842_v0 = vmul.f32 %v4431_v54, %v1793_v45 }
 0x190   :  { %v1444_v49 = vsub.f32 1.5, %v1443_v40 }
 0x191   :  { %v3972_v46 = vpop.eup %3971  ;;  %v4800_v7 = vadd.f32 1e-05, %v1172_v30  ;;  %v4805_v10 = vadd.f32 %v4438_v32, %v1842_v0 }
 0x192   :  { %v1451_v56 = vmul.f32 %v3972_v46, %v1267_v11  ;;  %vm1457_vm3 = vweird.f32 %v3972_v46  ;;  %3572 = vmatmul.msk.f32.gmra.mxu0 %vm79_vm0, %v64_v26 }
 0x193   :  { %6332 = vst [vmem:[#allocation5_spill] sm:$0xff] %v4805_v10  ;;  %3973 = vrsqrt.f32 %v4800_v7  ;;  %2220 = vrot.lane.b32.xlu2 %v4805_v10, %s4078_s14  ;;  %vm1458_vm4 = vmor %vm1456_vm2, %vm1457_vm3  ;;  %vm1466_vm8 = vweird.f32 %v4800_v7 }
 0x194   :  { %v1452_v29 = vmul.f32 %v3972_v46, %v1451_v56  ;;  %v966_v61 = vpop.f32.mrf.mxu2  ;;  %v4815_v23 = vpop.f32.mrf.mxu1 }
 0x195   :  { %v1124_v53 = vsub.f32 %v966_v61, %v1076_v44  ;;  %v1077_v2 = vmul.f32 %v4815_v23, %v4815_v23 }
 0x196   :  { %v1453_v21 = vmul.f32 0.5, %v1452_v29 }
 0x197   :  { %v1173_v35 = vadd.f32 %v4389_v12, %v1124_v53 }
 0x198   :  { %v1454_v25 = vsub.f32 1.5, %v1453_v21 }
 0x199   :  { %v4824_v47 = vpop.eup %3973  ;;  %v4828_v62 = vadd.f32 1e-05, %v1173_v35 }
 0x19a   :  { %v1461_v11 = vmul.f32 %v4824_v47, %v4800_v7  ;;  %v1455_v55 = vmul.f32 %v3972_v46, %v1454_v25  ;;  %3573 = vmatmul.msk.f32.gmra.mxu0 %vm79_vm0, %v65_v52  ;;  %vm1467_vm9 = vweird.f32 %v4824_v47  ;;  %v3852_v52 = vpack.i.bf16 %v4730_v42, %v4727_v1 }
 0x19b   :  { %3975 = vrsqrt.f32 %v4828_v62  ;;  %vm4883_vm10 = vmor %vm1466_vm8, %vm1467_vm9  ;;  %vm1476_vm11 = vweird.f32 %v4828_v62 }
 0x19c   :  { %v1462_v6 = vmul.f32 %v4824_v47, %v1461_v11  ;;  %v1459_v33 = vsel %vm1458_vm4, %v3972_v46, %v1455_v55  ;;  %v969_v19 = vpop.f32.mrf.mxu2  ;;  %v4841_v59 = vpop.f32.mrf.mxu1  ;;  %v1445_v46 = vmul.f32 %v4790_v51, %v1444_v49 }
 0x19d   :  { %v1944_v38 = vpop.permute.xlu0 %1943  ;;  %v1795_v45 = vmul.f32 %v1459_v33, %v1219_v37  ;;  %v1125_v30 = vsub.f32 %v969_v19, %v1077_v2  ;;  %v1078_v50 = vmul.f32 %v4841_v59, %v4841_v59 }
 0x19e   :  { %1967 = vxpose.xlu0.b32.start [1/8] (short) (narrow) %v1944_v38, 32  ;;  %v1463_v60 = vmul.f32 0.5, %v1462_v6  ;;  %v1449_v58 = vsel %vm1448_vm7, %v4790_v51, %v1445_v46  ;;  %v3842_v51 = vpack.i.bf16 %v4818_v15, %v4805_v10  ;;  %v66_v38 = vld [vmem:[%s6293_s0 + $0x138] sm:$0xff] }
 0x19f   :  { %v1844_v0 = vmul.f32 %v4431_v54, %v1795_v45  ;;  %v1174_v34 = vadd.f32 %v4389_v12, %v1125_v30  ;;  %v1794_v29 = vmul.f32 %v1449_v58, %v1218_v8  ;;  %v1220_v45 = vsub.f32 %v4379_v9, %v4748_v22  ;;  %v4915_v22 = vpop.f32.mrf.mxu0 }
 0x1a0   :  { %v1464_v61 = vsub.f32 1.5, %v1463_v60  ;;  %v730_v58 = vmul.f32 %v4915_v22, %v4915_v22  ;;  %3607 = vmatmul.msk.f32.gmra.mxu1 %vm400_vm1, %v4915_v22 }
 0x1a1   :  { %v4849_v44 = vpop.eup %3975  ;;  %v4852_v56 = vadd.f32 %v4438_v32, %v1844_v0  ;;  %v4854_v63 = vadd.f32 1e-05, %v1174_v34  ;;  %v1843_v37 = vmul.f32 %v4431_v54, %v1794_v29 }
 0x1a2   :  { %v1471_v4 = vmul.f32 %v4849_v44, %v4828_v62  ;;  %v1465_v26 = vmul.f32 %v4824_v47, %v1464_v61  ;;  %3574 = vmatmul.msk.f32.gmra.mxu0 %vm79_vm0, %v66_v38  ;;  %vm1477_vm12 = vweird.f32 %v4849_v44  ;;  %3655 = vmatmul.msk.f32.gmra.mxu2 %vm400_vm1, %v730_v58 }
 0x1a3   :  { %6333 = vst [vmem:[#allocation6_spill] sm:$0xff] %v4852_v56  ;;  %2224 = vrot.lane.b32.xlu2 %v4852_v56, %s4078_s14  ;;  %3977 = vrsqrt.f32 %v4854_v63  ;;  %v4878_v11 = vadd.f32 %v4438_v32, %v1843_v37  ;;  %vm4927_vm13 = vmor %vm1476_vm11, %vm1477_vm12  ;;  %v1221_v37 = vsub.f32 %v4393_v16, %v4786_v41  ;;  %v3847_v16 = vpack.i.bf16 %v4760_v27, %v4752_v28 }
 0x1a4   :  { %v1472_v53 = vmul.f32 %v4849_v44, %v1471_v4  ;;  %v972_v21 = vpop.f32.mrf.mxu2  ;;  %v4868_v35 = vpop.f32.mrf.mxu1  ;;  %v1469_v60 = vsel %vm4883_vm10, %v4824_v47, %v1465_v26  ;;  %vm1486_vm14 = vweird.f32 %v4854_v63 }
 0x1a5   :  { %v1946_v40 = vpop.permute.xlu0 %1945  ;;  %v1126_v25 = vsub.f32 %v972_v21, %v1078_v50  ;;  %6334 = vst [vmem:[#allocation7_spill] sm:$0xff] %v4878_v11  ;;  %v1079_v33 = vmul.f32 %v4868_v35, %v4868_v35  ;;  %2222 = vrot.lane.b32.xlu1 %v4878_v11, %s4078_s14  ;;  %v4908_v46 = vpop.permute.xlu2 %1951  ;;  %v3837_v9 = vpack.i.bf16 %v4878_v11, %v4852_v56 }
 0x1a6   :  { %1968 = vxpose.xlu0.b32.cont [2/8] (short) (narrow) %v1946_v40, 32  ;;  %v1473_v55 = vmul.f32 0.5, %v1472_v53  ;;  %v1796_v29 = vmul.f32 %v1469_v60, %v1220_v45 }
 0x1a7   :  { %v1175_v2 = vadd.f32 %v4389_v12, %v1126_v25  ;;  %v4954_v41 = vpop.f32.mrf.mxu0 }
 0x1a8   :  { %v1474_v30 = vsub.f32 1.5, %v1473_v55  ;;  %3608 = vmatmul.msk.f32.gmra.mxu1 %vm400_vm1, %v4954_v41 }
 0x1a9   :  { %v4881_v49 = vpop.eup %3977  ;;  %v4887_v7 = vadd.f32 1e-05, %v1175_v2 }
 0x1aa   :  { %v1481_v19 = vmul.f32 %v4881_v49, %v4854_v63  ;;  %v1475_v62 = vmul.f32 %v4849_v44, %v1474_v30  ;;  %vm1487_vm15 = vweird.f32 %v4881_v49 }
 0x1ab   :  { %3843 = vrot.lane.b32.xlu2 %v3842_v51, %s4079_s25  ;;  %3979 = vrsqrt.f32 %v4887_v7  ;;  %v1845_v51 = vmul.f32 %v4431_v54, %v1796_v29  ;;  %vm4972_vm2 = vmor %vm1486_vm14, %vm1487_vm15  ;;  %v1222_v29 = vsub.f32 %v4405_v24, %v4815_v23  ;;  %vm1496_vm3 = vweird.f32 %v4887_v7 }
 0x1ac   :  { %v1482_v8 = vmul.f32 %v4881_v49, %v1481_v19  ;;  %v975_v0 = vpop.f32.mrf.mxu2  ;;  %v4903_v34 = vpop.f32.mrf.mxu1 }
 0x1ad   :  { %v1948_v50 = vpop.permute.xlu1 %1947  ;;  %v1127_v4 = vsub.f32 %v975_v0, %v1079_v33  ;;  %3838 = vrot.lane.b32.xlu1 %v3837_v9, %s4079_s25  ;;  %v1479_v33 = vsel %vm4927_vm13, %v4849_v44, %v1475_v62  ;;  %v1954_v45 = vpop.permute.xlu2 %1953  ;;  %v4957_v30 = vadd.f32 %v4438_v32, %v1845_v51  ;;  %v4962_v44 = vld [vmem:[%s6296_s3] ss:$0 sm:$0xff]  ;;  %v731_v0 = vmul.f32 %v4954_v41, %v4954_v41 }
 0x1ae   :  { %1969 = vxpose.xlu0.b32.cont [3/8] (short) (narrow) %v1948_v50, 32  ;;  %v1483_v61 = vmul.f32 0.5, %v1482_v8  ;;  %v1797_v63 = vmul.f32 %v1479_v33, %v1221_v37 }
 0x1af   :  { %v1176_v47 = vadd.f32 %v4389_v12, %v1127_v4  ;;  %v1080_v12 = vmul.f32 %v4903_v34, %v4903_v34  ;;  %6339 = vst [vmem:[#allocation8_spill] sm:$0xff] %v4957_v30  ;;  %3656 = vmatmul.msk.f32.gmra.mxu2 %vm400_vm1, %v731_v0  ;;  %v4997_v24 = vpop.f32.mrf.mxu0 }
 0x1b0   :  { %v1484_v2 = vsub.f32 1.5, %v1483_v61  ;;  %v1846_v61 = vmul.f32 %v4431_v54, %v1797_v63  ;;  %3609 = vmatmul.msk.f32.gmra.mxu1 %vm400_vm1, %v4997_v24  ;;  %v1223_v63 = vsub.f32 %v4417_v39, %v4841_v59 }
 0x1b1   :  { %v4925_v53 = vpop.eup %3979  ;;  %v4931_v40 = vadd.f32 1e-05, %v1176_v47 }
 0x1b2   :  { %v1491_v25 = vmul.f32 %v4925_v53, %v4887_v7  ;;  %v1485_v50 = vmul.f32 %v4881_v49, %v1484_v2  ;;  %vm1497_vm4 = vweird.f32 %v4925_v53  ;;  %v5002_v51 = vadd.f32 %v4438_v32, %v1846_v61  ;;  %v5032_v7 = vld [vmem:[%s6296_s3 + $0x1] ss:$0 sm:$0xff] }
 0x1b3   :  { %3853 = vrot.lane.b32.xlu2 %v3852_v52, %s4079_s25  ;;  %3981 = vrsqrt.f32 %v4931_v40  ;;  %vm5014_vm5 = vmor %vm1496_vm3, %vm1497_vm4  ;;  %vm1506_vm6 = vweird.f32 %v4931_v40  ;;  %vm2023_vm4 = vcmask 523264  }
 0x1b4   :  { %v1492_v55 = vmul.f32 %v4925_v53, %v1491_v25  ;;  %v978_v26 = vpop.f32.mrf.mxu2  ;;  %v4945_v6 = vpop.f32.mrf.mxu1  ;;  %v1489_v25 = vsel %vm4972_vm2, %v4881_v49, %v1485_v50  ;;  %6342 = vst [vmem:[#allocation9_spill] sm:$0xff] %v5002_v51  ;;  %v732_v49 = vmul.f32 %v4997_v24, %v4997_v24 }
 0x1b5   :  { %v1950_v19 = vpop.permute.xlu1 %1949  ;;  %v1128_v38 = vsub.f32 %v978_v26, %v1080_v12  ;;  %v1081_v47 = vmul.f32 %v4945_v6, %v4945_v6  ;;  %3848 = vrot.lane.b32.xlu1 %v3847_v16, %s4079_s25 }
 0x1b6   :  { %1970 = vxpose.xlu0.b32.cont [4/8] (short) (narrow) %v1950_v19, 32  ;;  %v1493_v60 = vmul.f32 0.5, %v1492_v55  ;;  %v1798_v55 = vmul.f32 %v1489_v25, %v1222_v29  ;;  %v5047_v29 = vld [vmem:[%s6296_s3 + $0x2] ss:$0 sm:$0xff] }
 0x1b7   :  { %v1177_v8 = vadd.f32 %v4962_v44, %v1128_v38  ;;  %3657 = vmatmul.msk.f32.gmra.mxu2 %vm400_vm1, %v732_v49 }
 0x1b8   :  { %v1494_v62 = vsub.f32 1.5, %v1493_v60  ;;  %v1847_v60 = vmul.f32 %v5032_v7, %v1798_v55  ;;  %v5042_v59 = vpop.f32.mrf.mxu0 }
 0x1b9   :  { %v4970_v4 = vpop.eup %3981  ;;  %v4976_v52 = vadd.f32 1e-05, %v1177_v8  ;;  %3610 = vmatmul.msk.f32.gmra.mxu1 %vm400_vm1, %v5042_v59 }
 0x1ba   :  { %v1501_v58 = vmul.f32 %v4970_v4, %v4931_v40  ;;  %vm1507_vm7 = vweird.f32 %v4970_v4  ;;  %v5050_v61 = vadd.f32 %v5047_v29, %v1847_v60 }
 0x1bb   :  { %2473 = vrot.lane.b32.xlu2 %v4957_v30, %s4078_s14  ;;  %3983 = vrsqrt.f32 %v4976_v52  ;;  %vm5058_vm8 = vmor %vm1506_vm6, %vm1507_vm7  ;;  %vm1516_vm9 = vweird.f32 %v4976_v52 }
 0x1bc   :  { %v1502_v21 = vmul.f32 %v4970_v4, %v1501_v58  ;;  %v981_v12 = vpop.f32.mrf.mxu2  ;;  %v4999_v23 = vpop.f32.mrf.mxu1  ;;  %6345 = vst [vmem:[#allocation10_spill] sm:$0xff] %v5050_v61 }
 0x1bd   :  { %v1129_v37 = vsub.f32 %v981_v12, %v1081_v47  ;;  %v1082_v16 = vmul.f32 %v4999_v23, %v4999_v23 }
 0x1be   :  { %1971 = vxpose.xlu0.b32.cont [5/8] (short) (narrow) %v4908_v46, 32  ;;  %v1503_v26 = vmul.f32 0.5, %v1502_v21  ;;  %v1495_v46 = vmul.f32 %v4925_v53, %v1494_v62  ;;  %v733_v62 = vmul.f32 %v5042_v59, %v5042_v59 }
 0x1bf   :  { %v3819_v54 = vpop.permute.xlu2 %3818  ;;  %v1178_v2 = vadd.f32 %v4962_v44, %v1129_v37 }
 0x1c0   :  { %v3820_v33 = vunpack.i.l.bf16 %v3819_v54  ;;  %v3821_v0 = vunpack.i.h.bf16 %v3819_v54  ;;  %v1504_v50 = vsub.f32 1.5, %v1503_v26  ;;  %v1499_v58 = vsel %vm5014_vm5, %v4925_v53, %v1495_v46  ;;  %3658 = vmatmul.msk.f32.gmra.mxu2 %vm400_vm1, %v733_v62 }
 0x1c1   :  { %v5010_v19 = vpop.eup %3983  ;;  %v5018_v38 = vadd.f32 1e-05, %v1178_v2  ;;  %v1799_v21 = vmul.f32 %v1499_v58, %v1223_v63  ;;  %v1224_v54 = vsub.f32 %v4440_v5, %v4868_v35  ;;  %v5077_v5 = vpop.f32.mrf.mxu0  ;;  %v1225_v63 = vsub.f32 %v4463_v31, %v4903_v34 }
 0x1c2   :  { %v1511_v8 = vmul.f32 %v5010_v19, %v4976_v52  ;;  %2044 = vmatpush.msra.mxu3 %v3820_v33  ;;  %vm1517_vm10 = vweird.f32 %v5010_v19  ;;  %v734_v46 = vmul.f32 %v5077_v5, %v5077_v5  ;;  %3611 = vmatmul.msk.f32.gmra.mxu1 %vm400_vm1, %v5077_v5 }
 0x1c3   :  { %2475 = vrot.lane.b32.xlu2 %v5002_v51, %s4078_s14  ;;  %3985 = vrsqrt.f32 %v5018_v38  ;;  %v1848_v2 = vmul.f32 %v5032_v7, %v1799_v21  ;;  %vm5087_vm11 = vmor %vm1516_vm9, %vm1517_vm10  ;;  %vm1526_vm15 = vweird.f32 %v5018_v38 }
 0x1c4   :  { %v1512_v9 = vmul.f32 %v5010_v19, %v1511_v8  ;;  %2045 = vmatpush.msra.mxu3 %v3821_v0  ;;  %v984_v47 = vpop.f32.mrf.mxu2 }
 0x1c5   :  { %v1130_v39 = vsub.f32 %v984_v47, %v1082_v16  ;;  %v5080_v35 = vadd.f32 %v5047_v29, %v1848_v2  ;;  %v1226_v16 = vsub.f32 %v4491_v3, %v4945_v6 }
 0x1c6   :  { %1972 = vxpose.xlu0.b32.cont [6/8] (short) (narrow) %v1954_v45, 32  ;;  %v1513_v40 = vmul.f32 0.5, %v1512_v9  ;;  %v1505_v45 = vmul.f32 %v4970_v4, %v1504_v50 }
 0x1c7   :  { %v1179_v53 = vadd.f32 %v4962_v44, %v1130_v39  ;;  %6348 = vst [vmem:[#allocation11_spill] sm:$0xff] %v5080_v35 }
 0x1c8   :  { %v1514_v49 = vsub.f32 1.5, %v1513_v40  ;;  %v1509_v55 = vsel %vm5058_vm8, %v4970_v4, %v1505_v45  ;;  %3659 = vmatmul.msk.f32.gmra.mxu2 %vm400_vm1, %v734_v46 }
 0x1c9   :  { %v1275_v25 = vadd.f32 1e-05, %v1179_v53  ;;  %v5063_v37 = vpop.eup %3985  ;;  %v1800_v32 = vmul.f32 %v1509_v55, %v1224_v54  ;;  %v5101_v21 = vpop.f32.mrf.mxu0 }
 0x1ca   :  { %v1521_v33 = vmul.f32 %v5063_v37, %v5018_v38  ;;  %v1515_v4 = vmul.f32 %v5010_v19, %v1514_v49  ;;  %v735_v34 = vmul.f32 %v5101_v21, %v5101_v21  ;;  %3612 = vmatmul.msk.f32.gmra.mxu1 %vm400_vm1, %v5101_v21  ;;  %v1227_v49 = vsub.f32 %v4517_v13, %v4999_v23  ;;  %v3834_v13 = vpop.permute.xlu2 %3833 }
 0x1cb   :  { %2477 = vrot.lane.b32.xlu2 %v5050_v61, %s4078_s14  ;;  %3987 = vrsqrt.f32 %v1275_v25  ;;  %v1849_v60 = vmul.f32 %v5032_v7, %v1800_v32  ;;  %vm1536_vm12 = vweird.f32 %v1275_v25  ;;  %vm1527_vm2 = vweird.f32 %v5063_v37 }
 0x1cc   :  { %v1522_v8 = vmul.f32 %v5063_v37, %v1521_v33  ;;  %v1519_v9 = vsel %vm5087_vm11, %v5010_v19, %v1515_v4  ;;  %vm5126_vm3 = vmor %vm1526_vm15, %vm1527_vm2  ;;  %v3836_v3 = vunpack.i.h.bf16 %v3834_v13 }
 0x1cd   :  { %v1956_v26 = vpop.permute.xlu0 %1955  ;;  %v5104_v31 = vadd.f32 %v5047_v29, %v1849_v60  ;;  %v1801_v40 = vmul.f32 %v1519_v9, %v1225_v63 }
 0x1ce   :  { %1973 = vxpose.xlu0.b32.cont [7/8] (short) (narrow) %v1956_v26, 32  ;;  %v1523_v39 = vmul.f32 0.5, %v1522_v8  ;;  %v3835_v8 = vunpack.i.l.bf16 %v3834_v13 }
 0x1cf   :  { %6351 = vst [vmem:[#allocation12_spill] sm:$0xff] %v5104_v31  ;;  %v1850_v55 = vmul.f32 %v5032_v7, %v1801_v40 }
 0x1d0   :  { %3660 = vmatmul.msk.f32.gmra.mxu2 %vm400_vm1, %v735_v34  ;;  %v1524_v54 = vsub.f32 1.5, %v1523_v39 }
 0x1d1   :  { %v3988_v52 = vpop.eup %3987  ;;  %v5131_v23 = vadd.f32 %v5047_v29, %v1850_v55 }
 0x1d2   :  { %v1531_v0 = vmul.f32 %v3988_v52, %v1275_v25  ;;  %vm1537_vm13 = vweird.f32 %v3988_v52  ;;  %v1525_v33 = vmul.f32 %v5063_v37, %v1524_v54 }
 0x1d3   :  { %2479 = vrot.lane.b32.xlu2 %v5080_v35, %s4078_s14  ;;  %vm5111_vm14 = vmor %vm1536_vm12, %vm1537_vm13  ;;  %6356 = vst [vmem:[#allocation13_spill] sm:$0xff] %v5131_v23 }
 0x1d4   :  { %v1532_v50 = vmul.f32 %v3988_v52, %v1531_v0  ;;  %v5138_v0 = vpop.f32.mrf.mxu0 }
 0x1d5   :  { %v3824_v47 = vpop.permute.xlu0 %3823  ;;  %v1958_v58 = vpop.permute.xlu1 %1957  ;;  %v736_v63 = vmul.f32 %v5138_v0, %v5138_v0  ;;  %3613 = vmatmul.msk.f32.gmra.mxu1 %vm400_vm1, %v5138_v0 }
 0x1d6   :  { %v1533_v53 = vmul.f32 0.5, %v1532_v50  ;;  %1974 = vxpose.xlu0.b32.end [8/8] (short) (narrow) %v1958_v58, 32  ;;  %v3825_v62 = vunpack.i.l.bf16 %v3824_v47  ;;  %v3826_v45 = vunpack.i.h.bf16 %v3824_v47  ;;  %v2213_v50 = vpop.permute.xlu2 %2212 }
 0x1d8   :  { %v1534_v19 = vsub.f32 1.5, %v1533_v53  ;;  %2046 = vmatpush.msra.mxu3 %v3825_v62  ;;  %3661 = vmatmul.msk.f32.gmra.mxu2 %vm400_vm1, %v736_v63 }
 0x1da   :  { %2047 = vmatpush.msra.mxu3 %v3826_v45  ;;  %v1535_v2 = vmul.f32 %v3988_v52, %v1534_v19  ;;  %v3862_v45 = vpack.i.bf16 %v5104_v31, %v5131_v23 }
 0x1db   :  { %2481 = vrot.lane.b32.xlu2 %v5104_v31, %s4078_s14 }
 0x1dc   :  { %v1539_v25 = vsel %vm5111_vm14, %v3988_v52, %v1535_v2  ;;  %v1529_v52 = vsel %vm5126_vm3, %v5063_v37, %v1525_v33  ;;  %v5152_v47 = vpop.f32.mrf.mxu0 }
 0x1dd   :  { %v3829_v26 = vpop.permute.xlu1 %3828  ;;  %v1803_v4 = vmul.f32 %v1539_v25, %v1227_v49  ;;  %v1802_v6 = vmul.f32 %v1529_v52, %v1226_v16  ;;  %v737_v58 = vmul.f32 %v5152_v47, %v5152_v47  ;;  %3614 = vmatmul.msk.f32.gmra.mxu1 %vm400_vm1, %v5152_v47  ;;  %v3867_v49 = vpack.i.bf16 %v5050_v61, %v5080_v35 }
 0x1de   :  { %v3830_v46 = vunpack.i.l.bf16 %v3829_v26  ;;  %v3831_v38 = vunpack.i.h.bf16 %v3829_v26  ;;  %v2217_v34 = vpop.permute.xlu2 %2216 }
 0x1df   :  { %v1852_v60 = vmul.f32 %v5032_v7, %v1803_v4  ;;  %v1851_v9 = vmul.f32 %v5032_v7, %v1802_v6 }
 0x1e0   :  { %2048 = vmatpush.msra.mxu3 %v3830_v46  ;;  %3662 = vmatmul.msk.f32.gmra.mxu2 %vm400_vm1, %v737_v58  ;;  %v3872_v46 = vpack.i.bf16 %v4957_v30, %v5002_v51 }
 0x1e1   :  { %v5149_v37 = vadd.f32 %v5047_v29, %v1852_v60  ;;  %v5161_v39 = vadd.f32 %v5047_v29, %v1851_v9 }
 0x1e2   :  { %2049 = vmatpush.msra.mxu3 %v3831_v38 }
 0x1e3   :  { %2483 = vrot.lane.b32.xlu2 %v5131_v23, %s4078_s14  ;;  %6357 = vst [vmem:[#allocation14_spill] sm:$0xff] %v5149_v37  ;;  %v3857_v53 = vpack.i.bf16 %v5161_v39, %v5149_v37 }
 0x1e4   :  { %2050 = vmatpush.msra.mxu3 %v3835_v8  ;;  %6358 = vst [vmem:[#allocation15_spill] sm:$0xff] %v5161_v39  ;;  %v5166_v62 = vpop.f32.mrf.mxu0 }
 0x1e5   :  { %v738_v40 = vmul.f32 %v5166_v62, %v5166_v62  ;;  %3615 = vmatmul.msk.f32.gmra.mxu1 %vm400_vm1, %v5166_v62 }
 0x1e6   :  { %2051 = vmatpush.msra.mxu3 %v3836_v3 }
 0x1e8   :  { %3663 = vmatmul.msk.f32.gmra.mxu2 %vm400_vm1, %v738_v40 }
 0x1eb   :  { %2487 = vrot.lane.b32.xlu2 %v5149_v37, %s4078_s14 }
 0x1ec   :  { %v2211_v19 = vpop.permute.xlu1 %2210  ;;  %v5176_v12 = vpop.f32.mrf.mxu0 }
 0x1ed   :  { %2234 = vxpose.xlu1.b32.start [1/8] (short) (narrow) %v2211_v19, 32  ;;  %v739_v54 = vmul.f32 %v5176_v12, %v5176_v12  ;;  %3616 = vmatmul.msk.f32.gmra.mxu1 %vm400_vm1, %v5176_v12  ;;  %v2221_v2 = vpop.permute.xlu2 %2220 }
 0x1f0   :  { %3664 = vmatmul.msk.f32.gmra.mxu2 %vm400_vm1, %v739_v54 }
 0x1f3   :  { %3858 = vrot.lane.b32.xlu2 %v3857_v53, %s4079_s25 }
 0x1f4   :  { %v2215_v26 = vpop.permute.xlu1 %2214 }
 0x1f5   :  { %2235 = vxpose.xlu1.b32.cont [2/8] (short) (narrow) %v2213_v50, 32 }
 0x1f7   :  { %v5186_v55 = vpop.f32.mrf.mxu0 }
 0x1f8   :  { %v740_v25 = vmul.f32 %v5186_v55, %v5186_v55  ;;  %3617 = vmatmul.msk.f32.gmra.mxu1 %vm400_vm1, %v5186_v55 }
 0x1fa   :  { %3665 = vmatmul.msk.f32.gmra.mxu2 %vm400_vm1, %v740_v25 }
 0x1fb   :  { %3863 = vrot.lane.b32.xlu2 %v3862_v45, %s4079_s25 }
 0x1fd   :  { %2236 = vxpose.xlu1.b32.cont [3/8] (short) (narrow) %v2215_v26, 32  ;;  %v2225_v33 = vpop.permute.xlu2 %2224  ;;  %v2219_v52 = vpop.permute.xlu1 %2218 }
 0x1ff   :  { %v5196_v32 = vpop.f32.mrf.mxu0 }
 0x200   :  { %v741_v13 = vmul.f32 %v5196_v32, %v5196_v32  ;;  %3618 = vmatmul.msk.f32.gmra.mxu1 %vm400_vm1, %v5196_v32 }
 0x202   :  { %3666 = vmatmul.msk.f32.gmra.mxu2 %vm400_vm1, %v741_v13 }
 0x203   :  { %3868 = vrot.lane.b32.xlu2 %v3867_v49, %s4079_s25 }
 0x205   :  { %2237 = vxpose.xlu1.b32.cont [4/8] (short) (narrow) %v2217_v34, 32  ;;  %v5204_v4 = vpop.permute.xlu2 %3843 }
 0x207   :  { %v5206_v38 = vpop.f32.mrf.mxu0 }
 0x208   :  { %v742_v16 = vmul.f32 %v5206_v38, %v5206_v38  ;;  %3619 = vmatmul.msk.f32.gmra.mxu1 %vm400_vm1, %v5206_v38 }
 0x20a   :  { %3667 = vmatmul.msk.f32.gmra.mxu2 %vm400_vm1, %v742_v16 }
 0x20b   :  { %3873 = vrot.lane.b32.xlu2 %v3872_v46, %s4079_s25 }
 0x20d   :  { %2238 = vxpose.xlu1.b32.cont [5/8] (short) (narrow) %v2219_v52, 32  ;;  %v5215_v63 = vpop.permute.xlu2 %3853 }
 0x20f   :  { %v5213_v8 = vpop.f32.mrf.mxu0 }
 0x210   :  { %v743_v60 = vmul.f32 %v5213_v8, %v5213_v8  ;;  %3620 = vmatmul.msk.f32.gmra.mxu1 %vm400_vm1, %v5213_v8 }
 0x212   :  { %3668 = vmatmul.msk.f32.gmra.mxu2 %vm400_vm1, %v743_v60 }
 0x215   :  { %2239 = vxpose.xlu1.b32.cont [6/8] (short) (narrow) %v2221_v2, 32  ;;  %v2474_v6 = vpop.permute.xlu2 %2473 }
 0x217   :  { %v5222_v3 = vpop.f32.mrf.mxu0  ;;  %v2223_v9 = vpop.permute.xlu1 %2222 }
 0x218   :  { %v744_v50 = vmul.f32 %v5222_v3, %v5222_v3  ;;  %3621 = vmatmul.msk.f32.gmra.mxu1 %vm400_vm1, %v5222_v3 }
 0x21a   :  { %3669 = vmatmul.msk.f32.gmra.mxu2 %vm400_vm1, %v744_v50 }
 0x21d   :  { %2240 = vxpose.xlu1.b32.cont [7/8] (short) (narrow) %v2223_v9, 32  ;;  %v5235_v34 = vpop.f32.mrf.mxu1  ;;  %v2476_v40 = vpop.permute.xlu2 %2475 }
 0x21f   :  { %v5229_v58 = vpop.f32.mrf.mxu0 }
 0x220   :  { %v745_v53 = vmul.f32 %v5229_v58, %v5229_v58  ;;  %3622 = vmatmul.msk.f32.gmra.mxu1 %vm400_vm1, %v5229_v58 }
 0x222   :  { %3670 = vmatmul.msk.f32.gmra.mxu2 %vm400_vm1, %v745_v53 }
 0x225   :  { %2241 = vxpose.xlu1.b32.end [8/8] (short) (narrow) %v2225_v33, 32  ;;  %v987_v19 = vpop.f32.mrf.mxu2  ;;  %v5238_v45 = vpop.f32.mrf.mxu1 }
 0x226   :  { %v2478_v54 = vpop.permute.xlu2 %2477  ;;  %v1084_v2 = vmul.f32 %v5238_v45, %v5238_v45 }
 0x22d   :  { %v5242_v25 = vpop.f32.mrf.mxu1 }
 0x22e   :  { %v2480_v13 = vpop.permute.xlu2 %2479  ;;  %v1085_v16 = vmul.f32 %v5242_v25, %v5242_v25 }
 0x231   :  { %2497 = vxpose.xlu2.b32.start [1/8] (short) (narrow) %v2474_v6, 32 }
 0x232   :  { %v990_v49 = vpop.f32.mrf.mxu2 }
 0x233   :  { %v1132_v26 = vsub.f32 %v990_v49, %v1084_v2 }
 0x235   :  { %v1181_v46 = vadd.f32 %v4962_v44, %v1132_v26 }
 0x236   :  { %v5250_v6 = vpop.f32.mrf.mxu1  ;;  %v2482_v49 = vpop.permute.xlu2 %2481 }
 0x237   :  { %v1277_v33 = vadd.f32 1e-05, %v1181_v46 }
 0x239   :  { %2498 = vxpose.xlu2.b32.cont [2/8] (short) (narrow) %v2476_v40, 32  ;;  %3989 = vrsqrt.f32 %v1277_v33  ;;  %v1086_v40 = vmul.f32 %v5250_v6, %v5250_v6  ;;  %vm1556_vm5 = vweird.f32 %v1277_v33 }
 0x23a   :  { %v993_v60 = vpop.f32.mrf.mxu2 }
 0x23b   :  { %v1133_v50 = vsub.f32 %v993_v60, %v1085_v16 }
 0x23d   :  { %v1182_v9 = vadd.f32 %v4962_v44, %v1133_v50 }
 0x23f   :  { %v3990_v53 = vpop.eup %3989  ;;  %v5258_v26 = vadd.f32 1e-05, %v1182_v9  ;;  %v5260_v37 = vpop.f32.mrf.mxu1 }
 0x240   :  { %v1551_v46 = vmul.f32 %v3990_v53, %v1277_v33  ;;  %v1087_v23 = vmul.f32 %v5260_v37, %v5260_v37  ;;  %vm1557_vm6 = vweird.f32 %v3990_v53 }
 0x241   :  { %2499 = vxpose.xlu2.b32.cont [3/8] (short) (narrow) %v2478_v54, 32  ;;  %v1083_v54 = vmul.f32 %v5235_v34, %v5235_v34  ;;  %3991 = vrsqrt.f32 %v5258_v26  ;;  %vm1558_vm7 = vmor %vm1556_vm5, %vm1557_vm6  ;;  %vm1566_vm8 = vweird.f32 %v5258_v26 }
 0x242   :  { %v1983_v52 = vpop.trf.xlu0 }
 0x243   :  { %3679 = vmatmul.msk.f32.vlgmr.msra.gmra.mxu3 %vm2023_vm4, %v1983_v52  ;;  %v996_v52 = vpop.f32.mrf.mxu2  ;;  %v1131_v60 = vsub.f32 %v987_v19, %v1083_v54 }
 0x244   :  { %2485 = vrot.lane.b32.xlu0 %v5161_v39, %s4078_s14  ;;  %v1134_v16 = vsub.f32 %v996_v52, %v1086_v40 }
 0x245   :  { %v1180_v9 = vadd.f32 %v4962_v44, %v1131_v60 }
 0x246   :  { %v1183_v50 = vadd.f32 %v4962_v44, %v1134_v16  ;;  %v2484_v16 = vpop.permute.xlu2 %2483 }
 0x247   :  { %v5271_v54 = vpop.eup %3991 }
 0x248   :  { %v5264_v39 = vadd.f32 1e-05, %v1183_v50  ;;  %v5275_v50 = vpop.f32.mrf.mxu1  ;;  %v1561_v60 = vmul.f32 %v5271_v54, %v5258_v26  ;;  %vm1567_vm9 = vweird.f32 %v5271_v54 }
 0x249   :  { %2500 = vxpose.xlu2.b32.cont [4/8] (short) (narrow) %v2480_v13, 32  ;;  %v1552_v13 = vmul.f32 %v3990_v53, %v1551_v46  ;;  %v5273_v46 = vadd.f32 1e-05, %v1180_v9  ;;  %v1088_v33 = vmul.f32 %v5275_v50, %v5275_v50  ;;  %vm1568_vm12 = vmor %vm1566_vm8, %vm1567_vm9 }
 0x24a   :  { %v1984_v2 = vpop.trf.xlu0  ;;  %3993 = vrsqrt.f32 %v5264_v39  ;;  %vm1576_vm10 = vweird.f32 %v5264_v39 }
 0x24b   :  { %3680 = vmatmul.msk.f32.gmra.mxu3 %vm2023_vm4, %v1984_v2  ;;  %v1553_v40 = vmul.f32 0.5, %v1552_v13  ;;  %v999_v19 = vpop.f32.mrf.mxu2  ;;  %3995 = vrsqrt.f32 %v5273_v46  ;;  %vm1546_vm3 = vweird.f32 %v5273_v46 }
 0x24c   :  { %v1135_v52 = vsub.f32 %v999_v19, %v1087_v23  ;;  %v1229_v19 = vsub.f32 %v4954_v41, %v5238_v45 }
 0x24e   :  { %v1184_v31 = vadd.f32 %v4962_v44, %v1135_v52 }
 0x250   :  { %v1280_v13 = vadd.f32 1e-05, %v1184_v31 }
 0x251   :  { %2501 = vxpose.xlu2.b32.cont [5/8] (short) (narrow) %v2482_v49, 32  ;;  %v1554_v49 = vsub.f32 1.5, %v1553_v40  ;;  %v1562_v40 = vmul.f32 %v5271_v54, %v1561_v60 }
 0x252   :  { %v1985_v2 = vpop.trf.xlu0  ;;  %3997 = vrsqrt.f32 %v1280_v13  ;;  %v5294_v45 = vpop.f32.mrf.mxu1  ;;  %vm1586_vm14 = vweird.f32 %v1280_v13 }
 0x253   :  { %3681 = vmatmul.msk.f32.gmra.mxu3 %vm2023_vm4, %v1985_v2  ;;  %v5280_v2 = vpop.eup %3993  ;;  %v1555_v52 = vmul.f32 %v3990_v53, %v1554_v49  ;;  %v1563_v56 = vmul.f32 0.5, %v1562_v40 }
 0x254   :  { %v1571_v23 = vmul.f32 %v5280_v2, %v5264_v39  ;;  %v5292_v30 = vpop.eup %3995  ;;  %vm1577_vm11 = vweird.f32 %v5280_v2 }
 0x255   :  { %v1559_v35 = vsel %vm1558_vm7, %v3990_v53, %v1555_v52  ;;  %v1541_v60 = vmul.f32 %v5292_v30, %v5273_v46  ;;  %v1564_v49 = vsub.f32 1.5, %v1563_v56  ;;  %vm5324_vm13 = vmor %vm1576_vm10, %vm1577_vm11  ;;  %vm1547_vm5 = vweird.f32 %v5292_v30 }
 0x256   :  { %v1572_v31 = vmul.f32 %v5280_v2, %v1571_v23  ;;  %v1805_v51 = vmul.f32 %v1559_v35, %v1229_v19  ;;  %vm5366_vm6 = vmor %vm1546_vm3, %vm1547_vm5 }
 0x257   :  { %v1542_v26 = vmul.f32 %v5292_v30, %v1541_v60  ;;  %v1565_v40 = vmul.f32 %v5271_v54, %v1564_v49 }
 0x258   :  { %v1573_v41 = vmul.f32 0.5, %v1572_v31  ;;  %v1854_v11 = vmul.f32 %v5032_v7, %v1805_v51  ;;  %v1089_v51 = vmul.f32 %v5294_v45, %v5294_v45 }
 0x259   :  { %2502 = vxpose.xlu2.b32.cont [6/8] (short) (narrow) %v2484_v16, 32  ;;  %v1002_v16 = vpop.f32.mrf.mxu2 }
 0x25a   :  { %v1986_v9 = vpop.trf.xlu0  ;;  %v1136_v61 = vsub.f32 %v1002_v16, %v1088_v33  ;;  %v5305_v35 = vadd.f32 %v5047_v29, %v1854_v11  ;;  %v1574_v23 = vsub.f32 1.5, %v1573_v41  ;;  %v1230_v11 = vsub.f32 %v4997_v24, %v5242_v25  ;;  %v5320_v33 = vpop.f32.mrf.mxu1 }
 0x25b   :  { %3682 = vmatmul.msk.f32.gmra.mxu3 %vm2023_vm4, %v1986_v9  ;;  %v5296_v9 = vpop.eup %3997  ;;  %v1569_v24 = vsel %vm1568_vm12, %v5271_v54, %v1565_v40  ;;  %v1231_v25 = vsub.f32 %v5042_v59, %v5250_v6  ;;  %v1090_v54 = vmul.f32 %v5320_v33, %v5320_v33 }
 0x25c   :  { %v1581_v10 = vmul.f32 %v5296_v9, %v1280_v13  ;;  %v1185_v53 = vadd.f32 %v4962_v44, %v1136_v61  ;;  %2738 = vrot.lane.b32.xlu0 %v5305_v35, %s4078_s14  ;;  %v1575_v31 = vmul.f32 %v5280_v2, %v1574_v23  ;;  %v1806_v60 = vmul.f32 %v1569_v24, %v1230_v11 }
 0x25d   :  { %vm1587_vm15 = vweird.f32 %v5296_v9 }
 0x25e   :  { %v1582_v19 = vmul.f32 %v5296_v9, %v1581_v10  ;;  %v5317_v56 = vadd.f32 1e-05, %v1185_v53  ;;  %v1543_v53 = vmul.f32 0.5, %v1542_v26  ;;  %v1579_v49 = vsel %vm5324_vm13, %v5280_v2, %v1575_v31  ;;  %vm5341_vm2 = vmor %vm1586_vm14, %vm1587_vm15 }
 0x260   :  { %v1583_v61 = vmul.f32 0.5, %v1582_v19  ;;  %3999 = vrsqrt.f32 %v5317_v56  ;;  %v1855_v19 = vmul.f32 %v5032_v7, %v1806_v60  ;;  %v1228_v60 = vsub.f32 %v4915_v22, %v5235_v34 }
 0x261   :  { %v1005_v10 = vpop.f32.mrf.mxu2  ;;  %vm1596_vm10 = vweird.f32 %v5317_v56 }
 0x262   :  { %v1137_v52 = vsub.f32 %v1005_v10, %v1089_v51  ;;  %v1584_v16 = vsub.f32 1.5, %v1583_v61  ;;  %v5346_v13 = vadd.f32 %v5047_v29, %v1855_v19  ;;  %v1807_v51 = vmul.f32 %v1579_v49, %v1231_v25  ;;  %v5348_v2 = vpop.f32.mrf.mxu1 }
 0x263   :  { %v1544_v61 = vsub.f32 1.5, %v1543_v53  ;;  %v1232_v10 = vsub.f32 %v5077_v5, %v5260_v37  ;;  %v1091_v25 = vmul.f32 %v5348_v2, %v5348_v2 }
 0x264   :  { %v1186_v41 = vadd.f32 %v4962_v44, %v1137_v52  ;;  %v1585_v59 = vmul.f32 %v5296_v9, %v1584_v16  ;;  %2740 = vrot.lane.b32.xlu0 %v5346_v13, %s4078_s14  ;;  %v1856_v52 = vmul.f32 %v5032_v7, %v1807_v51 }
 0x265   :  { %v1545_v5 = vmul.f32 %v5292_v30, %v1544_v61 }
 0x266   :  { %v1282_v23 = vadd.f32 1e-05, %v1186_v41  ;;  %v5350_v26 = vpop.eup %3999  ;;  %v1589_v31 = vsel %vm5341_vm2, %v5296_v9, %v1585_v59  ;;  %v5375_v53 = vadd.f32 %v5047_v29, %v1856_v52 }
 0x267   :  { %v1591_v16 = vmul.f32 %v5350_v26, %v5317_v56  ;;  %v1808_v41 = vmul.f32 %v1589_v31, %v1232_v10  ;;  %v1549_v6 = vsel %vm5366_vm6, %v5292_v30, %v1545_v5  ;;  %vm1597_vm11 = vweird.f32 %v5350_v26 }
 0x268   :  { %4001 = vrsqrt.f32 %v1282_v23  ;;  %vm1606_vm7 = vweird.f32 %v1282_v23  ;;  %vm5416_vm14 = vmor %vm1596_vm10, %vm1597_vm11 }
 0x269   :  { %v1008_v11 = vpop.f32.mrf.mxu2  ;;  %v1592_v49 = vmul.f32 %v5350_v26, %v1591_v16  ;;  %v1857_v22 = vmul.f32 %v5032_v7, %v1808_v41 }
 0x26a   :  { %v1138_v40 = vsub.f32 %v1008_v11, %v1090_v54  ;;  %v5378_v59 = vpop.f32.mrf.mxu1  ;;  %v1804_v11 = vmul.f32 %v1549_v6, %v1228_v60 }
 0x26b   :  { %v1593_v10 = vmul.f32 0.5, %v1592_v49  ;;  %v1092_v16 = vmul.f32 %v5378_v59, %v5378_v59 }
 0x26c   :  { %v1187_v39 = vadd.f32 %v4962_v44, %v1138_v40  ;;  %2742 = vrot.lane.b32.xlu0 %v5375_v53, %s4078_s14 }
 0x26d   :  { %v1594_v41 = vsub.f32 1.5, %v1593_v10 }
 0x26e   :  { %v4002_v37 = vpop.eup %4001  ;;  %v1283_v46 = vadd.f32 1e-05, %v1187_v39  ;;  %v1234_v39 = vsub.f32 %v5138_v0, %v5294_v45 }
 0x26f   :  { %v1601_v9 = vmul.f32 %v4002_v37, %v1282_v23  ;;  %vm1607_vm8 = vweird.f32 %v4002_v37  ;;  %v5398_v23 = vadd.f32 %v5047_v29, %v1857_v22 }
 0x270   :  { %4003 = vrsqrt.f32 %v1283_v46  ;;  %vm5389_vm9 = vmor %vm1606_vm7, %vm1607_vm8  ;;  %vm1616_vm12 = vweird.f32 %v1283_v46 }
 0x271   :  { %v1602_v54 = vmul.f32 %v4002_v37, %v1601_v9  ;;  %v1011_v19 = vpop.f32.mrf.mxu2 }
 0x272   :  { %v1139_v51 = vsub.f32 %v1011_v19, %v1091_v25  ;;  %v1853_v25 = vmul.f32 %v5032_v7, %v1804_v11  ;;  %v1235_v11 = vsub.f32 %v5152_v47, %v5320_v33 }
 0x273   :  { %v1603_v34 = vmul.f32 0.5, %v1602_v54 }
 0x274   :  { %v1188_v61 = vadd.f32 %v4962_v44, %v1139_v51  ;;  %2744 = vrot.lane.b32.xlu0 %v5398_v23, %s4078_s14  ;;  %v5412_v51 = vadd.f32 %v5047_v29, %v1853_v25 }
 0x275   :  { %v1604_v40 = vsub.f32 1.5, %v1603_v34  ;;  %v5402_v9 = vpop.f32.mrf.mxu1 }
 0x276   :  { %v4004_v31 = vpop.eup %4003  ;;  %v5393_v52 = vadd.f32 1e-05, %v1188_v61 }
 0x277   :  { %v1611_v5 = vmul.f32 %v4004_v31, %v1283_v46  ;;  %v1605_v24 = vmul.f32 %v4002_v37, %v1604_v40  ;;  %vm1617_vm13 = vweird.f32 %v4004_v31  ;;  %v1093_v40 = vmul.f32 %v5402_v9, %v5402_v9 }
 0x278   :  { %4005 = vrsqrt.f32 %v5393_v52  ;;  %vm5422_vm15 = vmor %vm1616_vm12, %vm1617_vm13  ;;  %vm1626_vm2 = vweird.f32 %v5393_v52 }
 0x279   :  { %v1612_v0 = vmul.f32 %v4004_v31, %v1611_v5  ;;  %v1014_v45 = vpop.f32.mrf.mxu2  ;;  %v1609_v60 = vsel %vm5389_vm9, %v4002_v37, %v1605_v24  ;;  %v1595_v37 = vmul.f32 %v5350_v26, %v1594_v41 }
 0x27a   :  { %v1140_v49 = vsub.f32 %v1014_v45, %v1092_v16  ;;  %v1810_v54 = vmul.f32 %v1609_v60, %v1234_v39  ;;  %v1233_v16 = vsub.f32 %v5101_v21, %v5275_v50 }
 0x27b   :  { %v1613_v19 = vmul.f32 0.5, %v1612_v0  ;;  %v1599_v33 = vsel %vm5416_vm14, %v5350_v26, %v1595_v37 }
 0x27c   :  { %v1189_v6 = vadd.f32 %v4962_v44, %v1140_v49  ;;  %v1859_v22 = vmul.f32 %v5032_v7, %v1810_v54  ;;  %v1809_v60 = vmul.f32 %v1599_v33, %v1233_v16 }
 0x27d   :  { %v1614_v34 = vsub.f32 1.5, %v1613_v19  ;;  %v5444_v41 = vpop.f32.mrf.mxu1 }
 0x27e   :  { %v4006_v61 = vpop.eup %4005  ;;  %v5426_v10 = vadd.f32 1e-05, %v1189_v6  ;;  %v5437_v47 = vadd.f32 %v5047_v29, %v1859_v22  ;;  %v1858_v37 = vmul.f32 %v5032_v7, %v1809_v60 }
 0x27f   :  { %v1615_v39 = vmul.f32 %v4004_v31, %v1614_v34  ;;  %v1621_v30 = vmul.f32 %v4006_v61, %v5393_v52  ;;  %2736 = vrot.lane.b32.xlu1 %v5412_v51, %s4078_s14  ;;  %vm1627_vm3 = vweird.f32 %v4006_v61 }
 0x280   :  { %4007 = vrsqrt.f32 %v5426_v10  ;;  %2748 = vrot.lane.b32.xlu0 %v5437_v47, %s4078_s14  ;;  %vm1628_vm5 = vmor %vm1626_vm2, %vm1627_vm3  ;;  %v5472_v16 = vadd.f32 %v5047_v29, %v1858_v37  ;;  %vm1636_vm6 = vweird.f32 %v5426_v10 }
 0x281   :  { %v1619_v5 = vsel %vm5422_vm15, %v4004_v31, %v1615_v39  ;;  %v1622_v24 = vmul.f32 %v4006_v61, %v1621_v30  ;;  %v1017_v25 = vpop.f32.mrf.mxu2  ;;  %v1094_v31 = vmul.f32 %v5444_v41, %v5444_v41  ;;  %v1236_v39 = vsub.f32 %v5166_v62, %v5348_v2 }
 0x282   :  { %v1141_v21 = vsub.f32 %v1017_v25, %v1093_v40  ;;  %v1811_v50 = vmul.f32 %v1619_v5, %v1235_v11 }
 0x283   :  { %v1623_v49 = vmul.f32 0.5, %v1622_v24 }
 0x284   :  { %v1190_v0 = vadd.f32 %v4962_v44, %v1141_v21  ;;  %v1860_v45 = vmul.f32 %v5032_v7, %v1811_v50  ;;  %v3887_v21 = vpack.i.bf16 %v5346_v13, %v5375_v53  ;;  %v3882_v50 = vpack.i.bf16 %v5398_v23, %v5472_v16 }
 0x285   :  { %v1624_v56 = vsub.f32 1.5, %v1623_v49  ;;  %v5463_v46 = vpop.f32.mrf.mxu1 }
 0x286   :  { %v4008_v54 = vpop.eup %4007  ;;  %v5450_v26 = vadd.f32 1e-05, %v1190_v0  ;;  %v5455_v19 = vadd.f32 %v5047_v29, %v1860_v45  ;;  %v1095_v25 = vmul.f32 %v5463_v46, %v5463_v46 }
 0x287   :  { %v1631_v6 = vmul.f32 %v4008_v54, %v5426_v10  ;;  %v1625_v33 = vmul.f32 %v4006_v61, %v1624_v56  ;;  %vm1637_vm7 = vweird.f32 %v4008_v54 }
 0x288   :  { %4009 = vrsqrt.f32 %v5450_v26  ;;  %v3877_v22 = vpack.i.bf16 %v5437_v47, %v5455_v19  ;;  %2750 = vrot.lane.b32.xlu0 %v5455_v19, %s4078_s14  ;;  %vm1638_vm8 = vmor %vm1636_vm6, %vm1637_vm7  ;;  %vm1646_vm9 = vweird.f32 %v5450_v26 }
 0x289   :  { %v1632_v34 = vmul.f32 %v4008_v54, %v1631_v6  ;;  %v1020_v11 = vpop.f32.mrf.mxu2  ;;  %v1629_v2 = vsel %vm1628_vm5, %v4006_v61, %v1625_v33  ;;  %v1237_v61 = vsub.f32 %v5176_v12, %v5378_v59 }
 0x28a   :  { %3878 = vrot.lane.b32.xlu1 %v3877_v22, %s4079_s25  ;;  %v1142_v40 = vsub.f32 %v1020_v11, %v1094_v31  ;;  %v1812_v0 = vmul.f32 %v1629_v2, %v1236_v39  ;;  %v3892_v39 = vpack.i.bf16 %v5412_v51, %v5305_v35 }
 0x28b   :  { %v1633_v52 = vmul.f32 0.5, %v1632_v34 }
 0x28c   :  { %v1191_v30 = vadd.f32 %v4962_v44, %v1142_v40  ;;  %v1861_v22 = vmul.f32 %v5032_v7, %v1812_v0  ;;  %v1238_v0 = vsub.f32 %v5186_v55, %v5402_v9 }
 0x28d   :  { %v1634_v45 = vsub.f32 1.5, %v1633_v52  ;;  %v5482_v31 = vpop.f32.mrf.mxu1 }
 0x28e   :  { %v4010_v5 = vpop.eup %4009  ;;  %v1287_v24 = vadd.f32 1e-05, %v1191_v30  ;;  %v1096_v40 = vmul.f32 %v5482_v31, %v5482_v31  ;;  %v5495_v30 = vadd.f32 %v5047_v29, %v1861_v22 }
 0x28f   :  { %v1641_v62 = vmul.f32 %v4010_v5, %v5450_v26  ;;  %v1635_v10 = vmul.f32 %v4008_v54, %v1634_v45  ;;  %vm1647_vm10 = vweird.f32 %v4010_v5 }
 0x290   :  { %4011 = vrsqrt.f32 %v1287_v24  ;;  %3883 = vrot.lane.b32.xlu0 %v3882_v50, %s4079_s25  ;;  %6371 = vst [vmem:[#allocation16_spill] sm:$0xff] %v5495_v30  ;;  %vm1656_vm11 = vweird.f32 %v1287_v24  ;;  %vm1648_vm13 = vmor %vm1646_vm9, %vm1647_vm10 }
 0x291   :  { %v1642_v60 = vmul.f32 %v4010_v5, %v1641_v62  ;;  %v1023_v49 = vpop.f32.mrf.mxu2  ;;  %v1639_v33 = vsel %vm1638_vm8, %v4008_v54, %v1635_v10 }
 0x292   :  { %3888 = vrot.lane.b32.xlu1 %v3887_v21, %s4079_s25  ;;  %v1143_v6 = vsub.f32 %v1023_v49, %v1095_v25  ;;  %v1813_v12 = vmul.f32 %v1639_v33, %v1237_v61 }
 0x293   :  { %v1643_v56 = vmul.f32 0.5, %v1642_v60 }
 0x294   :  { %v1192_v37 = vadd.f32 %v4962_v44, %v1143_v6  ;;  %v1862_v54 = vmul.f32 %v5032_v7, %v1813_v12  ;;  %v1239_v6 = vsub.f32 %v5196_v32, %v5444_v41 }
 0x295   :  { %v1644_v59 = vsub.f32 1.5, %v1643_v56  ;;  %v5498_v50 = vpop.f32.mrf.mxu1 }
 0x296   :  { %v4012_v34 = vpop.eup %4011  ;;  %v1288_v11 = vadd.f32 1e-05, %v1192_v37  ;;  %v5512_v61 = vadd.f32 %v5047_v29, %v1862_v54 }
 0x297   :  { %v1651_v52 = vmul.f32 %v4012_v34, %v1287_v24  ;;  %vm1657_vm12 = vweird.f32 %v4012_v34  ;;  %v1645_v60 = vmul.f32 %v4010_v5, %v1644_v59  ;;  %v1097_v24 = vmul.f32 %v5498_v50, %v5498_v50 }
 0x298   :  { %4013 = vrsqrt.f32 %v1288_v11  ;;  %2999 = vrot.lane.b32.xlu0 %v5495_v30, %s4078_s14  ;;  %vm1658_vm14 = vmor %vm1656_vm11, %vm1657_vm12  ;;  %6372 = vst [vmem:[#allocation17_spill] sm:$0xff] %v5512_v61  ;;  %vm1666_vm15 = vweird.f32 %v1288_v11 }
 0x299   :  { %v1652_v25 = vmul.f32 %v4012_v34, %v1651_v52  ;;  %v1026_v21 = vpop.f32.mrf.mxu2  ;;  %v1649_v55 = vsel %vm1648_vm13, %v4010_v5, %v1645_v60  ;;  %v5522_v5 = vld [vmem:[%s6296_s3] ss:$0 sm:$0xff] }
 0x29a   :  { %3893 = vrot.lane.b32.xlu1 %v3892_v39, %s4079_s25  ;;  %v1144_v62 = vsub.f32 %v1026_v21, %v1096_v40  ;;  %v1814_v9 = vmul.f32 %v1649_v55, %v1238_v0 }
 0x29b   :  { %v1653_v2 = vmul.f32 0.5, %v1652_v25 }
 0x29c   :  { %v1193_v26 = vadd.f32 %v4962_v44, %v1144_v62  ;;  %v1863_v33 = vmul.f32 %v5032_v7, %v1814_v9 }
 0x29d   :  { %v1654_v45 = vsub.f32 1.5, %v1653_v2  ;;  %v5516_v52 = vpop.f32.mrf.mxu1 }
 0x29e   :  { %v4014_v49 = vpop.eup %4013  ;;  %v1289_v22 = vadd.f32 1e-05, %v1193_v26  ;;  %v5527_v25 = vadd.f32 %v5047_v29, %v1863_v33  ;;  %v1098_v2 = vmul.f32 %v5516_v52, %v5516_v52 }
 0x29f   :  { %v1661_v37 = vmul.f32 %v4014_v49, %v1288_v11  ;;  %v1655_v56 = vmul.f32 %v4012_v34, %v1654_v45  ;;  %vm1667_vm2 = vweird.f32 %v4014_v49  ;;  %v1240_v11 = vsub.f32 %v5206_v38, %v5463_v46 }
 0x2a0   :  { %4015 = vrsqrt.f32 %v1289_v22  ;;  %3001 = vrot.lane.b32.xlu0 %v5512_v61, %s4078_s14  ;;  %6373 = vst [vmem:[#allocation18_spill] sm:$0xff] %v5527_v25  ;;  %vm1668_vm3 = vmor %vm1666_vm15, %vm1667_vm2  ;;  %vm1676_vm5 = vweird.f32 %v1289_v22 }
 0x2a1   :  { %v1662_v44 = vmul.f32 %v4014_v49, %v1661_v37  ;;  %v1029_v10 = vpop.f32.mrf.mxu2  ;;  %v1659_v40 = vsel %vm1658_vm14, %v4012_v34, %v1655_v56 }
 0x2a2   :  { %v1145_v39 = vsub.f32 %v1029_v10, %v1097_v24  ;;  %v1815_v32 = vmul.f32 %v1659_v40, %v1239_v6  ;;  %3003 = vrot.lane.b32.xlu1 %v5527_v25, %s4078_s14 }
 0x2a3   :  { %v1663_v41 = vmul.f32 0.5, %v1662_v44  ;;  %v1241_v44 = vsub.f32 %v5213_v8, %v5482_v31  ;;  %v5552_v8 = vld [vmem:[%s6296_s3 + $0x1] ss:$0 sm:$0xff]  ;;  %v2488_v31 = vpop.permute.xlu2 %2487 }
 0x2a4   :  { %v1194_v12 = vadd.f32 %v5522_v5, %v1145_v39  ;;  %v1864_v34 = vmul.f32 %v5032_v7, %v1815_v32 }
 0x2a5   :  { %v1664_v59 = vsub.f32 1.5, %v1663_v41 }
 0x2a6   :  { %v4016_v21 = vpop.eup %4015  ;;  %v1290_v62 = vadd.f32 1e-05, %v1194_v12  ;;  %v5534_v54 = vadd.f32 %v5047_v29, %v1864_v34 }
 0x2a7   :  { %v1671_v0 = vmul.f32 %v4016_v21, %v1289_v22  ;;  %v1665_v26 = vmul.f32 %v4014_v49, %v1664_v59  ;;  %vm1677_vm6 = vweird.f32 %v4016_v21  ;;  %v1242_v59 = vsub.f32 %v5222_v3, %v5498_v50 }
 0x2a8   :  { %6374 = vst [vmem:[#allocation19_spill] sm:$0xff] %v5534_v54  ;;  %4017 = vrsqrt.f32 %v1290_v62  ;;  %3005 = vrot.lane.b32.xlu0 %v5534_v54, %s4078_s14  ;;  %vm1678_vm7 = vmor %vm1676_vm5, %vm1677_vm6  ;;  %vm1686_vm8 = vweird.f32 %v1290_v62 }
 0x2a9   :  { %v1672_v45 = vmul.f32 %v4016_v21, %v1671_v0  ;;  %v1032_v60 = vpop.f32.mrf.mxu2  ;;  %v1669_v6 = vsel %vm1668_vm3, %v4014_v49, %v1665_v26 }
 0x2aa   :  { %v1146_v24 = vsub.f32 %v1032_v60, %v1098_v2  ;;  %v1816_v38 = vmul.f32 %v1669_v6, %v1240_v11 }
 0x2ab   :  { %v1673_v46 = vmul.f32 0.5, %v1672_v45  ;;  %v5567_v45 = vpop.permute.xlu1 %3838 }
 0x2ac   :  { %v1195_v37 = vadd.f32 %v5522_v5, %v1146_v24  ;;  %v1865_v56 = vmul.f32 %v5032_v7, %v1816_v38  ;;  %v1243_v38 = vsub.f32 %v5229_v58, %v5516_v52  ;;  %v5589_v52 = vld [vmem:[%s6298_s5 + $0x10] sm:$0xff] }
 0x2ad   :  { %v1674_v55 = vsub.f32 1.5, %v1673_v46 }
 0x2ae   :  { %v4018_v9 = vpop.eup %4017  ;;  %v1291_v10 = vadd.f32 1e-05, %v1195_v37  ;;  %v5545_v49 = vadd.f32 %v5047_v29, %v1865_v56 }
 0x2af   :  { %v1681_v40 = vmul.f32 %v4018_v9, %v1290_v62  ;;  %v1675_v32 = vmul.f32 %v4016_v21, %v1674_v55  ;;  %vm1687_vm9 = vweird.f32 %v4018_v9  ;;  %v5583_v55 = vld [vmem:[%s6298_s5 + $0x18] sm:$0xff] }
 0x2b0   :  { %6375 = vst [vmem:[#allocation20_spill] sm:$0xff] %v5545_v49  ;;  %4019 = vrsqrt.f32 %v1291_v10  ;;  %3007 = vrot.lane.b32.xlu1 %v5545_v49, %s4078_s14  ;;  %vm1688_vm10 = vmor %vm1686_vm8, %vm1687_vm9  ;;  %vm1696_vm11 = vweird.f32 %v1291_v10  ;;  %2691 = vmatpush.msrb.mxu0 %v5583_v55 }
 0x2b1   :  { %v1682_v22 = vmul.f32 %v4018_v9, %v1681_v40  ;;  %v1679_v7 = vsel %vm1678_vm7, %v4016_v21, %v1675_v32  ;;  %v5560_v21 = vld [vmem:[%s6296_s3 + $0x2] ss:$0 sm:$0xff]  ;;  %v5598_v40 = vld [vmem:[%s6298_s5 + $0x8] sm:$0xff] }
 0x2b2   :  { %v1817_v41 = vmul.f32 %v1679_v7, %v1241_v44  ;;  %2692 = vmatpush.msrb.mxu0 %v5589_v52  ;;  %v5607_v32 = vld [vmem:[%s6298_s5] sm:$0xff] }
 0x2b3   :  { %v1683_v33 = vmul.f32 0.5, %v1682_v22  ;;  %v5592_v44 = vpop.permute.xlu1 %3848 }
 0x2b4   :  { %v1866_v29 = vmul.f32 %v5552_v8, %v1817_v41  ;;  %2693 = vmatpush.msrb.mxu0 %v5598_v40  ;;  %v3907_v41 = vpack.i.bf16 %v5527_v25, %v5534_v54 }
 0x2b5   :  { %v1684_v12 = vsub.f32 1.5, %v1683_v33 }
 0x2b6   :  { %v2486_v39 = vpop.permute.xlu0 %2485  ;;  %v4020_v34 = vpop.eup %4019  ;;  %v5563_v11 = vadd.f32 %v5560_v21, %v1866_v29  ;;  %2694 = vmatpush.msrb.mxu0 %v5607_v32 }
 0x2b7   :  { %2503 = vxpose.xlu2.b32.cont [7/8] (short) (narrow) %v2486_v39, 32  ;;  %v1691_v62 = vmul.f32 %v4020_v34, %v1291_v10  ;;  %v1685_v2 = vmul.f32 %v4018_v9, %v1684_v12  ;;  %vm1697_vm12 = vweird.f32 %v4020_v34  ;;  %v3912_v12 = vpack.i.bf16 %v5495_v30, %v5512_v61 }
 0x2b8   :  { %6376 = vst [vmem:[#allocation21_spill] sm:$0xff] %v5563_v11  ;;  %3009 = vrot.lane.b32.xlu0 %v5563_v11, %s4078_s14  ;;  %v3897_v60 = vpack.i.bf16 %v5545_v49, %v5563_v11  ;;  %vm1698_vm13 = vmor %vm1696_vm11, %vm1697_vm12 }
 0x2b9   :  { %v1692_v0 = vmul.f32 %v4020_v34, %v1691_v62  ;;  %v1689_v26 = vsel %vm1688_vm10, %v4018_v9, %v1685_v2  ;;  %v5634_v2 = vld [vmem:[%s6297_s4 + $0x10] sm:$0xff] }
 0x2ba   :  { %v1818_v3 = vmul.f32 %v1689_v26, %v1242_v59  ;;  %v5641_v26 = vld [vmem:[%s6297_s4 + $0x8] sm:$0xff] }
 0x2bb   :  { %v1693_v50 = vmul.f32 0.5, %v1692_v0  ;;  %v5617_v33 = vpop.trf.xlu1 }
 0x2bc   :  { %v1867_v6 = vmul.f32 %v5552_v8, %v1818_v3 }
 0x2bd   :  { %v1694_v24 = vsub.f32 1.5, %v1693_v50  ;;  %v67_v50 = vld [vmem:[%s6293_s0 + $0x140] sm:$0xff] }
 0x2be   :  { %v5575_v46 = vadd.f32 %v5560_v21, %v1867_v6  ;;  %3575 = vmatmul.msk.f32.gmra.mxu0 %vm79_vm0, %v67_v50 }
 0x2bf   :  { %2504 = vxpose.xlu2.b32.end [8/8] (short) (narrow) %v2488_v31, 32  ;;  %v1695_v56 = vmul.f32 %v4020_v34, %v1694_v24 }
 0x2c0   :  { %6377 = vst [vmem:[#allocation22_spill] sm:$0xff] %v5575_v46  ;;  %3898 = vrot.lane.b32.xlu0 %v3897_v60, %s4079_s25  ;;  %3011 = vrot.lane.b32.xlu1 %v5575_v46, %s4078_s14  ;;  %v5650_v60 = vld [vmem:[%s6297_s4] sm:$0xff] }
 0x2c1   :  { %v1699_v9 = vsel %vm1698_vm13, %v4020_v34, %v1695_v56  ;;  %v5627_v34 = vld [vmem:[%s6297_s4 + $0x18] sm:$0xff] }
 0x2c2   :  { %v1819_v58 = vmul.f32 %v1699_v9, %v1243_v38  ;;  %v68_v9 = vld [vmem:[%s6293_s0 + $0x148] sm:$0xff] }
 0x2c3   :  { %v5629_v59 = vpop.trf.xlu1 }
 0x2c4   :  { %v1868_v10 = vmul.f32 %v5552_v8, %v1819_v58 }
 0x2c6   :  { %v2053_v37 = vpop.f32.mrf.mxu3  ;;  %v5602_v39 = vadd.f32 %v5560_v21, %v1868_v10  ;;  %3576 = vmatmul.msk.f32.gmra.mxu0 %vm79_vm0, %v68_v9 }
 0x2c7   :  { %v2065_v38 = vmul.f32 %v2053_v37, %v5650_v60  ;;  %v3840_v37 = vunpack.i.l.bf16 %v5567_v45 }
 0x2c8   :  { %6378 = vst [vmem:[#allocation23_spill] sm:$0xff] %v5602_v39  ;;  %3013 = vrot.lane.b32.xlu0 %v5602_v39, %s4078_s14  ;;  %v3902_v7 = vpack.i.bf16 %v5575_v46, %v5602_v39 }
 0x2ca   :  { %3903 = vrot.lane.b32.xlu1 %v3902_v7, %s4079_s25  ;;  %v3845_v7 = vunpack.i.l.bf16 %v5204_v4 }
 0x2cb   :  { %v5657_v56 = vpop.trf.xlu1 }
 0x2ce   :  { %v2056_v22 = vpop.f32.mrf.mxu3  ;;  %v5620_v31 = vpop.permute.xlu0 %2738 }
 0x2cf   :  { %v2066_v6 = vmul.f32 %v2056_v22, %v5641_v26  ;;  %v69_v22 = vld [vmem:[%s6293_s0 + $0x150] sm:$0xff] }
 0x2d0   :  { %3908 = vrot.lane.b32.xlu0 %v3907_v41, %s4079_s25  ;;  %3577 = vmatmul.msk.f32.gmra.mxu0 %vm79_vm0, %v69_v22 }
 0x2d3   :  { %v5675_v10 = vpop.trf.xlu1 }
 0x2d6   :  { %v2059_v29 = vpop.f32.mrf.mxu3  ;;  %v5654_v24 = vpop.permute.xlu0 %2740 }
 0x2d7   :  { %v2067_v3 = vmul.f32 %v2059_v29, %v5634_v2  ;;  %v3846_v29 = vunpack.i.h.bf16 %v5204_v4 }
 0x2d8   :  { %3913 = vrot.lane.b32.xlu0 %v3912_v12, %s4079_s25  ;;  %v70_v12 = vld [vmem:[%s6293_s0 + $0x158] sm:$0xff] }
 0x2d9   :  { %3578 = vmatmul.msk.f32.gmra.mxu0 %vm79_vm0, %v70_v12 }
 0x2de   :  { %v2062_v62 = vpop.f32.mrf.mxu3  ;;  %v5667_v58 = vpop.permute.xlu0 %2742 }
 0x2df   :  { %v2068_v0 = vmul.f32 %v2062_v62, %v5627_v34  ;;  %v3855_v62 = vunpack.i.l.bf16 %v5215_v63 }
 0x2e1   :  { %2097 = vmatpush.msrb.mxu3 %v2068_v0 }
 0x2e3   :  { %2098 = vmatpush.msrb.mxu3 %v2067_v3  ;;  %v3856_v3 = vunpack.i.h.bf16 %v5215_v63  ;;  %v72_v63 = vld [vmem:[%s6293_s0 + $0x168] sm:$0xff] }
 0x2e5   :  { %2099 = vmatpush.msrb.mxu3 %v2066_v6 }
 0x2e6   :  { %v2745_v41 = vpop.permute.xlu0 %2744 }
 0x2e7   :  { %2100 = vmatpush.msrb.mxu3 %v2065_v38 }
 0x2e8   :  { %3683 = vmatmul.msk.f32.vlgmr.msrb.gmra.mxu3 %vm79_vm0, %v4451_v17  ;;  %v3841_v17 = vunpack.i.h.bf16 %v5567_v45  ;;  %v3850_v45 = vunpack.i.l.bf16 %v5592_v44 }
 0x2e9   :  { %2165 = vmatpush.msra.mxu3 %v5583_v55 }
 0x2eb   :  { %2166 = vmatpush.msra.mxu3 %v5589_v52 }
 0x2ed   :  { %2167 = vmatpush.msra.mxu3 %v5598_v40 }
 0x2ef   :  { %2168 = vmatpush.msra.mxu3 %v5607_v32 }
 0x2f0   :  { %3684 = vmatmul.msk.f32.gmra.mxu3 %vm79_vm0, %v4477_v43  ;;  %v3851_v43 = vunpack.i.h.bf16 %v5592_v44 }
 0x2f1   :  { %2310 = vmatpush.msrb.mxu3 %v3840_v37  ;;  %v2737_v4 = vpop.permute.xlu1 %2736 }
 0x2f2   :  { %v5692_v0 = vpop.permute.xlu0 %2748 }
 0x2f3   :  { %2311 = vmatpush.msrb.mxu3 %v3841_v17 }
 0x2f5   :  { %2312 = vmatpush.msrb.mxu3 %v3845_v7  ;;  %v73_v7 = vld [vmem:[%s6293_s0 + $0x170] sm:$0xff] }
 0x2f7   :  { %2313 = vmatpush.msrb.mxu3 %v3846_v29 }
 0x2f8   :  { %3685 = vmatmul.msk.f32.gmra.mxu3 %vm79_vm0, %v4503_v18  ;;  %v71_v18 = vld [vmem:[%s6293_s0 + $0x160] sm:$0xff] }
 0x2f9   :  { %2314 = vmatpush.msrb.mxu3 %v3850_v45  ;;  %3579 = vmatmul.msk.f32.gmra.mxu0 %vm79_vm0, %v71_v18 }
 0x2fa   :  { %v5701_v50 = vpop.permute.xlu0 %2750 }
 0x2fb   :  { %2315 = vmatpush.msrb.mxu3 %v3851_v43 }
 0x2fc   :  { %v3879_v44 = vpop.permute.xlu1 %3878 }
 0x2fd   :  { %2316 = vmatpush.msrb.mxu3 %v3855_v62  ;;  %v3880_v6 = vunpack.i.l.bf16 %v3879_v44  ;;  %v3881_v38 = vunpack.i.h.bf16 %v3879_v44 }
 0x2ff   :  { %2317 = vmatpush.msrb.mxu3 %v3856_v3  ;;  %2836 = vmatpush.msrb.mxu1 %v3880_v6 }
 0x300   :  { %3686 = vmatmul.msk.f32.gmra.mxu3 %vm79_vm0, %v4529_v48  ;;  %2760 = vxpose.xlu1.b32.start [1/8] (short) (narrow) %v2737_v4, 32 }
 0x301   :  { %2837 = vmatpush.msrb.mxu1 %v3881_v38  ;;  %3580 = vmatmul.msk.f32.gmra.mxu0 %vm79_vm0, %v72_v63 }
 0x302   :  { %v3884_v9 = vpop.permute.xlu0 %3883 }
 0x303   :  { %v3885_v37 = vunpack.i.l.bf16 %v3884_v9  ;;  %v3886_v17 = vunpack.i.h.bf16 %v3884_v9 }
 0x304   :  { %v3889_v48 = vpop.permute.xlu1 %3888 }
 0x305   :  { %2838 = vmatpush.msrb.mxu1 %v3885_v37  ;;  %v3890_v22 = vunpack.i.l.bf16 %v3889_v48  ;;  %v3891_v29 = vunpack.i.h.bf16 %v3889_v48 }
 0x307   :  { %2839 = vmatpush.msrb.mxu1 %v3886_v17 }
 0x308   :  { %3687 = vmatmul.msk.f32.gmra.mxu3 %vm79_vm0, %v4548_v20  ;;  %2761 = vxpose.xlu1.b32.cont [2/8] (short) (narrow) %v5620_v31, 32  ;;  %v74_v31 = vld [vmem:[%s6293_s0 + $0x178] sm:$0xff] }
 0x309   :  { %2840 = vmatpush.msrb.mxu1 %v3890_v22  ;;  %3581 = vmatmul.msk.f32.gmra.mxu0 %vm79_vm0, %v73_v7 }
 0x30a   :  { %v3000_v45 = vpop.permute.xlu0 %2999 }
 0x30b   :  { %2841 = vmatpush.msrb.mxu1 %v3891_v29  ;;  %3023 = vxpose.xlu0.b32.start [1/8] (short) (narrow) %v3000_v45, 32 }
 0x30c   :  { %v3894_v20 = vpop.permute.xlu1 %3893 }
 0x30d   :  { %v3895_v43 = vunpack.i.l.bf16 %v3894_v20  ;;  %v3896_v12 = vunpack.i.h.bf16 %v3894_v20 }
 0x30f   :  { %2842 = vmatpush.msrb.mxu1 %v3895_v43 }
 0x310   :  { %3688 = vmatmul.msk.f32.gmra.mxu3 %vm79_vm0, %v4566_v36  ;;  %2762 = vxpose.xlu1.b32.cont [3/8] (short) (narrow) %v5654_v24, 32 }
 0x311   :  { %2843 = vmatpush.msrb.mxu1 %v3896_v12  ;;  %3582 = vmatmul.msk.f32.gmra.mxu0 %vm79_vm0, %v74_v31 }
 0x312   :  { %v3002_v36 = vpop.permute.xlu0 %3001 }
 0x313   :  { %3024 = vxpose.xlu0.b32.cont [2/8] (short) (narrow) %v3002_v36, 32 }
 0x314   :  { %v3004_v62 = vpop.permute.xlu1 %3003 }
 0x318   :  { %3689 = vmatmul.msk.f32.gmra.mxu3 %vm79_vm0, %v4584_v57  ;;  %2763 = vxpose.xlu1.b32.cont [4/8] (short) (narrow) %v5667_v58, 32  ;;  %v5728_v57 = vpop.permute.xlu2 %3858 }
 0x31a   :  { %v3006_v24 = vpop.permute.xlu0 %3005 }
 0x31b   :  { %3025 = vxpose.xlu0.b32.cont [3/8] (short) (narrow) %v3004_v62, 32 }
 0x320   :  { %3690 = vmatmul.msk.f32.gmra.mxu3 %vm79_vm0, %v4606_v14  ;;  %2764 = vxpose.xlu1.b32.cont [5/8] (short) (narrow) %v2745_v41, 32  ;;  %v5730_v6 = vpop.permute.xlu2 %3863 }
 0x322   :  { %v3008_v4 = vpop.permute.xlu1 %3007 }
 0x323   :  { %3026 = vxpose.xlu0.b32.cont [4/8] (short) (narrow) %v3006_v24, 32 }
 0x328   :  { %2746 = vrot.lane.b32.xlu2 %v5472_v16, %s4078_s14  ;;  %v5732_v41 = vpop.permute.xlu2 %3868 }
 0x32a   :  { %v3010_v3 = vpop.permute.xlu0 %3009 }
 0x32b   :  { %3027 = vxpose.xlu0.b32.cont [5/8] (short) (narrow) %v3008_v4, 32 }
 0x330   :  { %v5734_v7 = vpop.permute.xlu2 %3873 }
 0x332   :  { %v3899_v18 = vpop.permute.xlu0 %3898  ;;  %v3012_v44 = vpop.permute.xlu1 %3011 }
 0x333   :  { %3028 = vxpose.xlu0.b32.cont [6/8] (short) (narrow) %v3010_v3, 32  ;;  %v3900_v48 = vunpack.i.l.bf16 %v3899_v18  ;;  %v3901_v9 = vunpack.i.h.bf16 %v3899_v18 }
 0x338   :  { %v5736_v43 = vpop.trf.xlu2 }
 0x33a   :  { %v3014_v58 = vpop.permute.xlu0 %3013 }
 0x33b   :  { %3029 = vxpose.xlu0.b32.cont [7/8] (short) (narrow) %v3012_v44, 32  ;;  %v5740_v31 = vpop.f32.mrf.mxu0 }
 0x33c   :  { %v3904_v14 = vpop.permute.xlu1 %3903  ;;  %v746_v36 = vmul.f32 %v5740_v31, %v5740_v31  ;;  %3623 = vmatmul.msk.f32.gmra.mxu1 %vm400_vm1, %v5740_v31 }
 0x33d   :  { %v3906_v38 = vunpack.i.h.bf16 %v3904_v14  ;;  %v3905_v63 = vunpack.i.l.bf16 %v3904_v14 }
 0x33e   :  { %3671 = vmatmul.msk.f32.gmra.mxu2 %vm400_vm1, %v746_v36 }
 0x33f   :  { %3099 = vmatpush.msra.mxu1 %v3905_v63 }
 0x340   :  { %v5738_v12 = vpop.trf.xlu2 }
 0x341   :  { %3100 = vmatpush.msra.mxu1 %v3906_v38  ;;  %6379 = vst [vmem:[#allocation24_spill] sm:$0xff] %v5738_v12 }
 0x342   :  { %v3909_v37 = vpop.permute.xlu0 %3908 }
 0x343   :  { %v3910_v17 = vunpack.i.l.bf16 %v3909_v37  ;;  %3101 = vmatpush.msra.mxu1 %v3900_v48  ;;  %v3911_v22 = vunpack.i.h.bf16 %v3909_v37  ;;  %3030 = vxpose.xlu0.b32.end [8/8] (short) (narrow) %v3014_v58, 32  ;;  %v5748_v24 = vpop.f32.mrf.mxu0 }
 0x344   :  { %v747_v3 = vmul.f32 %v5748_v24, %v5748_v24  ;;  %3624 = vmatmul.msk.f32.gmra.mxu1 %vm400_vm1, %v5748_v24 }
 0x345   :  { %3102 = vmatpush.msra.mxu1 %v3901_v9 }
 0x346   :  { %3672 = vmatmul.msk.f32.gmra.mxu2 %vm400_vm1, %v747_v3 }
 0x347   :  { %3103 = vmatpush.msra.mxu1 %v3910_v17 }
 0x348   :  { %v5750_v4 = vpop.trf.xlu2 }
 0x349   :  { %3104 = vmatpush.msra.mxu1 %v3911_v22  ;;  %6380 = vst [vmem:[#allocation25_spill] sm:$0xff] %v5750_v4 }
 0x34a   :  { %v3914_v29 = vpop.permute.xlu0 %3913 }
 0x34b   :  { %v3916_v20 = vunpack.i.h.bf16 %v3914_v29  ;;  %v3915_v45 = vunpack.i.l.bf16 %v3914_v29 }
 0x34d   :  { %3105 = vmatpush.msra.mxu1 %v3915_v45  ;;  %v5758_v44 = vpop.f32.mrf.mxu0 }
 0x34e   :  { %v748_v58 = vmul.f32 %v5758_v44, %v5758_v44  ;;  %3625 = vmatmul.msk.f32.gmra.mxu1 %vm400_vm1, %v5758_v44 }
 0x34f   :  { %3106 = vmatpush.msra.mxu1 %v3916_v20 }
 0x350   :  { %v5764_v14 = vpop.trf.xlu2  ;;  %3673 = vmatmul.msk.f32.gmra.mxu2 %vm400_vm1, %v748_v58 }
 0x351   :  { %6381 = vst [vmem:[#allocation26_spill] sm:$0xff] %v5764_v14 }
 0x356   :  { %v5768_v63 = vpop.f32.mrf.mxu0 }
 0x357   :  { %v749_v48 = vmul.f32 %v5768_v63, %v5768_v63  ;;  %3626 = vmatmul.msk.f32.gmra.mxu1 %vm400_vm1, %v5768_v63 }
 0x359   :  { %3674 = vmatmul.msk.f32.gmra.mxu2 %vm400_vm1, %v749_v48 }
 0x36b   :  { %v2102_v62 = vpop.f32.mrf.mxu3 }
 0x36c   :  { %3691 = vmatmul.msk.f32.vlgmr.msra.gmra.mxu3 %vm79_vm0, %v2102_v62 }
 0x373   :  { %v2105_v18 = vpop.f32.mrf.mxu3 }
 0x374   :  { %3692 = vmatmul.msk.f32.gmra.mxu3 %vm79_vm0, %v2105_v18 }
 0x376   :  { %v5776_v17 = vpop.f32.mrf.mxu0 }
 0x377   :  { %v750_v22 = vmul.f32 %v5776_v17, %v5776_v17  ;;  %3627 = vmatmul.msk.f32.gmra.mxu1 %vm400_vm1, %v5776_v17 }
 0x379   :  { %3675 = vmatmul.msk.f32.gmra.mxu2 %vm400_vm1, %v750_v22 }
 0x37b   :  { %v2108_v38 = vpop.f32.mrf.mxu3 }
 0x37c   :  { %3693 = vmatmul.msk.f32.gmra.mxu3 %vm79_vm0, %v2108_v38 }
 0x37e   :  { %v5785_v20 = vpop.f32.mrf.mxu0 }
 0x37f   :  { %v751_v45 = vmul.f32 %v5785_v20, %v5785_v20  ;;  %3628 = vmatmul.msk.f32.gmra.mxu1 %vm400_vm1, %v5785_v20 }
 0x381   :  { %3676 = vmatmul.msk.f32.gmra.mxu2 %vm400_vm1, %v751_v45 }
 0x382   :  { %v2747_v9 = vpop.permute.xlu2 %2746 }
 0x383   :  { %2765 = vxpose.xlu1.b32.cont [6/8] (short) (narrow) %v2747_v9, 32  ;;  %v2111_v37 = vpop.f32.mrf.mxu3  ;;  %v5823_v9 = vld [vmem:[%s6299_s6] ss:$0 sm:$0xff] }
 0x384   :  { %3694 = vmatmul.msk.f32.gmra.mxu3 %vm79_vm0, %v2111_v37 }
 0x386   :  { %v5794_v62 = vpop.f32.mrf.mxu0 }
 0x387   :  { %3629 = vmatmul.msk.f32.gmra.mxu1 %vm400_vm1, %v5794_v62 }
 0x38b   :  { %2766 = vxpose.xlu1.b32.cont [7/8] (short) (narrow) %v5692_v0, 32  ;;  %v2114_v29 = vpop.f32.mrf.mxu3  ;;  %v752_v0 = vmul.f32 %v5794_v62, %v5794_v62 }
 0x38c   :  { %3695 = vmatmul.msk.f32.gmra.mxu3 %vm79_vm0, %v2114_v29 }
 0x38d   :  { %3677 = vmatmul.msk.f32.gmra.mxu2 %vm400_vm1, %v752_v0 }
 0x38e   :  { %v5802_v18 = vpop.f32.mrf.mxu0 }
 0x38f   :  { %3630 = vmatmul.msk.f32.gmra.mxu1 %vm400_vm1, %v5802_v18 }
 0x393   :  { %2767 = vxpose.xlu1.b32.end [8/8] (short) (narrow) %v5701_v50, 32  ;;  %v2117_v36 = vpop.f32.mrf.mxu3  ;;  %v753_v50 = vmul.f32 %v5802_v18, %v5802_v18 }
 0x394   :  { %3696 = vmatmul.msk.f32.gmra.mxu3 %vm79_vm0, %v2117_v36 }
 0x395   :  { %3678 = vmatmul.msk.f32.gmra.mxu2 %vm400_vm1, %v753_v50 }
 0x39b   :  { %v2120_v3 = vpop.f32.mrf.mxu3 }
 0x39c   :  { %3697 = vmatmul.msk.f32.gmra.mxu3 %vm79_vm0, %v2120_v3 }
 0x3a3   :  { %v2123_v58 = vpop.f32.mrf.mxu3 }
 0x3a4   :  { %3698 = vmatmul.msk.f32.gmra.mxu3 %vm79_vm0, %v2123_v58 }
 0x3ac   :  { %3699 = vmatmul.msk.f32.vlgmr.msrb.gmra.mxu3 %vm2023_vm4, %v5617_v33 }
 0x3b4   :  { %3700 = vmatmul.msk.f32.gmra.mxu3 %vm2023_vm4, %v5629_v59 }
 0x3b9   :  { %v5818_v38 = vpop.f32.mrf.mxu1 }
 0x3ba   :  { %v1099_v33 = vmul.f32 %v5818_v38, %v5818_v38 }
 0x3bc   :  { %3701 = vmatmul.msk.f32.gmra.mxu3 %vm2023_vm4, %v5657_v56 }
 0x3c1   :  { %v1035_v48 = vpop.f32.mrf.mxu2 }
 0x3c2   :  { %v1147_v37 = vsub.f32 %v1035_v48, %v1099_v33 }
 0x3c4   :  { %3702 = vmatmul.msk.f32.gmra.mxu3 %vm2023_vm4, %v5675_v10  ;;  %v1196_v56 = vadd.f32 %v5522_v5, %v1147_v37  ;;  %v5829_v10 = vpop.f32.mrf.mxu1 }
 0x3c5   :  { %v1100_v36 = vmul.f32 %v5829_v10, %v5829_v10 }
 0x3c6   :  { %v1292_v29 = vadd.f32 1e-05, %v1196_v56 }
 0x3c8   :  { %4021 = vrsqrt.f32 %v1292_v29  ;;  %vm1706_vm1 = vweird.f32 %v1292_v29 }
 0x3c9   :  { %v1038_v45 = vpop.f32.mrf.mxu2 }
 0x3ca   :  { %v1148_v0 = vsub.f32 %v1038_v45, %v1100_v36 }
 0x3cc   :  { %v1197_v50 = vadd.f32 %v5522_v5, %v1148_v0  ;;  %v5835_v37 = vpop.f32.mrf.mxu1 }
 0x3cd   :  { %v1101_v56 = vmul.f32 %v5835_v37, %v5835_v37 }
 0x3ce   :  { %v4022_v48 = vpop.eup %4021  ;;  %v1293_v33 = vadd.f32 1e-05, %v1197_v50 }
 0x3cf   :  { %vm1707_vm14 = vweird.f32 %v4022_v48 }
 0x3d0   :  { %4023 = vrsqrt.f32 %v1293_v33  ;;  %vm5858_vm15 = vmor %vm1706_vm1, %vm1707_vm14  ;;  %vm1716_vm2 = vweird.f32 %v1293_v33 }
 0x3d4   :  { %v5845_v54 = vpop.f32.mrf.mxu1 }
 0x3ef   :  { %v2170_v22 = vpop.f32.mrf.mxu3 }
 0x3f0   :  { %v2171_v59 = vadd.f32 %v5823_v9, %v2170_v22  ;;  %v1701_v22 = vmul.f32 %v4022_v48, %v1292_v29 }
 0x3f2   :  { %2194 = vst [vmem:[#allocation2] sm:$0xff] %v2171_v59  ;;  %v1041_v59 = vpop.f32.mrf.mxu2  ;;  %v1702_v11 = vmul.f32 %v4022_v48, %v1701_v22 }
 0x3f3   :  { %v1149_v39 = vsub.f32 %v1041_v59, %v1101_v56 }
 0x3f5   :  { %v1198_v36 = vadd.f32 %v5522_v5, %v1149_v39 }
 0x3f7   :  { %v2173_v3 = vpop.f32.mrf.mxu3  ;;  %v5843_v50 = vadd.f32 1e-05, %v1198_v36 }
 0x3f8   :  { %v2174_v58 = vadd.f32 %v5823_v9, %v2173_v3  ;;  %v4024_v3 = vpop.eup %4023 }
 0x3f9   :  { %v1711_v49 = vmul.f32 %v4024_v3, %v1293_v33  ;;  %4025 = vrsqrt.f32 %v5843_v50  ;;  %vm1717_vm3 = vweird.f32 %v4024_v3  ;;  %vm1726_vm6 = vweird.f32 %v5843_v50 }
 0x3fa   :  { %2195 = vst [vmem:[#allocation2 + $0x8] sm:$0xff] %v2174_v58  ;;  %v1703_v58 = vmul.f32 0.5, %v1702_v11  ;;  %v1044_v59 = vpop.f32.mrf.mxu2  ;;  %vm1718_vm5 = vmor %vm1716_vm2, %vm1717_vm3 }
 0x3fb   :  { %v1712_v39 = vmul.f32 %v4024_v3, %v1711_v49  ;;  %v1244_v49 = vsub.f32 %v5740_v31, %v5818_v38 }
 0x3fd   :  { %v1713_v11 = vmul.f32 0.5, %v1712_v39 }
 0x3ff   :  { %v2776_v46 = vpop.trf.xlu1  ;;  %v2176_v45 = vpop.f32.mrf.mxu3  ;;  %v1714_v61 = vsub.f32 1.5, %v1713_v11 }
 0x400   :  { %3739 = vmatmul.msk.f32.vlgmr.msrb.gmra.mxu1 %vm2023_vm4, %v2776_v46  ;;  %v2177_v0 = vadd.f32 %v5823_v9, %v2176_v45  ;;  %v1102_v46 = vmul.f32 %v5845_v54, %v5845_v54  ;;  %v1704_v45 = vsub.f32 1.5, %v1703_v58  ;;  %v4026_v30 = vpop.eup %4025 }
 0x401   :  { %3217 = vmatpush.msrb.mxu1 %v5583_v55  ;;  %v1721_v58 = vmul.f32 %v4026_v30, %v5843_v50  ;;  %v1715_v38 = vmul.f32 %v4024_v3, %v1714_v61  ;;  %vm1727_vm7 = vweird.f32 %v4026_v30  ;;  %v1246_v50 = vsub.f32 %v5758_v44, %v5835_v37 }
 0x402   :  { %2196 = vst [vmem:[#allocation2 + $0x10] sm:$0xff] %v2177_v0  ;;  %v1150_v22 = vsub.f32 %v1044_v59, %v1102_v46  ;;  %v5865_v46 = vpop.f32.mrf.mxu1  ;;  %v1705_v39 = vmul.f32 %v4022_v48, %v1704_v45  ;;  %vm1728_vm8 = vmor %vm1726_vm6, %vm1727_vm7 }
 0x403   :  { %3218 = vmatpush.msrb.mxu1 %v5589_v52  ;;  %v1103_v31 = vmul.f32 %v5865_v46, %v5865_v46  ;;  %v1719_v59 = vsel %vm1718_vm5, %v4024_v3, %v1715_v38 }
 0x404   :  { %v1199_v0 = vadd.f32 %v5522_v5, %v1150_v22  ;;  %v1047_v22 = vpop.f32.mrf.mxu2  ;;  %v1709_v11 = vsel %vm5858_vm15, %v4022_v48, %v1705_v39 }
 0x405   :  { %3219 = vmatpush.msrb.mxu1 %v5598_v40  ;;  %v1820_v33 = vmul.f32 %v1709_v11, %v1244_v49 }
 0x406   :  { %v5862_v29 = vadd.f32 1e-05, %v1199_v0 }
 0x407   :  { %v2777_v56 = vpop.trf.xlu1  ;;  %3220 = vmatpush.msrb.mxu1 %v5607_v32  ;;  %v2179_v36 = vpop.f32.mrf.mxu3  ;;  %v1869_v4 = vmul.f32 %v5552_v8, %v1820_v33 }
 0x408   :  { %3740 = vmatmul.msk.f32.gmra.mxu1 %vm2023_vm4, %v2777_v56  ;;  %v2180_v25 = vadd.f32 %v5823_v9, %v2179_v36  ;;  %4027 = vrsqrt.f32 %v5862_v29  ;;  %v1722_v56 = vmul.f32 %v4026_v30, %v1721_v58  ;;  %v1151_v36 = vsub.f32 %v1047_v22, %v1103_v31 }
 0x409   :  { %v5879_v39 = vadd.f32 %v5560_v21, %v1869_v4  ;;  %vm1736_vm9 = vweird.f32 %v5862_v29 }
 0x40a   :  { %2197 = vst [vmem:[#allocation2 + $0x18] sm:$0xff] %v2180_v25  ;;  %v1245_v25 = vsub.f32 %v5748_v24, %v5829_v10  ;;  %v1723_v14 = vmul.f32 0.5, %v1722_v56  ;;  %v1200_v12 = vadd.f32 %v5522_v5, %v1151_v36  ;;  %v5885_v22 = vpop.f32.mrf.mxu1 }
 0x40b   :  { %3262 = vrot.lane.b32.xlu2 %v5879_v39, %s4078_s14  ;;  %v1104_v4 = vmul.f32 %v5885_v22, %v5885_v22 }
 0x40c   :  { %v1724_v58 = vsub.f32 1.5, %v1723_v14  ;;  %v5881_v24 = vadd.f32 1e-05, %v1200_v12  ;;  %v1821_v10 = vmul.f32 %v1719_v59, %v1245_v25  ;;  %v1050_v31 = vpop.f32.mrf.mxu2 }
 0x40d   :  { %v1152_v38 = vsub.f32 %v1050_v31, %v1104_v4 }
 0x40e   :  { %v4028_v48 = vpop.eup %4027  ;;  %4029 = vrsqrt.f32 %v5881_v24  ;;  %v1725_v12 = vmul.f32 %v4026_v30, %v1724_v58  ;;  %v1870_v3 = vmul.f32 %v5552_v8, %v1821_v10  ;;  %vm1746_vm12 = vweird.f32 %v5881_v24 }
 0x40f   :  { %v2778_v0 = vpop.trf.xlu1  ;;  %v2182_v45 = vpop.f32.mrf.mxu3  ;;  %v1731_v49 = vmul.f32 %v4028_v48, %v5862_v29  ;;  %v1201_v36 = vadd.f32 %v5522_v5, %v1152_v38  ;;  %vm1737_vm10 = vweird.f32 %v4028_v48  ;;  %v1247_v29 = vsub.f32 %v5768_v63, %v5845_v54 }
 0x410   :  { %3741 = vmatmul.msk.f32.gmra.mxu1 %vm2023_vm4, %v2778_v0  ;;  %v2183_v61 = vadd.f32 %v5823_v9, %v2182_v45  ;;  %v5897_v33 = vadd.f32 %v5560_v21, %v1870_v3  ;;  %vm1738_vm11 = vmor %vm1736_vm9, %vm1737_vm10 }
 0x411   :  { %v1732_v14 = vmul.f32 %v4028_v48, %v1731_v49  ;;  %v5901_v59 = vadd.f32 1e-05, %v1201_v36 }
 0x412   :  { %2198 = vst [vmem:[#allocation2 + $0x20] sm:$0xff] %v2183_v61  ;;  %v1729_v61 = vsel %vm1728_vm8, %v4026_v30, %v1725_v12  ;;  %v5905_v10 = vpop.f32.mrf.mxu1 }
 0x413   :  { %v1733_v11 = vmul.f32 0.5, %v1732_v14  ;;  %v1822_v44 = vmul.f32 %v1729_v61, %v1246_v50  ;;  %3264 = vrot.lane.b32.xlu2 %v5897_v33, %s4078_s14  ;;  %4031 = vrsqrt.f32 %v5901_v59  ;;  %v1105_v30 = vmul.f32 %v5905_v10, %v5905_v10 }
 0x414   :  { %v4030_v58 = vpop.eup %4029  ;;  %v1053_v49 = vpop.f32.mrf.mxu2  ;;  %vm1756_vm14 = vweird.f32 %v5901_v59 }
 0x415   :  { %v1734_v45 = vsub.f32 1.5, %v1733_v11  ;;  %v1741_v37 = vmul.f32 %v4030_v58, %v5881_v24  ;;  %v1871_v12 = vmul.f32 %v5552_v8, %v1822_v44  ;;  %v1153_v14 = vsub.f32 %v1053_v49, %v1105_v30 }
 0x416   :  { %vm1747_vm13 = vweird.f32 %v4030_v58  ;;  %v1248_v24 = vsub.f32 %v5776_v17, %v5865_v46 }
 0x417   :  { %v2779_v56 = vpop.trf.xlu1  ;;  %v2185_v25 = vpop.f32.mrf.mxu3  ;;  %v1735_v31 = vmul.f32 %v4028_v48, %v1734_v45  ;;  %v1742_v4 = vmul.f32 %v4030_v58, %v1741_v37  ;;  %v5916_v38 = vadd.f32 %v5560_v21, %v1871_v12  ;;  %vm1748_vm1 = vmor %vm1746_vm12, %vm1747_vm13 }
 0x418   :  { %3742 = vmatmul.msk.f32.gmra.mxu1 %vm2023_vm4, %v2779_v56  ;;  %v2186_v0 = vadd.f32 %v5823_v9, %v2185_v25  ;;  %v1202_v56 = vadd.f32 %v5522_v5, %v1153_v14 }
 0x419   :  { %v1743_v3 = vmul.f32 0.5, %v1742_v4  ;;  %v1739_v36 = vsel %vm1738_vm11, %v4028_v48, %v1735_v31 }
 0x41a   :  { %2199 = vst [vmem:[#allocation2 + $0x28] sm:$0xff] %v2186_v0  ;;  %v4032_v0 = vpop.eup %4031  ;;  %v1298_v45 = vadd.f32 1e-05, %v1202_v56  ;;  %v1823_v61 = vmul.f32 %v1739_v36, %v1247_v29  ;;  %v5922_v63 = vpop.f32.mrf.mxu1 }
 0x41b   :  { %v1744_v25 = vsub.f32 1.5, %v1743_v3  ;;  %v1751_v54 = vmul.f32 %v4032_v0, %v5901_v59  ;;  %3266 = vrot.lane.b32.xlu2 %v5916_v38, %s4078_s14  ;;  %v1106_v37 = vmul.f32 %v5922_v63, %v5922_v63  ;;  %vm1757_vm15 = vweird.f32 %v4032_v0 }
 0x41c   :  { %v1056_v44 = vpop.f32.mrf.mxu2  ;;  %4033 = vrsqrt.f32 %v1298_v45  ;;  %v1872_v30 = vmul.f32 %v5552_v8, %v1823_v61  ;;  %vm1758_vm2 = vmor %vm1756_vm14, %vm1757_vm15  ;;  %vm1766_vm3 = vweird.f32 %v1298_v45 }
 0x41d   :  { %v1745_v48 = vmul.f32 %v4030_v58, %v1744_v25  ;;  %v1752_v49 = vmul.f32 %v4032_v0, %v1751_v54  ;;  %v1154_v31 = vsub.f32 %v1056_v44, %v1106_v37 }
 0x41e   :  { %v5932_v29 = vadd.f32 %v5560_v21, %v1872_v30 }
 0x41f   :  { %v2188_v50 = vpop.f32.mrf.mxu3  ;;  %v1753_v4 = vmul.f32 0.5, %v1752_v49  ;;  %v1203_v14 = vadd.f32 %v5522_v5, %v1154_v31 }
 0x420   :  { %v2189_v11 = vadd.f32 %v5823_v9, %v2188_v50  ;;  %v1749_v50 = vsel %vm1748_vm1, %v4030_v58, %v1745_v48  ;;  %v1249_v58 = vsub.f32 %v5785_v20, %v5885_v22  ;;  %v1250_v22 = vsub.f32 %v5794_v62, %v5905_v10 }
 0x421   :  { %v1824_v25 = vmul.f32 %v1749_v50, %v1248_v24  ;;  %v1754_v36 = vsub.f32 1.5, %v1753_v4  ;;  %v1251_v62 = vsub.f32 %v5802_v18, %v5922_v63 }
 0x422   :  { %2200 = vst [vmem:[#allocation2 + $0x30] sm:$0xff] %v2189_v11  ;;  %v4034_v56 = vpop.eup %4033  ;;  %v1299_v11 = vadd.f32 1e-05, %v1203_v14 }
 0x423   :  { %v1761_v61 = vmul.f32 %v4034_v56, %v1298_v45  ;;  %3268 = vrot.lane.b32.xlu2 %v5932_v29, %s4078_s14  ;;  %v1873_v17 = vmul.f32 %v5552_v8, %v1824_v25  ;;  %v1755_v5 = vmul.f32 %v4032_v0, %v1754_v36  ;;  %vm1767_vm5 = vweird.f32 %v4034_v56 }
 0x424   :  { %4035 = vrsqrt.f32 %v1299_v11  ;;  %vm1768_vm6 = vmor %vm1766_vm3, %vm1767_vm5  ;;  %vm1776_vm7 = vweird.f32 %v1299_v11  ;;  %v3927_v36 = vpack.i.bf16 %v5916_v38, %v5932_v29 }
 0x425   :  { %v1762_v46 = vmul.f32 %v4034_v56, %v1761_v61  ;;  %v5943_v37 = vadd.f32 %v5560_v21, %v1873_v17  ;;  %v1759_v24 = vsel %vm1758_vm2, %v4032_v0, %v1755_v5 }
 0x426   :  { %v1825_v59 = vmul.f32 %v1759_v24, %v1249_v58  ;;  %3928 = vrot.lane.b32.xlu0 %v3927_v36, %s4079_s25 }
 0x427   :  { %v2191_v12 = vpop.f32.mrf.mxu3  ;;  %v1763_v54 = vmul.f32 0.5, %v1762_v46 }
 0x428   :  { %v2192_v3 = vadd.f32 %v5823_v9, %v2191_v12  ;;  %v1874_v4 = vmul.f32 %v5552_v8, %v1825_v59  ;;  %v6385_v59 = vld [vmem:[#allocation7_spill] sm:$0xff] }
 0x429   :  { %v1764_v49 = vsub.f32 1.5, %v1763_v54 }
 0x42a   :  { %2201 = vst [vmem:[#allocation2 + $0x38] sm:$0xff] %v2192_v3  ;;  %v4036_v48 = vpop.eup %4035  ;;  %v5951_v3 = vadd.f32 %v5560_v21, %v1874_v4  ;;  %v3039_v4 = vpop.trf.xlu0 }
 0x42b   :  { %v1771_v30 = vmul.f32 %v4036_v48, %v1299_v11  ;;  %3270 = vrot.lane.b32.xlu2 %v5943_v37, %s4078_s14  ;;  %v1765_v12 = vmul.f32 %v4034_v56, %v1764_v49  ;;  %vm1777_vm8 = vweird.f32 %v4036_v48  ;;  %3759 = vmatmul.msk.f32.vlgmr.msra.gmra.mxu1 %vm2023_vm4, %v3039_v4 }
 0x42c   :  { %vm1778_vm9 = vmor %vm1776_vm7, %vm1777_vm8 }
 0x42d   :  { %v1772_v31 = vmul.f32 %v4036_v48, %v1771_v30  ;;  %v1769_v50 = vsel %vm1768_vm6, %v4034_v56, %v1765_v12  ;;  %v3932_v56 = vpack.i.bf16 %v5879_v39, %v5897_v33  ;;  %v3861_v30 = vunpack.i.h.bf16 %v5728_v57 }
 0x42e   :  { %v1826_v45 = vmul.f32 %v1769_v50, %v1250_v22 }
 0x42f   :  { %v2319_v44 = vpop.f32.mrf.mxu3  ;;  %v1773_v14 = vmul.f32 0.5, %v1772_v31  ;;  %3933 = vrot.lane.b32.xlu1 %v3932_v56, %s4079_s25 }
 0x430   :  { %v1875_v25 = vmul.f32 %v5552_v8, %v1826_v45  ;;  %v2331_v49 = vmul.f32 %v2319_v44, %v5650_v60  ;;  %v3922_v44 = vpack.i.bf16 %v5943_v37, %v5951_v3 }
 0x431   :  { %v1774_v0 = vsub.f32 1.5, %v1773_v14 }
 0x432   :  { %v5961_v10 = vadd.f32 %v5560_v21, %v1875_v25  ;;  %v3040_v14 = vpop.trf.xlu0 }
 0x433   :  { %3272 = vrot.lane.b32.xlu2 %v5951_v3, %s4078_s14  ;;  %v1775_v61 = vmul.f32 %v4036_v48, %v1774_v0  ;;  %3760 = vmatmul.msk.f32.gmra.mxu1 %vm2023_vm4, %v3040_v14 }
 0x435   :  { %v1779_v11 = vsel %vm1778_vm9, %v4036_v48, %v1775_v61 }
 0x436   :  { %v1827_v46 = vmul.f32 %v1779_v11, %v1251_v62 }
 0x437   :  { %v2322_v20 = vpop.f32.mrf.mxu3 }
 0x438   :  { %v1876_v5 = vmul.f32 %v5552_v8, %v1827_v46  ;;  %v2332_v48 = vmul.f32 %v2322_v20, %v5641_v26 }
 0x43a   :  { %v5971_v18 = vadd.f32 %v5560_v21, %v1876_v5  ;;  %v3860_v21 = vunpack.i.l.bf16 %v5728_v57  ;;  %v3041_v45 = vpop.trf.xlu0 }
 0x43b   :  { %3274 = vrot.lane.b32.xlu2 %v5961_v10, %s4078_s14  ;;  %3761 = vmatmul.msk.f32.gmra.mxu1 %vm2023_vm4, %v3041_v45  ;;  %v6126_v45 = vld [vmem:[%s6297_s4 + $0x10] sm:$0xff] }
 0x43c   :  { %v3917_v8 = vpack.i.bf16 %v5961_v10, %v5971_v18 }
 0x43f   :  { %v2325_v17 = vpop.f32.mrf.mxu3 }
 0x440   :  { %v2333_v58 = vmul.f32 %v2325_v17, %v5634_v2 }
 0x443   :  { %3276 = vrot.lane.b32.xlu2 %v5971_v18, %s4078_s14 }
 0x447   :  { %v2328_v54 = vpop.f32.mrf.mxu3 }
 0x448   :  { %v2334_v63 = vmul.f32 %v2328_v54, %v5627_v34  ;;  %v6066_v54 = vld [vmem:[%s6298_s5 + $0x18] sm:$0xff] }
 0x44a   :  { %2363 = vmatpush.msra.mxu3 %v2334_v63  ;;  %v6080_v63 = vld [vmem:[%s6298_s5 + $0x8] sm:$0xff] }
 0x44b   :  { %3918 = vrot.lane.b32.xlu2 %v3917_v8, %s4079_s25 }
 0x44c   :  { %2364 = vmatpush.msra.mxu3 %v2333_v58  ;;  %v6086_v58 = vld [vmem:[%s6298_s5] sm:$0xff] }
 0x44e   :  { %2365 = vmatpush.msra.mxu3 %v2332_v48 }
 0x450   :  { %2366 = vmatpush.msra.mxu3 %v2331_v49 }
 0x451   :  { %3703 = vmatmul.msk.f32.vlgmr.msra.gmra.mxu3 %vm79_vm0, %v4730_v42  ;;  %v3865_v42 = vunpack.i.l.bf16 %v5730_v6 }
 0x452   :  { %2428 = vmatpush.msrb.mxu3 %v5583_v55  ;;  %v3866_v55 = vunpack.i.h.bf16 %v5730_v6 }
 0x453   :  { %3923 = vrot.lane.b32.xlu2 %v3922_v44, %s4079_s25 }
 0x454   :  { %2429 = vmatpush.msrb.mxu3 %v5589_v52  ;;  %v3870_v52 = vunpack.i.l.bf16 %v5732_v41 }
 0x456   :  { %2430 = vmatpush.msrb.mxu3 %v5598_v40  ;;  %v3871_v40 = vunpack.i.h.bf16 %v5732_v41  ;;  %v6384_v41 = vld [vmem:[#allocation5_spill] sm:$0xff] }
 0x458   :  { %2431 = vmatpush.msrb.mxu3 %v5607_v32  ;;  %v3875_v32 = vunpack.i.l.bf16 %v5734_v7 }
 0x459   :  { %3704 = vmatmul.msk.f32.gmra.mxu3 %vm79_vm0, %v4727_v1  ;;  %v3876_v1 = vunpack.i.h.bf16 %v5734_v7 }
 0x45a   :  { %2573 = vmatpush.msra.mxu3 %v3860_v21 }
 0x45c   :  { %2574 = vmatpush.msra.mxu3 %v3861_v30 }
 0x45e   :  { %2575 = vmatpush.msra.mxu3 %v3865_v42  ;;  %v6388_v42 = vld [vmem:[#allocation25_spill] sm:$0xff] }
 0x460   :  { %2576 = vmatpush.msra.mxu3 %v3866_v55  ;;  %v6389_v55 = vld [vmem:[#allocation26_spill] sm:$0xff] }
 0x461   :  { %3705 = vmatmul.msk.f32.gmra.mxu3 %vm79_vm0, %v4760_v27 }
 0x462   :  { %2577 = vmatpush.msra.mxu3 %v3870_v52 }
 0x464   :  { %2578 = vmatpush.msra.mxu3 %v3871_v40 }
 0x465   :  { %v3263_v57 = vpop.permute.xlu2 %3262 }
 0x466   :  { %2579 = vmatpush.msra.mxu3 %v3875_v32 }
 0x468   :  { %2580 = vmatpush.msra.mxu3 %v3876_v1 }
 0x469   :  { %3706 = vmatmul.msk.f32.gmra.mxu3 %vm79_vm0, %v4752_v28  ;;  %v6386_v28 = vld [vmem:[#allocation6_spill] sm:$0xff] }
 0x46d   :  { %v3265_v6 = vpop.permute.xlu2 %3264 }
 0x471   :  { %3707 = vmatmul.msk.f32.gmra.mxu3 %vm79_vm0, %v4818_v15 }
 0x475   :  { %v3267_v27 = vpop.permute.xlu2 %3266 }
 0x479   :  { %3708 = vmatmul.msk.f32.gmra.mxu3 %vm79_vm0, %v6384_v41  ;;  %3286 = vxpose.xlu2.b32.start [1/8] (short) (narrow) %v3263_v57, 32 }
 0x47d   :  { %v2845_v24 = vpop.f32.mrf.mxu1  ;;  %v3269_v31 = vpop.permute.xlu2 %3268 }
 0x47e   :  { %v2857_v36 = vmul.f32 %v2845_v24, %v5650_v60 }
 0x481   :  { %3709 = vmatmul.msk.f32.gmra.mxu3 %vm79_vm0, %v6385_v59  ;;  %3287 = vxpose.xlu2.b32.cont [2/8] (short) (narrow) %v3265_v6, 32 }
 0x485   :  { %v2848_v7 = vpop.f32.mrf.mxu1  ;;  %v3271_v12 = vpop.permute.xlu2 %3270 }
 0x486   :  { %v2858_v25 = vmul.f32 %v2848_v7, %v5641_v26 }
 0x489   :  { %3710 = vmatmul.msk.f32.gmra.mxu3 %vm79_vm0, %v6386_v28  ;;  %3288 = vxpose.xlu2.b32.cont [3/8] (short) (narrow) %v3267_v27, 32 }
 0x48d   :  { %v2851_v15 = vpop.f32.mrf.mxu1  ;;  %v3273_v50 = vpop.permute.xlu2 %3272 }
 0x48e   :  { %v2859_v22 = vmul.f32 %v2851_v15, %v5634_v2  ;;  %v3042_v2 = vpop.trf.xlu0 }
 0x48f   :  { %3762 = vmatmul.msk.f32.gmra.mxu1 %vm2023_vm4, %v3042_v2  ;;  %v6138_v2 = vld [vmem:[%s6297_s4] sm:$0xff] }
 0x491   :  { %3289 = vxpose.xlu2.b32.cont [4/8] (short) (narrow) %v3269_v31, 32 }
 0x495   :  { %v2854_v20 = vpop.f32.mrf.mxu1  ;;  %v3275_v61 = vpop.permute.xlu2 %3274 }
 0x496   :  { %v2860_v0 = vmul.f32 %v2854_v20, %v5627_v34 }
 0x498   :  { %2889 = vmatpush.msrb.mxu2 %v2860_v0  ;;  %v6120_v0 = vld [vmem:[%s6297_s4 + $0x18] sm:$0xff] }
 0x499   :  { %3290 = vxpose.xlu2.b32.cont [5/8] (short) (narrow) %v3271_v12, 32 }
 0x49a   :  { %2890 = vmatpush.msrb.mxu2 %v2859_v22 }
 0x49c   :  { %2891 = vmatpush.msrb.mxu2 %v2858_v25 }
 0x49d   :  { %v3277_v34 = vpop.permute.xlu2 %3276 }
 0x49e   :  { %2892 = vmatpush.msrb.mxu2 %v2857_v36  ;;  %v6132_v36 = vld [vmem:[%s6297_s4 + $0x8] sm:$0xff] }
 0x49f   :  { %3743 = vmatmul.msk.f32.vlgmr.msrb.gmra.mxu2 %vm79_vm0, %v5412_v51 }
 0x4a1   :  { %3291 = vxpose.xlu2.b32.cont [6/8] (short) (narrow) %v3273_v50, 32  ;;  %v6048_v11 = vpop.permute.xlu1 %3933 }
 0x4a2   :  { %v3936_v5 = vunpack.i.h.bf16 %v6048_v11 }
 0x4a5   :  { %v6025_v26 = vpop.permute.xlu2 %3918 }
 0x4a6   :  { %v3921_v60 = vunpack.i.h.bf16 %v6025_v26  ;;  %v3920_v17 = vunpack.i.l.bf16 %v6025_v26 }
 0x4a7   :  { %3744 = vmatmul.msk.f32.gmra.mxu2 %vm79_vm0, %v5305_v35  ;;  %v6037_v35 = vpop.permute.xlu0 %3928 }
 0x4a8   :  { %3799 = vmatpush.msra.mxu2 %v3920_v17  ;;  %v3930_v56 = vunpack.i.l.bf16 %v6037_v35  ;;  %v3931_v46 = vunpack.i.h.bf16 %v6037_v35 }
 0x4a9   :  { %3292 = vxpose.xlu2.b32.cont [7/8] (short) (narrow) %v3275_v61, 32 }
 0x4aa   :  { %3800 = vmatpush.msra.mxu2 %v3921_v60 }
 0x4ad   :  { %v6035_v51 = vpop.permute.xlu2 %3923 }
 0x4ae   :  { %v3925_v62 = vunpack.i.l.bf16 %v6035_v51 }
 0x4af   :  { %3745 = vmatmul.msk.f32.gmra.mxu2 %vm79_vm0, %v5346_v13  ;;  %v3926_v13 = vunpack.i.h.bf16 %v6035_v51 }
 0x4b0   :  { %3801 = vmatpush.msra.mxu2 %v3925_v62 }
 0x4b1   :  { %3293 = vxpose.xlu2.b32.end [8/8] (short) (narrow) %v3277_v34, 32 }
 0x4b2   :  { %3802 = vmatpush.msra.mxu2 %v3926_v13 }
 0x4b4   :  { %3803 = vmatpush.msra.mxu2 %v3930_v56 }
 0x4b6   :  { %3804 = vmatpush.msra.mxu2 %v3931_v46 }
 0x4b7   :  { %3746 = vmatmul.msk.f32.gmra.mxu2 %vm79_vm0, %v5375_v53  ;;  %v3935_v53 = vunpack.i.l.bf16 %v6048_v11  ;;  %v6398_v11 = vld [vmem:[#allocation16_spill] sm:$0xff] }
 0x4b9   :  { %3805 = vmatpush.msra.mxu2 %v3935_v53 }
 0x4bb   :  { %3806 = vmatpush.msra.mxu2 %v3936_v5 }
 0x4bd   :  { %3480 = vmatpush.msrb.mxu2 %v6066_v54 }
 0x4bf   :  { %3747 = vmatmul.msk.f32.gmra.mxu2 %vm79_vm0, %v5398_v23  ;;  %v6074_v23 = vld [vmem:[%s6298_s5 + $0x10] sm:$0xff] }
 0x4c0   :  { %3481 = vmatpush.msrb.mxu2 %v6074_v23 }
 0x4c2   :  { %3482 = vmatpush.msrb.mxu2 %v6080_v63 }
 0x4c4   :  { %3483 = vmatpush.msrb.mxu2 %v6086_v58 }
 0x4c7   :  { %3748 = vmatmul.msk.f32.gmra.mxu2 %vm79_vm0, %v5472_v16 }
 0x4cf   :  { %3749 = vmatmul.msk.f32.gmra.mxu2 %vm79_vm0, %v5437_v47 }
 0x4d4   :  { %v2368_v16 = vpop.f32.mrf.mxu3 }
 0x4d5   :  { %3711 = vmatmul.msk.f32.vlgmr.msrb.gmra.mxu3 %vm79_vm0, %v2368_v16  ;;  %v6390_v16 = vld [vmem:[#allocation8_spill] sm:$0xff] }
 0x4d7   :  { %3750 = vmatmul.msk.f32.gmra.mxu2 %vm79_vm0, %v5455_v19  ;;  %v6387_v19 = vld [vmem:[#allocation24_spill] sm:$0xff] }
 0x4dc   :  { %v2371_v48 = vpop.f32.mrf.mxu3 }
 0x4dd   :  { %3712 = vmatmul.msk.f32.gmra.mxu3 %vm79_vm0, %v2371_v48  ;;  %v6391_v48 = vld [vmem:[#allocation9_spill] sm:$0xff] }
 0x4e4   :  { %v2374_v49 = vpop.f32.mrf.mxu3 }
 0x4e5   :  { %3713 = vmatmul.msk.f32.gmra.mxu3 %vm79_vm0, %v2374_v49  ;;  %v6392_v49 = vld [vmem:[#allocation10_spill] sm:$0xff] }
 0x4ec   :  { %v2377_v8 = vpop.f32.mrf.mxu3 }
 0x4ed   :  { %3714 = vmatmul.msk.f32.gmra.mxu3 %vm79_vm0, %v2377_v8  ;;  %v6393_v8 = vld [vmem:[#allocation11_spill] sm:$0xff] }
 0x4f4   :  { %v2380_v21 = vpop.f32.mrf.mxu3 }
 0x4f5   :  { %3715 = vmatmul.msk.f32.gmra.mxu3 %vm79_vm0, %v2380_v21  ;;  %v6394_v21 = vld [vmem:[#allocation12_spill] sm:$0xff] }
 0x4fc   :  { %v2383_v44 = vpop.f32.mrf.mxu3 }
 0x4fd   :  { %3716 = vmatmul.msk.f32.gmra.mxu3 %vm79_vm0, %v2383_v44  ;;  %v6395_v44 = vld [vmem:[#allocation13_spill] sm:$0xff] }
 0x504   :  { %v2386_v47 = vpop.f32.mrf.mxu3 }
 0x505   :  { %3717 = vmatmul.msk.f32.gmra.mxu3 %vm79_vm0, %v2386_v47  ;;  %v3108_v47 = vpop.f32.mrf.mxu1 }
 0x50c   :  { %v2389_v30 = vpop.f32.mrf.mxu3 }
 0x50d   :  { %3718 = vmatmul.msk.f32.gmra.mxu3 %vm79_vm0, %v2389_v30 }
 0x515   :  { %3719 = vmatmul.msk.f32.vlgmr.msra.gmra.mxu3 %vm2023_vm4, %v5736_v43 }
 0x51d   :  { %3720 = vmatmul.msk.f32.gmra.mxu3 %vm2023_vm4, %v6387_v19  ;;  %v3111_v19 = vpop.f32.mrf.mxu1 }
 0x525   :  { %3721 = vmatmul.msk.f32.gmra.mxu3 %vm2023_vm4, %v6388_v42 }
 0x52d   :  { %3722 = vmatmul.msk.f32.gmra.mxu3 %vm2023_vm4, %v6389_v55  ;;  %v3114_v55 = vpop.f32.mrf.mxu1 }
 0x558   :  { %v2433_v52 = vpop.f32.mrf.mxu3 }
 0x559   :  { %v2434_v40 = vadd.f32 %v5823_v9, %v2433_v52  ;;  %v3117_v52 = vpop.f32.mrf.mxu1 }
 0x55b   :  { %2457 = vst [vmem:[#allocation2 + $0x40] sm:$0xff] %v2434_v40 }
 0x560   :  { %v2436_v32 = vpop.f32.mrf.mxu3 }
 0x561   :  { %v2437_v1 = vadd.f32 %v5823_v9, %v2436_v32  ;;  %v3122_v32 = vmul.f32 %v6126_v45, %v3114_v55 }
 0x563   :  { %2458 = vst [vmem:[#allocation2 + $0x48] sm:$0xff] %v2437_v1  ;;  %v3123_v1 = vmul.f32 %v6120_v0, %v3117_v52 }
 0x565   :  { %3152 = vmatpush.msra.mxu0 %v3123_v1 }
 0x567   :  { %3153 = vmatpush.msra.mxu0 %v3122_v32 }
 0x568   :  { %v2439_v57 = vpop.f32.mrf.mxu3 }
 0x569   :  { %v2440_v43 = vadd.f32 %v5823_v9, %v2439_v57  ;;  %v3121_v57 = vmul.f32 %v6132_v36, %v3111_v19 }
 0x56b   :  { %2459 = vst [vmem:[#allocation2 + $0x50] sm:$0xff] %v2440_v43  ;;  %v3120_v43 = vmul.f32 %v6138_v2, %v3108_v47  ;;  %3154 = vmatpush.msra.mxu0 %v3121_v57 }
 0x56d   :  { %3155 = vmatpush.msra.mxu0 %v3120_v43 }
 0x570   :  { %v2442_v6 = vpop.f32.mrf.mxu3 }
 0x571   :  { %v2443_v41 = vadd.f32 %v5823_v9, %v2442_v6 }
 0x573   :  { %2460 = vst [vmem:[#allocation2 + $0x58] sm:$0xff] %v2443_v41 }
 0x578   :  { %v2445_v24 = vpop.f32.mrf.mxu3 }
 0x579   :  { %v2446_v27 = vadd.f32 %v5823_v9, %v2445_v24 }
 0x57b   :  { %2461 = vst [vmem:[#allocation2 + $0x60] sm:$0xff] %v2446_v27 }
 0x580   :  { %v2448_v59 = vpop.f32.mrf.mxu3 }
 0x581   :  { %v2449_v7 = vadd.f32 %v5823_v9, %v2448_v59 }
 0x583   :  { %2462 = vst [vmem:[#allocation2 + $0x68] sm:$0xff] %v2449_v7  ;;  %v6399_v7 = vld [vmem:[#allocation17_spill] sm:$0xff] }
 0x588   :  { %v2451_v31 = vpop.f32.mrf.mxu3 }
 0x589   :  { %v2452_v4 = vadd.f32 %v5823_v9, %v2451_v31 }
 0x58b   :  { %2463 = vst [vmem:[#allocation2 + $0x70] sm:$0xff] %v2452_v4 }
 0x590   :  { %v2454_v28 = vpop.f32.mrf.mxu3 }
 0x591   :  { %v2455_v15 = vadd.f32 %v5823_v9, %v2454_v28 }
 0x593   :  { %2464 = vst [vmem:[#allocation2 + $0x78] sm:$0xff] %v2455_v15  ;;  %v6400_v15 = vld [vmem:[#allocation18_spill] sm:$0xff] }
 0x598   :  { %v2582_v12 = vpop.f32.mrf.mxu3 }
 0x599   :  { %v2594_v34 = vmul.f32 %v6138_v2, %v2582_v12 }
 0x5a0   :  { %v2585_v14 = vpop.f32.mrf.mxu3 }
 0x5a1   :  { %v2595_v61 = vmul.f32 %v6132_v36, %v2585_v14 }
 0x5a8   :  { %v2588_v20 = vpop.f32.mrf.mxu3 }
 0x5a9   :  { %v2596_v25 = vmul.f32 %v6126_v45, %v2588_v20 }
 0x5b0   :  { %v2591_v22 = vpop.f32.mrf.mxu3 }
 0x5b1   :  { %v2597_v50 = vmul.f32 %v6120_v0, %v2591_v22  ;;  %v6401_v22 = vld [vmem:[#allocation19_spill] sm:$0xff] }
 0x5b3   :  { %2626 = vmatpush.msrb.mxu3 %v2597_v50 }
 0x5b5   :  { %2627 = vmatpush.msrb.mxu3 %v2596_v25 }
 0x5b7   :  { %2628 = vmatpush.msrb.mxu3 %v2595_v61 }
 0x5b9   :  { %2629 = vmatpush.msrb.mxu3 %v2594_v34  ;;  %v6402_v34 = vld [vmem:[#allocation20_spill] sm:$0xff] }
 0x5ba   :  { %3723 = vmatmul.msk.f32.vlgmr.msrb.gmra.mxu3 %vm79_vm0, %v6390_v16 }
 0x5bb   :  { %2954 = vmatpush.msra.mxu3 %v6066_v54  ;;  %v6396_v54 = vld [vmem:[#allocation15_spill] sm:$0xff] }
 0x5bd   :  { %2955 = vmatpush.msra.mxu3 %v6074_v23  ;;  %v2894_v23 = vpop.f32.mrf.mxu2 }
 0x5bf   :  { %2956 = vmatpush.msra.mxu3 %v6080_v63  ;;  %v6397_v63 = vld [vmem:[#allocation14_spill] sm:$0xff] }
 0x5c1   :  { %2957 = vmatpush.msra.mxu3 %v6086_v58 }
 0x5c2   :  { %3724 = vmatmul.msk.f32.gmra.mxu3 %vm79_vm0, %v6391_v48 }
 0x5c5   :  { %v2897_v58 = vpop.f32.mrf.mxu2 }
 0x5ca   :  { %3725 = vmatmul.msk.f32.gmra.mxu3 %vm79_vm0, %v6392_v49  ;;  %v6403_v49 = vld [vmem:[#allocation21_spill] sm:$0xff] }
 0x5cd   :  { %v2900_v30 = vpop.f32.mrf.mxu2 }
 0x5d2   :  { %3726 = vmatmul.msk.f32.gmra.mxu3 %vm79_vm0, %v6393_v8 }
 0x5d5   :  { %v2903_v42 = vpop.f32.mrf.mxu2 }
 0x5da   :  { %3727 = vmatmul.msk.f32.gmra.mxu3 %vm79_vm0, %v6394_v21 }
 0x5dd   :  { %v2906_v40 = vpop.f32.mrf.mxu2 }
 0x5e2   :  { %3728 = vmatmul.msk.f32.gmra.mxu3 %vm79_vm0, %v6395_v44  ;;  %v6404_v44 = vld [vmem:[#allocation22_spill] sm:$0xff] }
 0x5e5   :  { %v2909_v6 = vpop.f32.mrf.mxu2 }
 0x5ea   :  { %3729 = vmatmul.msk.f32.gmra.mxu3 %vm79_vm0, %v6396_v54 }
 0x5ed   :  { %v2912_v41 = vpop.f32.mrf.mxu2 }
 0x5f2   :  { %3730 = vmatmul.msk.f32.gmra.mxu3 %vm79_vm0, %v6397_v63  ;;  %v6405_v63 = vld [vmem:[#allocation23_spill] sm:$0xff] }
 0x5f5   :  { %v2915_v24 = vpop.f32.mrf.mxu2 }
 0x5fa   :  { %3751 = vmatmul.msk.f32.vlgmr.msra.gmra.mxu3 %vm79_vm0, %v2894_v23 }
 0x602   :  { %3752 = vmatmul.msk.f32.gmra.mxu3 %vm79_vm0, %v2897_v58 }
 0x60a   :  { %3753 = vmatmul.msk.f32.gmra.mxu3 %vm79_vm0, %v2900_v30 }
 0x612   :  { %3754 = vmatmul.msk.f32.gmra.mxu3 %vm79_vm0, %v2903_v42 }
 0x61a   :  { %3755 = vmatmul.msk.f32.gmra.mxu3 %vm79_vm0, %v2906_v40 }
 0x622   :  { %3756 = vmatmul.msk.f32.gmra.mxu3 %vm79_vm0, %v2909_v6 }
 0x62a   :  { %3757 = vmatmul.msk.f32.gmra.mxu3 %vm79_vm0, %v2912_v41 }
 0x632   :  { %3758 = vmatmul.msk.f32.gmra.mxu3 %vm79_vm0, %v2915_v24 }
 0x63d   :  { %v2631_v27 = vpop.f32.mrf.mxu3 }
 0x63e   :  { %3731 = vmatmul.msk.f32.vlgmr.msrb.gmra.mxu0 %vm79_vm0, %v2631_v27 }
 0x63f   :  { %3362 = vmatpush.msrb.mxu0 %v3920_v17 }
 0x641   :  { %3363 = vmatpush.msrb.mxu0 %v3921_v60 }
 0x643   :  { %3364 = vmatpush.msrb.mxu0 %v3925_v62 }
 0x645   :  { %3365 = vmatpush.msrb.mxu0 %v3926_v13  ;;  %v2634_v59 = vpop.f32.mrf.mxu3 }
 0x646   :  { %3732 = vmatmul.msk.f32.gmra.mxu0 %vm79_vm0, %v2634_v59 }
 0x647   :  { %3366 = vmatpush.msrb.mxu0 %v3930_v56 }
 0x649   :  { %3367 = vmatpush.msrb.mxu0 %v3931_v46  ;;  %v3302_v46 = vpop.trf.xlu2 }
 0x64b   :  { %3368 = vmatpush.msrb.mxu0 %v3935_v53 }
 0x64d   :  { %3369 = vmatpush.msrb.mxu0 %v3936_v5  ;;  %v2637_v26 = vpop.f32.mrf.mxu3 }
 0x64e   :  { %3733 = vmatmul.msk.f32.gmra.mxu0 %vm79_vm0, %v2637_v26 }
 0x651   :  { %v3303_v31 = vpop.trf.xlu2 }
 0x655   :  { %v2640_v60 = vpop.f32.mrf.mxu3 }
 0x656   :  { %3734 = vmatmul.msk.f32.gmra.mxu0 %vm79_vm0, %v2640_v60 }
 0x659   :  { %v3304_v12 = vpop.trf.xlu2 }
 0x65d   :  { %v2643_v17 = vpop.f32.mrf.mxu3 }
 0x65e   :  { %3735 = vmatmul.msk.f32.gmra.mxu0 %vm79_vm0, %v2643_v17 }
 0x661   :  { %v3305_v50 = vpop.trf.xlu2 }
 0x662   :  { %3782 = vmatmul.msk.f32.vlgmr.msra.gmra.mxu2 %vm2023_vm4, %v3305_v50 }
 0x665   :  { %v2646_v51 = vpop.f32.mrf.mxu3 }
 0x666   :  { %3736 = vmatmul.msk.f32.gmra.mxu0 %vm79_vm0, %v2646_v51 }
 0x66d   :  { %v2649_v35 = vpop.f32.mrf.mxu3 }
 0x66e   :  { %3737 = vmatmul.msk.f32.gmra.mxu0 %vm79_vm0, %v2649_v35 }
 0x675   :  { %v2652_v13 = vpop.f32.mrf.mxu3 }
 0x676   :  { %3738 = vmatmul.msk.f32.gmra.mxu0 %vm79_vm0, %v2652_v13 }
 0x67d   :  { %v2959_v62 = vpop.f32.mrf.mxu3 }
 0x67e   :  { %v2960_v56 = vadd.f32 %v5823_v9, %v2959_v62  ;;  %3763 = vmatmul.msk.f32.vlgmr.msra.gmra.mxu0 %vm79_vm0, %v6398_v11 }
 0x680   :  { %2983 = vst [vmem:[#allocation2 + $0xc0] sm:$0xff] %v2960_v56 }
 0x685   :  { %v2962_v53 = vpop.f32.mrf.mxu3 }
 0x686   :  { %v2963_v5 = vadd.f32 %v5823_v9, %v2962_v53  ;;  %3764 = vmatmul.msk.f32.gmra.mxu0 %vm79_vm0, %v6399_v7 }
 0x688   :  { %2984 = vst [vmem:[#allocation2 + $0xc8] sm:$0xff] %v2963_v5 }
 0x68d   :  { %v2965_v4 = vpop.f32.mrf.mxu3 }
 0x68e   :  { %v2966_v28 = vadd.f32 %v5823_v9, %v2965_v4  ;;  %3765 = vmatmul.msk.f32.gmra.mxu0 %vm79_vm0, %v6400_v15 }
 0x690   :  { %2985 = vst [vmem:[#allocation2 + $0xd0] sm:$0xff] %v2966_v28 }
 0x695   :  { %v2968_v14 = vpop.f32.mrf.mxu3 }
 0x696   :  { %v2969_v20 = vadd.f32 %v5823_v9, %v2968_v14  ;;  %3766 = vmatmul.msk.f32.gmra.mxu0 %vm79_vm0, %v6401_v22 }
 0x698   :  { %2986 = vst [vmem:[#allocation2 + $0xd8] sm:$0xff] %v2969_v20 }
 0x69d   :  { %v2971_v25 = vpop.f32.mrf.mxu3 }
 0x69e   :  { %v2972_v61 = vadd.f32 %v5823_v9, %v2971_v25  ;;  %3767 = vmatmul.msk.f32.gmra.mxu0 %vm79_vm0, %v6402_v34 }
 0x6a0   :  { %2987 = vst [vmem:[#allocation2 + $0xe0] sm:$0xff] %v2972_v61 }
 0x6a5   :  { %v2974_v16 = vpop.f32.mrf.mxu3 }
 0x6a6   :  { %v2975_v48 = vadd.f32 %v5823_v9, %v2974_v16  ;;  %3768 = vmatmul.msk.f32.gmra.mxu0 %vm79_vm0, %v6403_v49 }
 0x6a8   :  { %2988 = vst [vmem:[#allocation2 + $0xe8] sm:$0xff] %v2975_v48 }
 0x6ad   :  { %v2977_v8 = vpop.f32.mrf.mxu3 }
 0x6ae   :  { %v2978_v21 = vadd.f32 %v5823_v9, %v2977_v8  ;;  %3769 = vmatmul.msk.f32.gmra.mxu0 %vm79_vm0, %v6404_v44 }
 0x6b0   :  { %2989 = vst [vmem:[#allocation2 + $0xf0] sm:$0xff] %v2978_v21 }
 0x6b5   :  { %v2980_v54 = vpop.f32.mrf.mxu3 }
 0x6b6   :  { %v2981_v23 = vadd.f32 %v5823_v9, %v2980_v54  ;;  %3770 = vmatmul.msk.f32.gmra.mxu0 %vm79_vm0, %v6405_v63 }
 0x6b8   :  { %2990 = vst [vmem:[#allocation2 + $0xf8] sm:$0xff] %v2981_v23 }
 0x6bb   :  { %v2696_v58 = vpop.f32.mrf.mxu0 }
 0x6bc   :  { %v2697_v47 = vadd.f32 %v5823_v9, %v2696_v58 }
 0x6be   :  { %2720 = vst [vmem:[#allocation2 + $0x80] sm:$0xff] %v2697_v47  ;;  %3779 = vmatmul.msk.f32.vlgmr.msrb.gmra.mxu0 %vm2023_vm4, %v3302_v46 }
 0x6c3   :  { %v2699_v30 = vpop.f32.mrf.mxu0 }
 0x6c4   :  { %v2700_v19 = vadd.f32 %v5823_v9, %v2699_v30 }
 0x6c6   :  { %2721 = vst [vmem:[#allocation2 + $0x88] sm:$0xff] %v2700_v19  ;;  %3780 = vmatmul.msk.f32.gmra.mxu0 %vm2023_vm4, %v3303_v31 }
 0x6cb   :  { %v2702_v42 = vpop.f32.mrf.mxu0 }
 0x6cc   :  { %v2703_v55 = vadd.f32 %v5823_v9, %v2702_v42 }
 0x6ce   :  { %2722 = vst [vmem:[#allocation2 + $0x90] sm:$0xff] %v2703_v55  ;;  %3781 = vmatmul.msk.f32.gmra.mxu0 %vm2023_vm4, %v3304_v12 }
 0x6d3   :  { %v2705_v52 = vpop.f32.mrf.mxu0 }
 0x6d4   :  { %v2706_v40 = vadd.f32 %v5823_v9, %v2705_v52 }
 0x6d6   :  { %2723 = vst [vmem:[#allocation2 + $0x98] sm:$0xff] %v2706_v40 }
 0x6db   :  { %v2708_v32 = vpop.f32.mrf.mxu0 }
 0x6dc   :  { %v2709_v1 = vadd.f32 %v5823_v9, %v2708_v32 }
 0x6de   :  { %2724 = vst [vmem:[#allocation2 + $0xa0] sm:$0xff] %v2709_v1 }
 0x6e3   :  { %v2711_v57 = vpop.f32.mrf.mxu0 }
 0x6e4   :  { %v2712_v43 = vadd.f32 %v5823_v9, %v2711_v57 }
 0x6e5   :  { %v3380_v35 = vpop.f32.mrf.mxu2 }
 0x6e6   :  { %2725 = vst [vmem:[#allocation2 + $0xa8] sm:$0xff] %v2712_v43  ;;  %v3386_v13 = vmul.f32 %v6120_v0, %v3380_v35 }
 0x6e8   :  { %3415 = vmatpush.msra.mxu1 %v3386_v13  ;;  %3807 = vmatpush.msrb.mxu3 %v3386_v13 }
 0x6eb   :  { %v2714_v6 = vpop.f32.mrf.mxu0 }
 0x6ec   :  { %v2715_v41 = vadd.f32 %v5823_v9, %v2714_v6 }
 0x6ee   :  { %2726 = vst [vmem:[#allocation2 + $0xb0] sm:$0xff] %v2715_v41 }
 0x6f3   :  { %v2717_v24 = vpop.f32.mrf.mxu0 }
 0x6f4   :  { %v2718_v27 = vadd.f32 %v5823_v9, %v2717_v24 }
 0x6f6   :  { %2727 = vst [vmem:[#allocation2 + $0xb8] sm:$0xff] %v2718_v27 }
 0x6fb   :  { %v3157_v59 = vpop.f32.mrf.mxu0 }
 0x6fc   :  { %3771 = vmatmul.msk.f32.vlgmr.msrb.gmra.mxu1 %vm79_vm0, %v3157_v59 }
 0x703   :  { %v3160_v26 = vpop.f32.mrf.mxu0 }
 0x704   :  { %3772 = vmatmul.msk.f32.gmra.mxu1 %vm79_vm0, %v3160_v26 }
 0x70b   :  { %v3163_v60 = vpop.f32.mrf.mxu0 }
 0x70c   :  { %3773 = vmatmul.msk.f32.gmra.mxu1 %vm79_vm0, %v3163_v60 }
 0x713   :  { %v3166_v17 = vpop.f32.mrf.mxu0 }
 0x714   :  { %3774 = vmatmul.msk.f32.gmra.mxu1 %vm79_vm0, %v3166_v17 }
 0x71b   :  { %v3169_v51 = vpop.f32.mrf.mxu0 }
 0x71c   :  { %3775 = vmatmul.msk.f32.gmra.mxu1 %vm79_vm0, %v3169_v51 }
 0x723   :  { %v3172_v9 = vpop.f32.mrf.mxu0 }
 0x724   :  { %3776 = vmatmul.msk.f32.gmra.mxu1 %vm79_vm0, %v3172_v9 }
 0x72b   :  { %v3175_v62 = vpop.f32.mrf.mxu0 }
 0x72c   :  { %3777 = vmatmul.msk.f32.gmra.mxu1 %vm79_vm0, %v3175_v62 }
 0x733   :  { %v3178_v56 = vpop.f32.mrf.mxu0 }
 0x734   :  { %3778 = vmatmul.msk.f32.gmra.mxu1 %vm79_vm0, %v3178_v56 }
 0x73b   :  { %v3371_v11 = vpop.f32.mrf.mxu0 }
 0x73c   :  { %v3383_v0 = vmul.f32 %v6138_v2, %v3371_v11 }
 0x743   :  { %v3374_v46 = vpop.f32.mrf.mxu0 }
 0x744   :  { %v3384_v7 = vmul.f32 %v6132_v36, %v3374_v46 }
 0x74b   :  { %v3377_v53 = vpop.f32.mrf.mxu0 }
 0x74c   :  { %v3385_v5 = vmul.f32 %v6126_v45, %v3377_v53 }
 0x74e   :  { %3416 = vmatpush.msra.mxu1 %v3385_v5  ;;  %3808 = vmatpush.msrb.mxu3 %v3385_v5 }
 0x750   :  { %3417 = vmatpush.msra.mxu1 %v3384_v7  ;;  %3809 = vmatpush.msrb.mxu3 %v3384_v7 }
 0x752   :  { %3418 = vmatpush.msra.mxu1 %v3383_v0  ;;  %3810 = vmatpush.msrb.mxu3 %v3383_v0 }
 0x753   :  { %3783 = vmatmul.msk.f32.vlgmr.msra.gmra.mxu1 %vm79_vm0, %v5879_v39  ;;  %3784 = vmatmul.msk.f32.vlgmr.msrb.gmra.mxu3 %vm79_vm0, %v5897_v33  ;;  %v6260_v39 = vld [vmem:[%s6299_s6] ss:$0 sm:$0xff]  ;;  %s4080_s6 = smov [#allocation2]  }
 0x754   :  { %s3521_s11 = sshll.u32 %s4080_s6, 4  ;;  %s3522_s11 = int_to_ptr.vmem [resolvable:$true] %s3521_s11 }
 0x75b   :  { %3785 = vmatmul.msk.f32.gmra.mxu3 %vm79_vm0, %v5916_v38 }
 0x763   :  { %3786 = vmatmul.msk.f32.gmra.mxu3 %vm79_vm0, %v5932_v29 }
 0x76b   :  { %3787 = vmatmul.msk.f32.gmra.mxu3 %vm79_vm0, %v5943_v37 }
 0x773   :  { %3788 = vmatmul.msk.f32.gmra.mxu3 %vm79_vm0, %v5951_v3 }
 0x779   :  { %v3222_v45 = vpop.f32.mrf.mxu1 }
 0x77a   :  { %v3223_v33 = vadd.f32 %v6260_v39, %v3222_v45 }
 0x77b   :  { %3789 = vmatmul.msk.f32.gmra.mxu3 %vm79_vm0, %v5961_v10 }
 0x77c   :  { %3246 = vst [vmem:[#allocation2 + $0x100] sm:$0xff] %v3223_v33 }
 0x781   :  { %v3225_v38 = vpop.f32.mrf.mxu1 }
 0x782   :  { %v3226_v29 = vadd.f32 %v6260_v39, %v3225_v38 }
 0x783   :  { %3790 = vmatmul.msk.f32.gmra.mxu3 %vm79_vm0, %v5971_v18 }
 0x784   :  { %3247 = vst [vmem:[#allocation2 + $0x108] sm:$0xff] %v3226_v29 }
 0x789   :  { %v3228_v37 = vpop.f32.mrf.mxu1 }
 0x78a   :  { %v3229_v3 = vadd.f32 %v6260_v39, %v3228_v37 }
 0x78c   :  { %3248 = vst [vmem:[#allocation2 + $0x110] sm:$0xff] %v3229_v3 }
 0x791   :  { %v3231_v36 = vpop.f32.mrf.mxu1 }
 0x792   :  { %v3232_v2 = vadd.f32 %v6260_v39, %v3231_v36 }
 0x794   :  { %3249 = vst [vmem:[#allocation2 + $0x118] sm:$0xff] %v3232_v2 }
 0x799   :  { %v3234_v31 = vpop.f32.mrf.mxu1 }
 0x79a   :  { %v3235_v4 = vadd.f32 %v6260_v39, %v3234_v31 }
 0x79c   :  { %3250 = vst [vmem:[#allocation2 + $0x120] sm:$0xff] %v3235_v4 }
 0x7a1   :  { %v3237_v10 = vpop.f32.mrf.mxu1 }
 0x7a2   :  { %v3238_v28 = vadd.f32 %v6260_v39, %v3237_v10 }
 0x7a4   :  { %3251 = vst [vmem:[#allocation2 + $0x128] sm:$0xff] %v3238_v28 }
 0x7a9   :  { %v3240_v15 = vpop.f32.mrf.mxu1 }
 0x7aa   :  { %v3241_v18 = vadd.f32 %v6260_v39, %v3240_v15 }
 0x7ac   :  { %3252 = vst [vmem:[#allocation2 + $0x130] sm:$0xff] %v3241_v18 }
 0x7b1   :  { %v3243_v12 = vpop.f32.mrf.mxu1 }
 0x7b2   :  { %v3244_v14 = vadd.f32 %v6260_v39, %v3243_v12 }
 0x7b4   :  { %3253 = vst [vmem:[#allocation2 + $0x138] sm:$0xff] %v3244_v14 }
 0x7d0   :  { %v3420_v20 = vpop.f32.mrf.mxu1 }
 0x7d1   :  { %3791 = vmatmul.msk.f32.vlgmr.msrb.gmra.mxu2 %vm79_vm0, %v3420_v20 }
 0x7d6   :  { %v3423_v22 = vpop.f32.mrf.mxu3 }
 0x7d9   :  { %3792 = vmatmul.msk.f32.gmra.mxu2 %vm79_vm0, %v3423_v22 }
 0x7de   :  { %v3426_v50 = vpop.f32.mrf.mxu3 }
 0x7e1   :  { %3793 = vmatmul.msk.f32.gmra.mxu2 %vm79_vm0, %v3426_v50 }
 0x7e6   :  { %v3429_v25 = vpop.f32.mrf.mxu3 }
 0x7e9   :  { %3794 = vmatmul.msk.f32.gmra.mxu2 %vm79_vm0, %v3429_v25 }
 0x7ee   :  { %v3432_v61 = vpop.f32.mrf.mxu3 }
 0x7f1   :  { %3795 = vmatmul.msk.f32.gmra.mxu2 %vm79_vm0, %v3432_v61 }
 0x7f6   :  { %v3435_v34 = vpop.f32.mrf.mxu3 }
 0x7f9   :  { %3796 = vmatmul.msk.f32.gmra.mxu2 %vm79_vm0, %v3435_v34 }
 0x7fe   :  { %v3438_v16 = vpop.f32.mrf.mxu3 }
 0x801   :  { %3797 = vmatmul.msk.f32.gmra.mxu2 %vm79_vm0, %v3438_v16 }
 0x806   :  { %v3441_v48 = vpop.f32.mrf.mxu3 }
 0x809   :  { %3798 = vmatmul.msk.f32.gmra.mxu2 %vm79_vm0, %v3441_v48 }
 0x854   :  { %v3485_v49 = vpop.f32.mrf.mxu2 }
 0x855   :  { %v3486_v8 = vadd.f32 %v6260_v39, %v3485_v49 }
 0x857   :  { %3509 = vst [vmem:[#allocation2 + $0x140] sm:$0xff] %v3486_v8 }
 0x85c   :  { %v3488_v21 = vpop.f32.mrf.mxu2 }
 0x85d   :  { %v3489_v44 = vadd.f32 %v6260_v39, %v3488_v21 }
 0x85f   :  { %3510 = vst [vmem:[#allocation2 + $0x148] sm:$0xff] %v3489_v44 }
 0x864   :  { %v3491_v54 = vpop.f32.mrf.mxu2 }
 0x865   :  { %v3492_v23 = vadd.f32 %v6260_v39, %v3491_v54 }
 0x867   :  { %3511 = vst [vmem:[#allocation2 + $0x150] sm:$0xff] %v3492_v23 }
 0x86c   :  { %v3494_v63 = vpop.f32.mrf.mxu2 }
 0x86d   :  { %v3495_v58 = vadd.f32 %v6260_v39, %v3494_v63 }
 0x86f   :  { %3512 = vst [vmem:[#allocation2 + $0x158] sm:$0xff] %v3495_v58 }
 0x874   :  { %v3497_v47 = vpop.f32.mrf.mxu2 }
 0x875   :  { %v3498_v30 = vadd.f32 %v6260_v39, %v3497_v47 }
 0x877   :  { %3513 = vst [vmem:[#allocation2 + $0x160] sm:$0xff] %v3498_v30 }
 0x87c   :  { %v3500_v19 = vpop.f32.mrf.mxu2 }
 0x87d   :  { %v3501_v42 = vadd.f32 %v6260_v39, %v3500_v19 }
 0x87f   :  { %3514 = vst [vmem:[#allocation2 + $0x168] sm:$0xff] %v3501_v42 }
 0x884   :  { %v3503_v55 = vpop.f32.mrf.mxu2 }
 0x885   :  { %v3504_v52 = vadd.f32 %v6260_v39, %v3503_v55 }
 0x887   :  { %3515 = vst [vmem:[#allocation2 + $0x170] sm:$0xff] %v3504_v52 }
 0x88c   :  { %v3506_v40 = vpop.f32.mrf.mxu2 }
 0x88d   :  { %v3507_v32 = vadd.f32 %v6260_v39, %v3506_v40 }
 0x88f   :  { %3516 = vst [vmem:[#allocation2 + $0x178] sm:$0xff] %v3507_v32 }
 0x890   :  { %3529 = dma.vmem_to_hbm [thread:$0]  %s3522_s11, 6144, %s3524_s13, [#allocation3], %s4081_s2, %s4081_s2, %s4082_s1  }
 0x891   :  { %4076 = dma.done.wait [#allocation3], 6144  }
 0x892   :  { %4077 = vsyncadd [#allocation3], 4294961152 }
 0x893   :  { %3534 = vsyncpa [#allocation3], 1 }

</bundles_post_ra>
